<compile_context>
chip_gen: v7x
topology: tpu7x:2x2x1
jax: 0.10.0
libtpu: 0.0.40
codegen_flags: <defaults>
</compile_context>

<pallas_src>
import math
import functools

import jax
import jax.numpy as jnp
from jax import lax
from jax.experimental import pallas as pl
from jax.experimental.pallas import tpu as pltpu


# ---------------- Kernel 1: tiled matmul (in_proj), bf16 MXU, f32 accumulator ----------
def _matmul_kernel(a_ref, b_ref, o_ref, acc_ref):
    @pl.when(pl.program_id(2) == 0)
    def _():
        acc_ref[...] = jnp.zeros_like(acc_ref)

    acc_ref[...] += jnp.dot(a_ref[...], b_ref[...], preferred_element_type=jnp.float32)

    @pl.when(pl.program_id(2) == pl.num_programs(2) - 1)
    def _():
        o_ref[...] = acc_ref[...]


def _fit(dim, tile):
    # use the target tile if it divides the dim, otherwise fall back to the full dim
    return tile if dim % tile == 0 else dim


def matmul(a, b, tm=256, tn=256, tk=512):
    M, K = a.shape
    K2, N = b.shape
    assert K == K2
    tm, tn, tk = _fit(M, tm), _fit(N, tn), _fit(K, tk)
    a = a.astype(jnp.bfloat16)
    b = b.astype(jnp.bfloat16)
    return pl.pallas_call(
        _matmul_kernel,
        out_shape=jax.ShapeDtypeStruct((M, N), jnp.float32),
        grid=(M // tm, N // tn, K // tk),
        in_specs=[pl.BlockSpec((tm, tk), lambda i, j, k: (i, k)),
                  pl.BlockSpec((tk, tn), lambda i, j, k: (k, j))],
        out_specs=pl.BlockSpec((tm, tn), lambda i, j, k: (i, j)),
        scratch_shapes=[pltpu.VMEM((tm, tn), jnp.float32)],
        compiler_params=pltpu.CompilerParams(
            dimension_semantics=("parallel", "parallel", "arbitrary")),
    )(a, b)


# ---------------- Kernel 2: depthwise 3x3 conv + bias + SiLU (in-kernel zero pad) -------
def _dwconv_silu_kernel(x_ref, w_ref, b_ref, o_ref, xp_ref):
    H, W, C = o_ref.shape
    # zero padding built in VMEM scratch -- no padded HBM intermediate
    xp_ref[...] = jnp.zeros(xp_ref.shape, jnp.float32)
    xp_ref[1:1 + H, 1:1 + W, :] = x_ref[...]
    acc = jnp.zeros((H, W, C), jnp.float32) + b_ref[0, :]
    for ky in range(3):
        for kx in range(3):
            acc = acc + xp_ref[ky:ky + H, kx:kx + W, :] * w_ref[ky, kx, :]
    # SiLU: divide moved to EUP via approx reciprocal (keeps it off the VALU)
    o_ref[...] = acc * pl.reciprocal(1.0 + jnp.exp(-acc), approx=True)


def dwconv_silu(x, w, b):
    B, H, W, C = x.shape
    return pl.pallas_call(
        _dwconv_silu_kernel,
        out_shape=jax.ShapeDtypeStruct((B, H, W, C), jnp.float32),
        grid=(B,),
        in_specs=[pl.BlockSpec((None, H, W, C), lambda i: (i, 0, 0, 0)),
                  pl.BlockSpec((3, 3, C), lambda i: (0, 0, 0)),
                  pl.BlockSpec((1, C), lambda i: (0, 0))],
        out_specs=pl.BlockSpec((None, H, W, C), lambda i: (i, 0, 0, 0)),
        scratch_shapes=[pltpu.VMEM((H + 2, W + 2, C), jnp.float32)],
        compiler_params=pltpu.CompilerParams(dimension_semantics=("parallel",)),
    )(x, w, b.reshape(1, C))


# ---------------- Kernel 3: selective scan (d_state == 1), chunked recurrence -----------
_CHUNK = 8


def _ssm_scan_kernel(xs_ref, dtw_ref, dtb_ref, bcw_ref, a_ref,
                     hs_ref, cs_ref, la_scr, bx_scr):
    L, D = xs_ref.shape
    T = _CHUNK
    xs = xs_ref[...]                                                    # (L, D) f32

    # dt path folded to a single lane-dense (D, D) bf16 MXU dot (x_proj[:, :R] @ dt_proj)
    dt = jnp.dot(xs.astype(jnp.bfloat16), dtw_ref[...],
                 preferred_element_type=jnp.float32) + dtb_ref[0, :]
    dt = jnp.maximum(dt, 0.0) + jnp.log(1.0 + jnp.exp(-jnp.abs(dt)))    # stable softplus

    # B_t / C_t (d_state == 1): lane reductions instead of a width-2 MXU dot
    Bs = jnp.sum(xs * bcw_ref[0:1, :], axis=-1, keepdims=True)          # (L, 1)
    Cs = jnp.sum(xs * bcw_ref[1:2, :], axis=-1, keepdims=True)          # (L, 1)
    cs_ref[...] = Cs   # small (L, 1) tensor; consumed by the fused gate/out_proj kernel

    la_scr[...] = dt * a_ref[0, :]                                      # log a_t = dt*A <= 0
    bx_scr[...] = dt * Bs * xs                                          # b_t = dt*B_t*u_t

    # Chunked scan: h_t = exp(cum_t) * (h_carry + sum_{s<=t} exp(-cum_s) * b_s)
    # serial chain length drops from L to L/T and stores are full (T, D) blocks.
    row = lax.broadcasted_iota(jnp.int32, (T, T), 0)
    col = lax.broadcasted_iota(jnp.int32, (T, T), 1)
    tri = (col <= row).astype(jnp.float32)                              # inclusive lower-tri

    def chunk(c, h):
        i0 = pl.multiple_of(c * T, T)
        la = la_scr[pl.ds(i0, T), :]                                    # (T, D)
        bx = bx_scr[pl.ds(i0, T), :]
        cum = jnp.dot(tri, la, preferred_element_type=jnp.float32)      # inclusive cumsum
        u = jnp.exp(-cum) * bx                                          # per-chunk exponents stay small
        pre = jnp.dot(tri, u, preferred_element_type=jnp.float32)       # prefix sums
        hc = jnp.exp(cum) * (h + pre)                                   # (T, D)
        hs_ref[pl.ds(i0, T), :] = hc                                    # unmasked block store
        return hc[T - 1:T, :]                                           # carry = last row

    lax.fori_loop(0, L // T, chunk, jnp.zeros((1, D), jnp.float32))


def ssm_scan(xs, dtW, dt_bias, bc_w, A_neg):
    B, L, D = xs.shape
    assert L % _CHUNK == 0
    return pl.pallas_call(
        _ssm_scan_kernel,
        out_shape=(jax.ShapeDtypeStruct((B, L, D), jnp.float32),
                   jax.ShapeDtypeStruct((B, L, 1), jnp.float32)),
        grid=(B,),
        in_specs=[pl.BlockSpec((None, L, D), lambda i: (i, 0, 0)),
                  pl.BlockSpec((D, D), lambda i: (0, 0)),
                  pl.BlockSpec((1, D), lambda i: (0, 0)),
                  pl.BlockSpec((2, D), lambda i: (0, 0)),
                  pl.BlockSpec((1, D), lambda i: (0, 0))],
        out_specs=(pl.BlockSpec((None, L, D), lambda i: (i, 0, 0)),
                   pl.BlockSpec((None, L, 1), lambda i: (i, 0, 0))),
        scratch_shapes=[pltpu.VMEM((L, D), jnp.float32),
                        pltpu.VMEM((L, D), jnp.float32)],
        compiler_params=pltpu.CompilerParams(dimension_semantics=("parallel",)),
    )(xs, dtW, dt_bias, bc_w, A_neg)


# ------ Kernel 4: StateFusion + (y=h*C+u*D) + LayerNorm + SiLU(z) gate + out_proj --------
def _fusion_gate_out_kernel(hs_ref, cs_ref, xs_ref, z_ref,
                            k1_ref, k2_ref, k3_ref,
                            ds_ref, g_ref, b_ref, w_ref,
                            o_ref, xp_ref):
    H, W, D = hs_ref.shape
    L = H * W
    P = 5
    Hp, Wp = H + 2 * P, W + 2 * P

    # replicate ("edge") padding built in VMEM -- no padded HBM intermediate
    xp_ref[P:P + H, P:P + W, :] = hs_ref[...]
    xp_ref[0:P, P:P + W, :] = jnp.broadcast_to(hs_ref[0:1, :, :], (P, W, D))
    xp_ref[P + H:Hp, P:P + W, :] = jnp.broadcast_to(hs_ref[H - 1:H, :, :], (P, W, D))
    left = xp_ref[:, P:P + 1, :]
    right = xp_ref[:, P + W - 1:P + W, :]
    xp_ref[:, 0:P, :] = jnp.broadcast_to(left, (Hp, P, D))
    xp_ref[:, P + W:Wp, :] = jnp.broadcast_to(right, (Hp, P, D))

    # StateFusion training path: 3 dilated depthwise 3x3 convs (alpha folded into weights)
    acc = jnp.zeros((H, W, D), jnp.float32)
    for (k_ref, dil) in ((k1_ref, 1), (k2_ref, 3), (k3_ref, 5)):
        for ky in range(3):
            for kx in range(3):
                oy = P + (ky - 1) * dil
                ox = P + (kx - 1) * dil
                acc = acc + k_ref[ky, kx, :] * xp_ref[oy:oy + H, ox:ox + W, :]
    hf = acc.reshape(L, D)

    # y = h*C + u*D, LayerNorm over d_inner (f32), SiLU(z) gate
    y = hf * cs_ref[...] + xs_ref[...] * ds_ref[0, :]
    mu = jnp.mean(y, axis=-1, keepdims=True)
    var = jnp.mean((y - mu) ** 2, axis=-1, keepdims=True)
    yn = (y - mu) * lax.rsqrt(var + 1e-5) * g_ref[0, :] + b_ref[0, :]
    z = z_ref[...]
    zg = z * pl.reciprocal(1.0 + jnp.exp(-z), approx=True)

    # fused out_proj: bf16 MXU dot into a lane-dense 128-wide (zero-padded) output
    o_ref[...] = jnp.dot((yn * zg).astype(jnp.bfloat16), w_ref[...],
                         preferred_element_type=jnp.float32)


def fusion_gate_out(hs, cs, xs, z, k1, k2, k3, Ds, ln_g, ln_b, w_out_pad):
    B, H, W, D = hs.shape
    L = H * W
    Np = w_out_pad.shape[1]
    return pl.pallas_call(
        _fusion_gate_out_kernel,
        out_shape=jax.ShapeDtypeStruct((B, L, Np), jnp.float32),
        grid=(B,),
        in_specs=[pl.BlockSpec((None, H, W, D), lambda i: (i, 0, 0, 0)),
                  pl.BlockSpec((None, L, 1), lambda i: (i, 0, 0)),
                  pl.BlockSpec((None, L, D), lambda i: (i, 0, 0)),
                  pl.BlockSpec((None, L, D), lambda i: (i, 0, 0)),
                  pl.BlockSpec((3, 3, D), lambda i: (0, 0, 0)),
                  pl.BlockSpec((3, 3, D), lambda i: (0, 0, 0)),
                  pl.BlockSpec((3, 3, D), lambda i: (0, 0, 0)),
                  pl.BlockSpec((1, D), lambda i: (0, 0)),
                  pl.BlockSpec((1, D), lambda i: (0, 0)),
                  pl.BlockSpec((1, D), lambda i: (0, 0)),
                  pl.BlockSpec((D, Np), lambda i: (0, 0))],
        out_specs=pl.BlockSpec((None, L, Np), lambda i: (i, 0, 0)),
        scratch_shapes=[pltpu.VMEM((H + 10, W + 10, D), jnp.float32)],
        compiler_params=pltpu.CompilerParams(dimension_semantics=("parallel",)),
    )(hs, cs, xs, z, k1, k2, k3, Ds, ln_g, ln_b, w_out_pad)


# -------------------------------- parameters -------------------------------------------
def init_params(key, d_model=64, d_state=1, d_conv=3, expand=2,
                dt_scale=1.0, dt_min=0.001, dt_max=0.1, dt_init_floor=1e-4):
    d_inner = int(expand * d_model)
    dt_rank = math.ceil(d_model / 16)
    ks = jax.random.split(key, 8)

    in_proj_w = jax.random.normal(ks[0], (2 * d_inner, d_model), jnp.float32) / math.sqrt(d_model)
    conv_w = jax.random.normal(ks[1], (d_inner, 1, d_conv, d_conv), jnp.float32) / d_conv
    conv_b = 0.1 * jax.random.normal(ks[2], (d_inner,), jnp.float32)
    x_proj_w = jax.random.normal(ks[3], (dt_rank + 2 * d_state, d_inner), jnp.float32) / math.sqrt(d_inner)

    dt_init_std = dt_rank ** (-0.5) * dt_scale
    dt_projs_w = jax.random.uniform(ks[4], (d_inner, dt_rank), jnp.float32,
                                    minval=-dt_init_std, maxval=dt_init_std)
    dt = jnp.exp(jax.random.uniform(ks[5], (d_inner,), jnp.float32)
                 * (math.log(dt_max) - math.log(dt_min)) + math.log(dt_min))
    dt = jnp.maximum(dt, dt_init_floor)
    dt_projs_b = dt + jnp.log(-jnp.expm1(-dt))          # inverse-softplus init

    A_logs = jnp.log(jnp.tile(jnp.arange(1, d_state + 1, dtype=jnp.float32), (d_inner, 1)))
    Ds = jnp.ones((d_inner,), jnp.float32)

    kernel_3 = jnp.ones((d_inner, 1, 3, 3), jnp.float32)      # torch init: ones
    kernel_3_1 = jnp.ones((d_inner, 1, 3, 3), jnp.float32)
    kernel_3_2 = jnp.ones((d_inner, 1, 3, 3), jnp.float32)
    alpha = jnp.ones((3,), jnp.float32)

    ln_g = jnp.ones((d_inner,), jnp.float32)
    ln_b = jnp.zeros((d_inner,), jnp.float32)
    out_proj_w = jax.random.normal(ks[6], (d_model, d_inner), jnp.float32) / math.sqrt(d_inner)

    # channels-last / pre-transposed / fused views for the kernels (layout glue only)
    R = dt_rank
    x_proj_wT = x_proj_w.T                                             # (d_inner, R + 2N)
    dtW = (x_proj_wT[:, :R] @ dt_projs_w.T).astype(jnp.bfloat16)       # (D, D) folded dt path
    bc_w = x_proj_wT[:, R:R + 2].T                                     # (2, D): B row, C row
    n_pad = ((d_model + 127) // 128) * 128                             # lane-dense out width
    out_proj_wT_pad = jnp.pad(out_proj_w.T,
                              ((0, 0), (0, n_pad - d_model))).astype(jnp.bfloat16)

    return dict(
        d_model=d_model, d_inner=d_inner, d_state=d_state, dt_rank=dt_rank,
        in_proj_wT=in_proj_w.T,                                   # (d_model, 2*d_inner)
        conv_w_hwc=jnp.transpose(conv_w[:, 0], (1, 2, 0)),        # (3, 3, d_inner)
        conv_b=conv_b,
        dtW=dtW,                                                  # (D, D) bf16
        bc_w=bc_w,                                                # (2, D)
        dt_projs_b=dt_projs_b.reshape(1, d_inner),
        A_neg=(-jnp.exp(A_logs))[:, 0].reshape(1, d_inner),       # d_state == 1
        Ds=Ds.reshape(1, d_inner),
        k3_hwc=jnp.transpose(kernel_3[:, 0], (1, 2, 0)),
        k31_hwc=jnp.transpose(kernel_3_1[:, 0], (1, 2, 0)),
        k32_hwc=jnp.transpose(kernel_3_2[:, 0], (1, 2, 0)),
        alpha=alpha,
        ln_g=ln_g.reshape(1, d_inner),
        ln_b=ln_b.reshape(1, d_inner),
        out_proj_wT_pad=out_proj_wT_pad,                          # (d_inner, 128) bf16
    )


# -------------------------------- forward ----------------------------------------------
def forward(x, params):
    B, H, W, C = x.shape
    D = params['d_inner']
    L = H * W
    dm = params['d_model']

    # in_proj (tiled bf16 MXU matmul), chunk into x / z
    xz = matmul(x.reshape(B * L, C), params['in_proj_wT'])              # (B*L, 2D) f32
    xz = xz.reshape(B, H, W, 2 * D)
    xc, z = xz[..., :D], xz[..., D:]

    # depthwise 3x3 conv + bias + SiLU (zero padding done inside the kernel)
    x_act = dwconv_silu(xc, params['conv_w_hwc'], params['conv_b'])     # (B, H, W, D)
    xs = x_act.reshape(B, L, D)

    # selective scan with d_state = 1 (chunked recurrence, folded dt projection)
    hs, cs = ssm_scan(xs, params['dtW'], params['dt_projs_b'], params['bc_w'],
                      params['A_neg'])                                  # (B,L,D), (B,L,1)

    # StateFusion + y=h*C+u*D + LayerNorm + SiLU(z) gate + out_proj in one fused kernel;
    # alpha is pre-multiplied into the depthwise weights (removes 27 scalar*vector muls).
    a = params['alpha']
    k1 = params['k3_hwc'] * a[0]
    k2 = params['k31_hwc'] * a[1]
    k3 = params['k32_hwc'] * a[2]
    out = fusion_gate_out(hs.reshape(B, H, W, D), cs, xs, z.reshape(B, L, D),
                          k1, k2, k3, params['Ds'], params['ln_g'], params['ln_b'],
                          params['out_proj_wT_pad'])                    # (B, L, 128)
    return out[:, :, :dm].reshape(B, H, W, dm)


if __name__ == "__main__":
    B, Hsp, Wsp, d_model = 2, 8, 8, 64        # d_inner = 128 -> lane-dense channels
    key = jax.random.PRNGKey(0)
    k_x, k_p = jax.random.split(key)
    params = init_params(k_p, d_model=d_model, d_state=1, d_conv=3, expand=2)
    x = jax.random.normal(k_x, (B, Hsp, Wsp, d_model), jnp.float32)

    fwd = jax.jit(functools.partial(forward, params=params))
    y = fwd(x)
    y = jax.block_until_ready(y)
    assert y.shape == (B, Hsp, Wsp, d_model)
    assert jnp.all(jnp.isfinite(y))
    print("KERNEL_OK")
</pallas_src>

<mosaic_0001>
module attributes {stable_mosaic.version = 11 : i64} {
  func.func @_matmul_kernel(%arg0: i32, %arg1: i32, %arg2: i32, %arg3: memref<128x64xbf16, #tpu.memory_space<vmem>>, %arg4: memref<64x256xbf16, #tpu.memory_space<vmem>>, %arg5: memref<128x256xf32, #tpu.memory_space<vmem>>, %arg6: memref<128x256xf32, #tpu.memory_space<vmem>>) attributes {dimension_semantics = [#tpu.dimension_semantics<parallel>, #tpu.dimension_semantics<parallel>, #tpu.dimension_semantics<arbitrary>], iteration_bounds = array<i64: 1, 1, 1>, scalar_prefetch = 0 : i64, scratch_operands = 1 : i64, tpu.core_type = #tpu.core_type<tc>, window_params = [{transform_indices = @transform_0, window_bounds = array<i64: 128, 64>}, {transform_indices = @transform_1, window_bounds = array<i64: 64, 256>}, {transform_indices = @transform_2, window_bounds = array<i64: 128, 256>}]} {
    %c0_i32 = arith.constant 0 : i32
    %0 = arith.cmpi eq, %arg2, %c0_i32 : i32
    %1 = arith.extui %0 : i1 to i32
    %c0_i32_0 = arith.constant 0 : i32
    %2 = arith.cmpi ne, %1, %c0_i32_0 : i32
    scf.if %2 {
      %cst_10 = arith.constant 0.000000e+00 : f32
      %12 = vector.broadcast %cst_10 : f32 to vector<128x256xf32>
      %c0_11 = arith.constant 0 : index
      %c0_12 = arith.constant 0 : index
      %13 = vector.load %arg6[%c0_11, %c0_12] : memref<128x256xf32, #tpu.memory_space<vmem>>, vector<128x256xf32>
      tpu.vector_store %arg6[%c0_11, %c0_12], %12 {strides = array<i32>} : memref<128x256xf32, #tpu.memory_space<vmem>>, vector<128x256xf32>,
    } else {
    }
    %c0 = arith.constant 0 : index
    %c0_1 = arith.constant 0 : index
    %3 = vector.load %arg6[%c0, %c0_1] : memref<128x256xf32, #tpu.memory_space<vmem>>, vector<128x256xf32>
    %c0_2 = arith.constant 0 : index
    %c0_3 = arith.constant 0 : index
    %4 = vector.load %arg3[%c0_2, %c0_3] : memref<128x64xbf16, #tpu.memory_space<vmem>>, vector<128x64xbf16>
    %c0_4 = arith.constant 0 : index
    %c0_5 = arith.constant 0 : index
    %5 = vector.load %arg4[%c0_4, %c0_5] : memref<64x256xbf16, #tpu.memory_space<vmem>>, vector<64x256xbf16>
    %cst = arith.constant dense<0.000000e+00> : vector<128x256xf32>
    %6 = tpu.matmul %4, %5, %cst {dimension_numbers = #tpu.dot_dimension_numbers<[1], [0], [0], [1], [0, 0, 1, 1], [], []>} : vector<128x64xbf16>, vector<64x256xbf16>, vector<128x256xf32> -> vector<128x256xf32>
    %7 = arith.addf %3, %6 : vector<128x256xf32>
    %c0_6 = arith.constant 0 : index
    %c0_7 = arith.constant 0 : index
    %8 = vector.load %arg6[%c0_6, %c0_7] : memref<128x256xf32, #tpu.memory_space<vmem>>, vector<128x256xf32>
    tpu.vector_store %arg6[%c0_6, %c0_7], %7 {strides = array<i32>} : memref<128x256xf32, #tpu.memory_space<vmem>>, vector<128x256xf32>,
    %c0_i32_8 = arith.constant 0 : i32
    %9 = arith.cmpi eq, %arg2, %c0_i32_8 : i32
    %10 = arith.extui %9 : i1 to i32
    %c0_i32_9 = arith.constant 0 : i32
    %11 = arith.cmpi ne, %10, %c0_i32_9 : i32
    scf.if %11 {
      %c0_10 = arith.constant 0 : index
      %c0_11 = arith.constant 0 : index
      %12 = vector.load %arg6[%c0_10, %c0_11] : memref<128x256xf32, #tpu.memory_space<vmem>>, vector<128x256xf32>
      %c0_12 = arith.constant 0 : index
      %c0_13 = arith.constant 0 : index
      %13 = vector.load %arg5[%c0_12, %c0_13] : memref<128x256xf32, #tpu.memory_space<vmem>>, vector<128x256xf32>
      tpu.vector_store %arg5[%c0_12, %c0_13], %12 {strides = array<i32>} : memref<128x256xf32, #tpu.memory_space<vmem>>, vector<128x256xf32>,
    } else {
    }
    return
  }
  func.func @transform_0(%arg0: i32, %arg1: i32, %arg2: i32) -> (i32, i32) {
    %c0_i32 = arith.constant 0 : i32
    return %arg0, %arg2 : i32, i32
  }
  func.func @transform_1(%arg0: i32, %arg1: i32, %arg2: i32) -> (i32, i32) {
    %c0_i32 = arith.constant 0 : i32
    return %arg2, %arg1 : i32, i32
  }
  func.func @transform_2(%arg0: i32, %arg1: i32, %arg2: i32) -> (i32, i32) {
    %c0_i32 = arith.constant 0 : i32
    return %arg0, %arg1 : i32, i32
  }
}

module attributes {stable_mosaic.version = 11 : i64} {
  func.func @_ssm_scan_kernel(%arg0: i32, %arg1: memref<1x64x128xf32, #tpu.memory_space<vmem>>, %arg2: memref<128x128xbf16, #tpu.memory_space<vmem>>, %arg3: memref<1x128xf32, #tpu.memory_space<vmem>>, %arg4: memref<2x128xf32, #tpu.memory_space<vmem>>, %arg5: memref<1x128xf32, #tpu.memory_space<vmem>>, %arg6: memref<1x64x128xf32, #tpu.memory_space<vmem>>, %arg7: memref<1x64x1xf32, #tpu.memory_space<vmem>>, %arg8: memref<64x128xf32, #tpu.memory_space<vmem>>, %arg9: memref<64x128xf32, #tpu.memory_space<vmem>>) attributes {dimension_semantics = [#tpu.dimension_semantics<parallel>], iteration_bounds = array<i64: 2>, scalar_prefetch = 0 : i64, scratch_operands = 2 : i64, tpu.core_type = #tpu.core_type<tc>, window_params = [{transform_indices = @transform_0, window_bounds = array<i64: 1, 64, 128>}, {pipeline_mode = #tpu.pipeline_mode<synchronous>, transform_indices = @transform_1, window_bounds = array<i64: 128, 128>}, {pipeline_mode = #tpu.pipeline_mode<synchronous>, transform_indices = @transform_2, window_bounds = array<i64: 1, 128>}, {pipeline_mode = #tpu.pipeline_mode<synchronous>, transform_indices = @transform_3, window_bounds = array<i64: 2, 128>}, {pipeline_mode = #tpu.pipeline_mode<synchronous>, transform_indices = @transform_4, window_bounds = array<i64: 1, 128>}, {transform_indices = @transform_5, window_bounds = array<i64: 1, 64, 128>}, {transform_indices = @transform_6, window_bounds = array<i64: 1, 64, 1>}]} {
    %c0 = arith.constant 0 : index
    %c0_0 = arith.constant 0 : index
    %c0_1 = arith.constant 0 : index
    %0 = vector.load %arg1[%c0, %c0_0, %c0_1] : memref<1x64x128xf32, #tpu.memory_space<vmem>>, vector<1x64x128xf32>
    %1 = vector.shape_cast %0 : vector<1x64x128xf32> to vector<64x128xf32>
    %2 = arith.truncf %1 : vector<64x128xf32> to vector<64x128xbf16>
    %c0_2 = arith.constant 0 : index
    %c0_3 = arith.constant 0 : index
    %3 = vector.load %arg2[%c0_2, %c0_3] : memref<128x128xbf16, #tpu.memory_space<vmem>>, vector<128x128xbf16>
    %cst = arith.constant dense<0.000000e+00> : vector<64x128xf32>
    %4 = tpu.matmul %2, %3, %cst {dimension_numbers = #tpu.dot_dimension_numbers<[1], [0], [0], [1], [0, 0, 1, 1], [], []>} : vector<64x128xbf16>, vector<128x128xbf16>, vector<64x128xf32> -> vector<64x128xf32>
    %c0_4 = arith.constant 0 : index
    %c0_5 = arith.constant 0 : index
    %5 = vector.load %arg3[%c0_4, %c0_5] : memref<1x128xf32, #tpu.memory_space<vmem>>, vector<1x128xf32>
    %6 = vector.shape_cast %5 : vector<1x128xf32> to vector<128xf32>
    %7 = vector.shape_cast %6 : vector<128xf32> to vector<1x128xf32>
    %8 = vector.broadcast %7 : vector<1x128xf32> to vector<64x128xf32>
    %9 = arith.addf %4, %8 : vector<64x128xf32>
    %cst_6 = arith.constant 0.000000e+00 : f32
    %10 = vector.broadcast %cst_6 : f32 to vector<64x128xf32>
    %11 = arith.maximumf %9, %10 : vector<64x128xf32>
    %12 = math.absf %9 : vector<64x128xf32>
    %cst_7 = arith.constant 0.000000e+00 : f32
    %13 = vector.broadcast %cst_7 : f32 to vector<64x128xf32>
    %14 = arith.subf %13, %12 : vector<64x128xf32>
    %15 = math.exp %14 : vector<64x128xf32>
    %cst_8 = arith.constant 1.000000e+00 : f32
    %16 = vector.broadcast %cst_8 : f32 to vector<64x128xf32>
    %17 = arith.addf %16, %15 : vector<64x128xf32>
    %18 = math.log %17 : vector<64x128xf32>
    %19 = arith.addf %11, %18 : vector<64x128xf32>
    %c0_9 = arith.constant 0 : index
    %c0_10 = arith.constant 0 : index
    %20 = vector.load %arg4[%c0_9, %c0_10] : memref<2x128xf32, #tpu.memory_space<vmem>>, vector<1x128xf32>
    %21 = vector.broadcast %20 : vector<1x128xf32> to vector<64x128xf32>
    %22 = arith.mulf %1, %21 : vector<64x128xf32>
    %cst_11 = arith.constant dense<0.000000e+00> : vector<64xf32>
    %23 = vector.multi_reduction <add>, %22, %cst_11 [1] : vector<64x128xf32> to vector<64xf32>
    %24 = vector.shape_cast %23 : vector<64xf32> to vector<64x1xf32>
    %c1 = arith.constant 1 : index
    %c0_12 = arith.constant 0 : index
    %25 = vector.load %arg4[%c1, %c0_12] : memref<2x128xf32, #tpu.memory_space<vmem>>, vector<1x128xf32>
    %26 = vector.broadcast %25 : vector<1x128xf32> to vector<64x128xf32>
    %27 = arith.mulf %1, %26 : vector<64x128xf32>
    %cst_13 = arith.constant dense<0.000000e+00> : vector<64xf32>
    %28 = vector.multi_reduction <add>, %27, %cst_13 [1] : vector<64x128xf32> to vector<64xf32>
    %29 = vector.shape_cast %28 : vector<64xf32> to vector<64x1xf32>
    %c0_14 = arith.constant 0 : index
    %c0_15 = arith.constant 0 : index
    %c0_16 = arith.constant 0 : index
    %30 = vector.load %arg7[%c0_14, %c0_15, %c0_16] : memref<1x64x1xf32, #tpu.memory_space<vmem>>, vector<1x64x1xf32>
    %31 = vector.shape_cast %30 : vector<1x64x1xf32> to vector<64x1xf32>
    %32 = vector.shape_cast %29 : vector<64x1xf32> to vector<1x64x1xf32>
    tpu.vector_store %arg7[%c0_14, %c0_15, %c0_16], %32 {strides = array<i32>} : memref<1x64x1xf32, #tpu.memory_space<vmem>>, vector<1x64x1xf32>,
    %c0_17 = arith.constant 0 : index
    %c0_18 = arith.constant 0 : index
    %33 = vector.load %arg5[%c0_17, %c0_18] : memref<1x128xf32, #tpu.memory_space<vmem>>, vector<1x128xf32>
    %34 = vector.shape_cast %33 : vector<1x128xf32> to vector<128xf32>
    %35 = vector.shape_cast %34 : vector<128xf32> to vector<1x128xf32>
    %36 = vector.broadcast %35 : vector<1x128xf32> to vector<64x128xf32>
    %37 = arith.mulf %19, %36 : vector<64x128xf32>
    %c0_19 = arith.constant 0 : index
    %c0_20 = arith.constant 0 : index
    %38 = vector.load %arg8[%c0_19, %c0_20] : memref<64x128xf32, #tpu.memory_space<vmem>>, vector<64x128xf32>
    tpu.vector_store %arg8[%c0_19, %c0_20], %37 {strides = array<i32>} : memref<64x128xf32, #tpu.memory_space<vmem>>, vector<64x128xf32>,
    %39 = vector.broadcast %24 : vector<64x1xf32> to vector<64x128xf32>
    %40 = arith.mulf %19, %39 : vector<64x128xf32>
    %41 = arith.mulf %40, %1 : vector<64x128xf32>
    %c0_21 = arith.constant 0 : index
    %c0_22 = arith.constant 0 : index
    %42 = vector.load %arg9[%c0_21, %c0_22] : memref<64x128xf32, #tpu.memory_space<vmem>>, vector<64x128xf32>
    tpu.vector_store %arg9[%c0_21, %c0_22], %41 {strides = array<i32>} : memref<64x128xf32, #tpu.memory_space<vmem>>, vector<64x128xf32>,
    %43 = tpu.iota {dimensions = array<i32: 0>} : vector<8x8xi32>
    %44 = tpu.iota {dimensions = array<i32: 1>} : vector<8x8xi32>
    %45 = arith.cmpi sle, %44, %43 : vector<8x8xi32>
    %46 = arith.extui %45 : vector<8x8xi1> to vector<8x8xi32>
    %47 = arith.sitofp %46 : vector<8x8xi32> to vector<8x8xf32>
    %cst_23 = arith.constant 0.000000e+00 : f32
    %48 = vector.broadcast %cst_23 : f32 to vector<1x128xf32>
    %c0_i32 = arith.constant 0 : i32
    %c8_i32 = arith.constant 8 : i32
    %49 = arith.addi %c0_i32, %c8_i32 : i32
    %c1_i32 = arith.constant 1 : i32
    %50 = scf.for %arg10 = %c0_i32 to %49 step %c1_i32 iter_args(%arg11 = %48) -> (vector<1x128xf32>)  : i32 {
      %c8_i32_25 = arith.constant 8 : i32
      %51 = arith.muli %arg10, %c8_i32_25 : i32
      %52 = tpu.assume_multiple %51, 8 : i32
      %53 = arith.index_cast %52 : i32 to index
      %c0_26 = arith.constant 0 : index
      %54 = vector.load %arg8[%53, %c0_26] : memref<64x128xf32, #tpu.memory_space<vmem>>, vector<8x128xf32>
      %55 = arith.index_cast %52 : i32 to index
      %c0_27 = arith.constant 0 : index
      %56 = vector.load %arg9[%55, %c0_27] : memref<64x128xf32, #tpu.memory_space<vmem>>, vector<8x128xf32>
      %cst_28 = arith.constant dense<0.000000e+00> : vector<8x128xf32>
      %57 = tpu.matmul %47, %54, %cst_28 {dimension_numbers = #tpu.dot_dimension_numbers<[1], [0], [0], [1], [0, 0, 1, 1], [], []>} : vector<8x8xf32>, vector<8x128xf32>, vector<8x128xf32> -> vector<8x128xf32>
      %cst_29 = arith.constant 0.000000e+00 : f32
      %58 = vector.broadcast %cst_29 : f32 to vector<8x128xf32>
      %59 = arith.subf %58, %57 : vector<8x128xf32>
      %60 = math.exp %59 : vector<8x128xf32>
      %61 = arith.mulf %60, %56 : vector<8x128xf32>
      %cst_30 = arith.constant dense<0.000000e+00> : vector<8x128xf32>
      %62 = tpu.matmul %47, %61, %cst_30 {dimension_numbers = #tpu.dot_dimension_numbers<[1], [0], [0], [1], [0, 0, 1, 1], [], []>} : vector<8x8xf32>, vector<8x128xf32>, vector<8x128xf32> -> vector<8x128xf32>
      %63 = math.exp %57 : vector<8x128xf32>
      %64 = vector.broadcast %arg11 : vector<1x128xf32> to vector<8x128xf32>
      %65 = arith.addf %64, %62 : vector<8x128xf32>
      %66 = arith.mulf %63, %65 : vector<8x128xf32>
      %c0_31 = arith.constant 0 : index
      %67 = arith.index_cast %52 : i32 to index
      %c0_32 = arith.constant 0 : index
      %68 = vector.load %arg6[%c0_31, %67, %c0_32] : memref<1x64x128xf32, #tpu.memory_space<vmem>>, vector<1x8x128xf32>
      %69 = vector.shape_cast %68 : vector<1x8x128xf32> to vector<8x128xf32>
      %70 = vector.shape_cast %66 : vector<8x128xf32> to vector<1x8x128xf32>
      tpu.vector_store %arg6[%c0_31, %67, %c0_32], %70 {strides = array<i32>} : memref<1x64x128xf32, #tpu.memory_space<vmem>>, vector<1x8x128xf32>,
      %71 = vector.extract_strided_slice %66 {offsets = [7, 0], sizes = [1, 128], strides = [1, 1]} : vector<8x128xf32> to vector<1x128xf32>
      scf.yield %71 : vector<1x128xf32>
    }
    %c8_i32_24 = arith.constant 8 : i32
    return
  }
  func.func @transform_0(%arg0: i32) -> (i32, i32, i32) {
    %c0_i32 = arith.constant 0 : i32
    %c0_i32_0 = arith.constant 0 : i32
    %c0_i32_1 = arith.constant 0 : i32
    return %arg0, %c0_i32, %c0_i32_0 : i32, i32, i32
  }
  func.func @transform_1(%arg0: i32) -> (i32, i32) {
    %c0_i32 = arith.constant 0 : i32
    %c0_i32_0 = arith.constant 0 : i32
    %c0_i32_1 = arith.constant 0 : i32
    return %c0_i32, %c0_i32_0 : i32, i32
  }
  func.func @transform_2(%arg0: i32) -> (i32, i32) {
    %c0_i32 = arith.constant 0 : i32
    %c0_i32_0 = arith.constant 0 : i32
    %c0_i32_1 = arith.constant 0 : i32
    return %c0_i32, %c0_i32_0 : i32, i32
  }
  func.func @transform_3(%arg0: i32) -> (i32, i32) {
    %c0_i32 = arith.constant 0 : i32
    %c0_i32_0 = arith.constant 0 : i32
    %c0_i32_1 = arith.constant 0 : i32
    return %c0_i32, %c0_i32_0 : i32, i32
  }
  func.func @transform_4(%arg0: i32) -> (i32, i32) {
    %c0_i32 = arith.constant 0 : i32
    %c0_i32_0 = arith.constant 0 : i32
    %c0_i32_1 = arith.constant 0 : i32
    return %c0_i32, %c0_i32_0 : i32, i32
  }
  func.func @transform_5(%arg0: i32) -> (i32, i32, i32) {
    %c0_i32 = arith.constant 0 : i32
    %c0_i32_0 = arith.constant 0 : i32
    %c0_i32_1 = arith.constant 0 : i32
    return %arg0, %c0_i32, %c0_i32_0 : i32, i32, i32
  }
  func.func @transform_6(%arg0: i32) -> (i32, i32, i32) {
    %c0_i32 = arith.constant 0 : i32
    %c0_i32_0 = arith.constant 0 : i32
    %c0_i32_1 = arith.constant 0 : i32
    return %arg0, %c0_i32, %c0_i32_0 : i32, i32, i32
  }
}

module attributes {stable_mosaic.version = 11 : i64} {
  func.func @_dwconv_silu_kernel(%arg0: i32, %arg1: memref<1x8x8x128xf32, #tpu.memory_space<vmem>>, %arg2: memref<3x3x128xf32, #tpu.memory_space<vmem>>, %arg3: memref<1x128xf32, #tpu.memory_space<vmem>>, %arg4: memref<1x8x8x128xf32, #tpu.memory_space<vmem>>, %arg5: memref<10x10x128xf32, #tpu.memory_space<vmem>>) attributes {dimension_semantics = [#tpu.dimension_semantics<parallel>], iteration_bounds = array<i64: 2>, scalar_prefetch = 0 : i64, scratch_operands = 1 : i64, tpu.core_type = #tpu.core_type<tc>, window_params = [{transform_indices = @transform_0, window_bounds = array<i64: 1, 8, 8, 128>}, {pipeline_mode = #tpu.pipeline_mode<synchronous>, transform_indices = @transform_1, window_bounds = array<i64: 3, 3, 128>}, {pipeline_mode = #tpu.pipeline_mode<synchronous>, transform_indices = @transform_2, window_bounds = array<i64: 1, 128>}, {transform_indices = @transform_3, window_bounds = array<i64: 1, 8, 8, 128>}]} {
    %cst = arith.constant 0.000000e+00 : f32
    %0 = vector.broadcast %cst : f32 to vector<10x10x128xf32>
    %c0 = arith.constant 0 : index
    %c0_0 = arith.constant 0 : index
    %c0_1 = arith.constant 0 : index
    %1 = vector.load %arg5[%c0, %c0_0, %c0_1] : memref<10x10x128xf32, #tpu.memory_space<vmem>>, vector<10x10x128xf32>
    tpu.vector_store %arg5[%c0, %c0_0, %c0_1], %0 {strides = array<i32>} : memref<10x10x128xf32, #tpu.memory_space<vmem>>, vector<10x10x128xf32>,
    %c0_2 = arith.constant 0 : index
    %c0_3 = arith.constant 0 : index
    %c0_4 = arith.constant 0 : index
    %c0_5 = arith.constant 0 : index
    %2 = vector.load %arg1[%c0_2, %c0_3, %c0_4, %c0_5] : memref<1x8x8x128xf32, #tpu.memory_space<vmem>>, vector<1x8x8x128xf32>
    %3 = vector.shape_cast %2 : vector<1x8x8x128xf32> to vector<8x8x128xf32>
    %c1 = arith.constant 1 : index
    %c1_6 = arith.constant 1 : index
    %c0_7 = arith.constant 0 : index
    %4 = vector.load %arg5[%c1, %c1_6, %c0_7] : memref<10x10x128xf32, #tpu.memory_space<vmem>>, vector<8x8x128xf32>
    tpu.vector_store %arg5[%c1, %c1_6, %c0_7], %3 {strides = array<i32>} : memref<10x10x128xf32, #tpu.memory_space<vmem>>, vector<8x8x128xf32>,
    %cst_8 = arith.constant 0.000000e+00 : f32
    %5 = vector.broadcast %cst_8 : f32 to vector<8x8x128xf32>
    %c0_9 = arith.constant 0 : index
    %c0_10 = arith.constant 0 : index
    %6 = vector.load %arg3[%c0_9, %c0_10] : memref<1x128xf32, #tpu.memory_space<vmem>>, vector<1x128xf32>
    %7 = vector.shape_cast %6 : vector<1x128xf32> to vector<128xf32>
    %8 = vector.shape_cast %7 : vector<128xf32> to vector<1x1x128xf32>
    %9 = vector.broadcast %8 : vector<1x1x128xf32> to vector<8x8x128xf32>
    %10 = arith.addf %5, %9 : vector<8x8x128xf32>
    %c0_11 = arith.constant 0 : index
    %c0_12 = arith.constant 0 : index
    %c0_13 = arith.constant 0 : index
    %11 = vector.load %arg5[%c0_11, %c0_12, %c0_13] : memref<10x10x128xf32, #tpu.memory_space<vmem>>, vector<8x8x128xf32>
    %c0_14 = arith.constant 0 : index
    %c0_15 = arith.constant 0 : index
    %c0_16 = arith.constant 0 : index
    %12 = vector.load %arg2[%c0_14, %c0_15, %c0_16] : memref<3x3x128xf32, #tpu.memory_space<vmem>>, vector<1x1x128xf32>
    %13 = vector.shape_cast %12 : vector<1x1x128xf32> to vector<128xf32>
    %14 = vector.shape_cast %13 : vector<128xf32> to vector<1x1x128xf32>
    %15 = vector.broadcast %14 : vector<1x1x128xf32> to vector<8x8x128xf32>
    %16 = arith.mulf %11, %15 : vector<8x8x128xf32>
    %17 = arith.addf %10, %16 : vector<8x8x128xf32>
    %c0_17 = arith.constant 0 : index
    %c1_18 = arith.constant 1 : index
    %c0_19 = arith.constant 0 : index
    %18 = vector.load %arg5[%c0_17, %c1_18, %c0_19] : memref<10x10x128xf32, #tpu.memory_space<vmem>>, vector<8x8x128xf32>
    %c0_20 = arith.constant 0 : index
    %c1_21 = arith.constant 1 : index
    %c0_22 = arith.constant 0 : index
    %19 = vector.load %arg2[%c0_20, %c1_21, %c0_22] : memref<3x3x128xf32, #tpu.memory_space<vmem>>, vector<1x1x128xf32>
    %20 = vector.shape_cast %19 : vector<1x1x128xf32> to vector<128xf32>
    %21 = vector.shape_cast %20 : vector<128xf32> to vector<1x1x128xf32>
    %22 = vector.broadcast %21 : vector<1x1x128xf32> to vector<8x8x128xf32>
    %23 = arith.mulf %18, %22 : vector<8x8x128xf32>
    %24 = arith.addf %17, %23 : vector<8x8x128xf32>
    %c0_23 = arith.constant 0 : index
    %c2 = arith.constant 2 : index
    %c0_24 = arith.constant 0 : index
    %25 = vector.load %arg5[%c0_23, %c2, %c0_24] : memref<10x10x128xf32, #tpu.memory_space<vmem>>, vector<8x8x128xf32>
    %c0_25 = arith.constant 0 : index
    %c2_26 = arith.constant 2 : index
    %c0_27 = arith.constant 0 : index
    %26 = vector.load %arg2[%c0_25, %c2_26, %c0_27] : memref<3x3x128xf32, #tpu.memory_space<vmem>>, vector<1x1x128xf32>
    %27 = vector.shape_cast %26 : vector<1x1x128xf32> to vector<128xf32>
    %28 = vector.shape_cast %27 : vector<128xf32> to vector<1x1x128xf32>
    %29 = vector.broadcast %28 : vector<1x1x128xf32> to vector<8x8x128xf32>
    %30 = arith.mulf %25, %29 : vector<8x8x128xf32>
    %31 = arith.addf %24, %30 : vector<8x8x128xf32>
    %c1_28 = arith.constant 1 : index
    %c0_29 = arith.constant 0 : index
    %c0_30 = arith.constant 0 : index
    %32 = vector.load %arg5[%c1_28, %c0_29, %c0_30] : memref<10x10x128xf32, #tpu.memory_space<vmem>>, vector<8x8x128xf32>
    %c1_31 = arith.constant 1 : index
    %c0_32 = arith.constant 0 : index
    %c0_33 = arith.constant 0 : index
    %33 = vector.load %arg2[%c1_31, %c0_32, %c0_33] : memref<3x3x128xf32, #tpu.memory_space<vmem>>, vector<1x1x128xf32>
    %34 = vector.shape_cast %33 : vector<1x1x128xf32> to vector<128xf32>
    %35 = vector.shape_cast %34 : vector<128xf32> to vector<1x1x128xf32>
    %36 = vector.broadcast %35 : vector<1x1x128xf32> to vector<8x8x128xf32>
    %37 = arith.mulf %32, %36 : vector<8x8x128xf32>
    %38 = arith.addf %31, %37 : vector<8x8x128xf32>
    %c1_34 = arith.constant 1 : index
    %c1_35 = arith.constant 1 : index
    %c0_36 = arith.constant 0 : index
    %39 = vector.load %arg5[%c1_34, %c1_35, %c0_36] : memref<10x10x128xf32, #tpu.memory_space<vmem>>, vector<8x8x128xf32>
    %c1_37 = arith.constant 1 : index
    %c1_38 = arith.constant 1 : index
    %c0_39 = arith.constant 0 : index
    %40 = vector.load %arg2[%c1_37, %c1_38, %c0_39] : memref<3x3x128xf32, #tpu.memory_space<vmem>>, vector<1x1x128xf32>
    %41 = vector.shape_cast %40 : vector<1x1x128xf32> to vector<128xf32>
    %42 = vector.shape_cast %41 : vector<128xf32> to vector<1x1x128xf32>
    %43 = vector.broadcast %42 : vector<1x1x128xf32> to vector<8x8x128xf32>
    %44 = arith.mulf %39, %43 : vector<8x8x128xf32>
    %45 = arith.addf %38, %44 : vector<8x8x128xf32>
    %c1_40 = arith.constant 1 : index
    %c2_41 = arith.constant 2 : index
    %c0_42 = arith.constant 0 : index
    %46 = vector.load %arg5[%c1_40, %c2_41, %c0_42] : memref<10x10x128xf32, #tpu.memory_space<vmem>>, vector<8x8x128xf32>
    %c1_43 = arith.constant 1 : index
    %c2_44 = arith.constant 2 : index
    %c0_45 = arith.constant 0 : index
    %47 = vector.load %arg2[%c1_43, %c2_44, %c0_45] : memref<3x3x128xf32, #tpu.memory_space<vmem>>, vector<1x1x128xf32>
    %48 = vector.shape_cast %47 : vector<1x1x128xf32> to vector<128xf32>
    %49 = vector.shape_cast %48 : vector<128xf32> to vector<1x1x128xf32>
    %50 = vector.broadcast %49 : vector<1x1x128xf32> to vector<8x8x128xf32>
    %51 = arith.mulf %46, %50 : vector<8x8x128xf32>
    %52 = arith.addf %45, %51 : vector<8x8x128xf32>
    %c2_46 = arith.constant 2 : index
    %c0_47 = arith.constant 0 : index
    %c0_48 = arith.constant 0 : index
    %53 = vector.load %arg5[%c2_46, %c0_47, %c0_48] : memref<10x10x128xf32, #tpu.memory_space<vmem>>, vector<8x8x128xf32>
    %c2_49 = arith.constant 2 : index
    %c0_50 = arith.constant 0 : index
    %c0_51 = arith.constant 0 : index
    %54 = vector.load %arg2[%c2_49, %c0_50, %c0_51] : memref<3x3x128xf32, #tpu.memory_space<vmem>>, vector<1x1x128xf32>
    %55 = vector.shape_cast %54 : vector<1x1x128xf32> to vector<128xf32>
    %56 = vector.shape_cast %55 : vector<128xf32> to vector<1x1x128xf32>
    %57 = vector.broadcast %56 : vector<1x1x128xf32> to vector<8x8x128xf32>
    %58 = arith.mulf %53, %57 : vector<8x8x128xf32>
    %59 = arith.addf %52, %58 : vector<8x8x128xf32>
    %c2_52 = arith.constant 2 : index
    %c1_53 = arith.constant 1 : index
    %c0_54 = arith.constant 0 : index
    %60 = vector.load %arg5[%c2_52, %c1_53, %c0_54] : memref<10x10x128xf32, #tpu.memory_space<vmem>>, vector<8x8x128xf32>
    %c2_55 = arith.constant 2 : index
    %c1_56 = arith.constant 1 : index
    %c0_57 = arith.constant 0 : index
    %61 = vector.load %arg2[%c2_55, %c1_56, %c0_57] : memref<3x3x128xf32, #tpu.memory_space<vmem>>, vector<1x1x128xf32>
    %62 = vector.shape_cast %61 : vector<1x1x128xf32> to vector<128xf32>
    %63 = vector.shape_cast %62 : vector<128xf32> to vector<1x1x128xf32>
    %64 = vector.broadcast %63 : vector<1x1x128xf32> to vector<8x8x128xf32>
    %65 = arith.mulf %60, %64 : vector<8x8x128xf32>
    %66 = arith.addf %59, %65 : vector<8x8x128xf32>
    %c2_58 = arith.constant 2 : index
    %c2_59 = arith.constant 2 : index
    %c0_60 = arith.constant 0 : index
    %67 = vector.load %arg5[%c2_58, %c2_59, %c0_60] : memref<10x10x128xf32, #tpu.memory_space<vmem>>, vector<8x8x128xf32>
    %c2_61 = arith.constant 2 : index
    %c2_62 = arith.constant 2 : index
    %c0_63 = arith.constant 0 : index
    %68 = vector.load %arg2[%c2_61, %c2_62, %c0_63] : memref<3x3x128xf32, #tpu.memory_space<vmem>>, vector<1x1x128xf32>
    %69 = vector.shape_cast %68 : vector<1x1x128xf32> to vector<128xf32>
    %70 = vector.shape_cast %69 : vector<128xf32> to vector<1x1x128xf32>
    %71 = vector.broadcast %70 : vector<1x1x128xf32> to vector<8x8x128xf32>
    %72 = arith.mulf %67, %71 : vector<8x8x128xf32>
    %73 = arith.addf %66, %72 : vector<8x8x128xf32>
    %cst_64 = arith.constant 0.000000e+00 : f32
    %74 = vector.broadcast %cst_64 : f32 to vector<8x8x128xf32>
    %75 = arith.subf %74, %73 : vector<8x8x128xf32>
    %76 = math.exp %75 : vector<8x8x128xf32>
    %cst_65 = arith.constant 1.000000e+00 : f32
    %77 = vector.broadcast %cst_65 : f32 to vector<8x8x128xf32>
    %78 = arith.addf %77, %76 : vector<8x8x128xf32>
    %79 = tpu.reciprocal %78 {approx = true} : vector<8x8x128xf32> -> vector<8x8x128xf32>
    %80 = arith.mulf %73, %79 : vector<8x8x128xf32>
    %c0_66 = arith.constant 0 : index
    %c0_67 = arith.constant 0 : index
    %c0_68 = arith.constant 0 : index
    %c0_69 = arith.constant 0 : index
    %81 = vector.load %arg4[%c0_66, %c0_67, %c0_68, %c0_69] : memref<1x8x8x128xf32, #tpu.memory_space<vmem>>, vector<1x8x8x128xf32>
    %82 = vector.shape_cast %81 : vector<1x8x8x128xf32> to vector<8x8x128xf32>
    %83 = vector.shape_cast %80 : vector<8x8x128xf32> to vector<1x8x8x128xf32>
    tpu.vector_store %arg4[%c0_66, %c0_67, %c0_68, %c0_69], %83 {strides = array<i32>} : memref<1x8x8x128xf32, #tpu.memory_space<vmem>>, vector<1x8x8x128xf32>,
    return
  }
  func.func @transform_0(%arg0: i32) -> (i32, i32, i32, i32) {
    %c0_i32 = arith.constant 0 : i32
    %c0_i32_0 = arith.constant 0 : i32
    %c0_i32_1 = arith.constant 0 : i32
    %c0_i32_2 = arith.constant 0 : i32
    return %arg0, %c0_i32, %c0_i32_0, %c0_i32_1 : i32, i32, i32, i32
  }
  func.func @transform_1(%arg0: i32) -> (i32, i32, i32) {
    %c0_i32 = arith.constant 0 : i32
    %c0_i32_0 = arith.constant 0 : i32
    %c0_i32_1 = arith.constant 0 : i32
    %c0_i32_2 = arith.constant 0 : i32
    return %c0_i32, %c0_i32_0, %c0_i32_1 : i32, i32, i32
  }
  func.func @transform_2(%arg0: i32) -> (i32, i32) {
    %c0_i32 = arith.constant 0 : i32
    %c0_i32_0 = arith.constant 0 : i32
    %c0_i32_1 = arith.constant 0 : i32
    return %c0_i32, %c0_i32_0 : i32, i32
  }
  func.func @transform_3(%arg0: i32) -> (i32, i32, i32, i32) {
    %c0_i32 = arith.constant 0 : i32
    %c0_i32_0 = arith.constant 0 : i32
    %c0_i32_1 = arith.constant 0 : i32
    %c0_i32_2 = arith.constant 0 : i32
    return %arg0, %c0_i32, %c0_i32_0, %c0_i32_1 : i32, i32, i32, i32
  }
}

module attributes {stable_mosaic.version = 11 : i64} {
  func.func @_fusion_gate_out_kernel(%arg0: i32, %arg1: memref<1x8x8x128xf32, #tpu.memory_space<vmem>>, %arg2: memref<1x64x1xf32, #tpu.memory_space<vmem>>, %arg3: memref<1x64x128xf32, #tpu.memory_space<vmem>>, %arg4: memref<1x64x128xf32, #tpu.memory_space<vmem>>, %arg5: memref<3x3x128xf32, #tpu.memory_space<vmem>>, %arg6: memref<3x3x128xf32, #tpu.memory_space<vmem>>, %arg7: memref<3x3x128xf32, #tpu.memory_space<vmem>>, %arg8: memref<1x128xf32, #tpu.memory_space<vmem>>, %arg9: memref<1x128xf32, #tpu.memory_space<vmem>>, %arg10: memref<1x128xf32, #tpu.memory_space<vmem>>, %arg11: memref<128x128xbf16, #tpu.memory_space<vmem>>, %arg12: memref<1x64x128xf32, #tpu.memory_space<vmem>>, %arg13: memref<18x18x128xf32, #tpu.memory_space<vmem>>) attributes {dimension_semantics = [#tpu.dimension_semantics<parallel>], iteration_bounds = array<i64: 2>, scalar_prefetch = 0 : i64, scratch_operands = 1 : i64, tpu.core_type = #tpu.core_type<tc>, window_params = [{transform_indices = @transform_0, window_bounds = array<i64: 1, 8, 8, 128>}, {transform_indices = @transform_1, window_bounds = array<i64: 1, 64, 1>}, {transform_indices = @transform_2, window_bounds = array<i64: 1, 64, 128>}, {transform_indices = @transform_3, window_bounds = array<i64: 1, 64, 128>}, {pipeline_mode = #tpu.pipeline_mode<synchronous>, transform_indices = @transform_4, window_bounds = array<i64: 3, 3, 128>}, {pipeline_mode = #tpu.pipeline_mode<synchronous>, transform_indices = @transform_5, window_bounds = array<i64: 3, 3, 128>}, {pipeline_mode = #tpu.pipeline_mode<synchronous>, transform_indices = @transform_6, window_bounds = array<i64: 3, 3, 128>}, {pipeline_mode = #tpu.pipeline_mode<synchronous>, transform_indices = @transform_7, window_bounds = array<i64: 1, 128>}, {pipeline_mode = #tpu.pipeline_mode<synchronous>, transform_indices = @transform_8, window_bounds = array<i64: 1, 128>}, {pipeline_mode = #tpu.pipeline_mode<synchronous>, transform_indices = @transform_9, window_bounds = array<i64: 1, 128>}, {pipeline_mode = #tpu.pipeline_mode<synchronous>, transform_indices = @transform_10, window_bounds = array<i64: 128, 128>}, {transform_indices = @transform_11, window_bounds = array<i64: 1, 64, 128>}]} {
    %c0 = arith.constant 0 : index
    %c0_0 = arith.constant 0 : index
    %c0_1 = arith.constant 0 : index
    %c0_2 = arith.constant 0 : index
    %0 = vector.load %arg1[%c0, %c0_0, %c0_1, %c0_2] : memref<1x8x8x128xf32, #tpu.memory_space<vmem>>, vector<1x8x8x128xf32>
    %1 = vector.shape_cast %0 : vector<1x8x8x128xf32> to vector<8x8x128xf32>
    %c5 = arith.constant 5 : index
    %c5_3 = arith.constant 5 : index
    %c0_4 = arith.constant 0 : index
    %2 = vector.load %arg13[%c5, %c5_3, %c0_4] : memref<18x18x128xf32, #tpu.memory_space<vmem>>, vector<8x8x128xf32>
    tpu.vector_store %arg13[%c5, %c5_3, %c0_4], %1 {strides = array<i32>} : memref<18x18x128xf32, #tpu.memory_space<vmem>>, vector<8x8x128xf32>,
    %c0_5 = arith.constant 0 : index
    %c0_6 = arith.constant 0 : index
    %c0_7 = arith.constant 0 : index
    %c0_8 = arith.constant 0 : index
    %3 = vector.load %arg1[%c0_5, %c0_6, %c0_7, %c0_8] : memref<1x8x8x128xf32, #tpu.memory_space<vmem>>, vector<1x1x8x128xf32>
    %4 = vector.shape_cast %3 : vector<1x1x8x128xf32> to vector<1x8x128xf32>
    %5 = vector.shape_cast %4 : vector<1x8x128xf32> to vector<1x8x128xf32>
    %6 = vector.broadcast %5 : vector<1x8x128xf32> to vector<5x8x128xf32>
    %c0_9 = arith.constant 0 : index
    %c5_10 = arith.constant 5 : index
    %c0_11 = arith.constant 0 : index
    %7 = vector.load %arg13[%c0_9, %c5_10, %c0_11] : memref<18x18x128xf32, #tpu.memory_space<vmem>>, vector<5x8x128xf32>
    tpu.vector_store %arg13[%c0_9, %c5_10, %c0_11], %6 {strides = array<i32>} : memref<18x18x128xf32, #tpu.memory_space<vmem>>, vector<5x8x128xf32>,
    %c0_12 = arith.constant 0 : index
    %c7 = arith.constant 7 : index
    %c0_13 = arith.constant 0 : index
    %c0_14 = arith.constant 0 : index
    %8 = vector.load %arg1[%c0_12, %c7, %c0_13, %c0_14] : memref<1x8x8x128xf32, #tpu.memory_space<vmem>>, vector<1x1x8x128xf32>
    %9 = vector.shape_cast %8 : vector<1x1x8x128xf32> to vector<1x8x128xf32>
    %10 = vector.shape_cast %9 : vector<1x8x128xf32> to vector<1x8x128xf32>
    %11 = vector.broadcast %10 : vector<1x8x128xf32> to vector<5x8x128xf32>
    %c13 = arith.constant 13 : index
    %c5_15 = arith.constant 5 : index
    %c0_16 = arith.constant 0 : index
    %12 = vector.load %arg13[%c13, %c5_15, %c0_16] : memref<18x18x128xf32, #tpu.memory_space<vmem>>, vector<5x8x128xf32>
    tpu.vector_store %arg13[%c13, %c5_15, %c0_16], %11 {strides = array<i32>} : memref<18x18x128xf32, #tpu.memory_space<vmem>>, vector<5x8x128xf32>,
    %c0_17 = arith.constant 0 : index
    %c5_18 = arith.constant 5 : index
    %c0_19 = arith.constant 0 : index
    %13 = vector.load %arg13[%c0_17, %c5_18, %c0_19] : memref<18x18x128xf32, #tpu.memory_space<vmem>>, vector<18x1x128xf32>
    %c0_20 = arith.constant 0 : index
    %c12 = arith.constant 12 : index
    %c0_21 = arith.constant 0 : index
    %14 = vector.load %arg13[%c0_20, %c12, %c0_21] : memref<18x18x128xf32, #tpu.memory_space<vmem>>, vector<18x1x128xf32>
    %15 = vector.shape_cast %13 : vector<18x1x128xf32> to vector<18x1x128xf32>
    %16 = vector.broadcast %15 : vector<18x1x128xf32> to vector<18x5x128xf32>
    %c0_22 = arith.constant 0 : index
    %c0_23 = arith.constant 0 : index
    %c0_24 = arith.constant 0 : index
    %17 = vector.load %arg13[%c0_22, %c0_23, %c0_24] : memref<18x18x128xf32, #tpu.memory_space<vmem>>, vector<18x5x128xf32>
    tpu.vector_store %arg13[%c0_22, %c0_23, %c0_24], %16 {strides = array<i32>} : memref<18x18x128xf32, #tpu.memory_space<vmem>>, vector<18x5x128xf32>,
    %18 = vector.shape_cast %14 : vector<18x1x128xf32> to vector<18x1x128xf32>
    %19 = vector.broadcast %18 : vector<18x1x128xf32> to vector<18x5x128xf32>
    %c0_25 = arith.constant 0 : index
    %c13_26 = arith.constant 13 : index
    %c0_27 = arith.constant 0 : index
    %20 = vector.load %arg13[%c0_25, %c13_26, %c0_27] : memref<18x18x128xf32, #tpu.memory_space<vmem>>, vector<18x5x128xf32>
    tpu.vector_store %arg13[%c0_25, %c13_26, %c0_27], %19 {strides = array<i32>} : memref<18x18x128xf32, #tpu.memory_space<vmem>>, vector<18x5x128xf32>,
    %cst = arith.constant 0.000000e+00 : f32
    %21 = vector.broadcast %cst : f32 to vector<8x8x128xf32>
    %c0_28 = arith.constant 0 : index
    %c0_29 = arith.constant 0 : index
    %c0_30 = arith.constant 0 : index
    %22 = vector.load %arg5[%c0_28, %c0_29, %c0_30] : memref<3x3x128xf32, #tpu.memory_space<vmem>>, vector<1x1x128xf32>
    %23 = vector.shape_cast %22 : vector<1x1x128xf32> to vector<128xf32>
    %c4 = arith.constant 4 : index
    %c4_31 = arith.constant 4 : index
    %c0_32 = arith.constant 0 : index
    %24 = vector.load %arg13[%c4, %c4_31, %c0_32] : memref<18x18x128xf32, #tpu.memory_space<vmem>>, vector<8x8x128xf32>
    %25 = vector.shape_cast %23 : vector<128xf32> to vector<1x1x128xf32>
    %26 = vector.broadcast %25 : vector<1x1x128xf32> to vector<8x8x128xf32>
    %27 = arith.mulf %26, %24 : vector<8x8x128xf32>
    %28 = arith.addf %21, %27 : vector<8x8x128xf32>
    %c0_33 = arith.constant 0 : index
    %c1 = arith.constant 1 : index
    %c0_34 = arith.constant 0 : index
    %29 = vector.load %arg5[%c0_33, %c1, %c0_34] : memref<3x3x128xf32, #tpu.memory_space<vmem>>, vector<1x1x128xf32>
    %30 = vector.shape_cast %29 : vector<1x1x128xf32> to vector<128xf32>
    %c4_35 = arith.constant 4 : index
    %c5_36 = arith.constant 5 : index
    %c0_37 = arith.constant 0 : index
    %31 = vector.load %arg13[%c4_35, %c5_36, %c0_37] : memref<18x18x128xf32, #tpu.memory_space<vmem>>, vector<8x8x128xf32>
    %32 = vector.shape_cast %30 : vector<128xf32> to vector<1x1x128xf32>
    %33 = vector.broadcast %32 : vector<1x1x128xf32> to vector<8x8x128xf32>
    %34 = arith.mulf %33, %31 : vector<8x8x128xf32>
    %35 = arith.addf %28, %34 : vector<8x8x128xf32>
    %c0_38 = arith.constant 0 : index
    %c2 = arith.constant 2 : index
    %c0_39 = arith.constant 0 : index
    %36 = vector.load %arg5[%c0_38, %c2, %c0_39] : memref<3x3x128xf32, #tpu.memory_space<vmem>>, vector<1x1x128xf32>
    %37 = vector.shape_cast %36 : vector<1x1x128xf32> to vector<128xf32>
    %c4_40 = arith.constant 4 : index
    %c6 = arith.constant 6 : index
    %c0_41 = arith.constant 0 : index
    %38 = vector.load %arg13[%c4_40, %c6, %c0_41] : memref<18x18x128xf32, #tpu.memory_space<vmem>>, vector<8x8x128xf32>
    %39 = vector.shape_cast %37 : vector<128xf32> to vector<1x1x128xf32>
    %40 = vector.broadcast %39 : vector<1x1x128xf32> to vector<8x8x128xf32>
    %41 = arith.mulf %40, %38 : vector<8x8x128xf32>
    %42 = arith.addf %35, %41 : vector<8x8x128xf32>
    %c1_42 = arith.constant 1 : index
    %c0_43 = arith.constant 0 : index
    %c0_44 = arith.constant 0 : index
    %43 = vector.load %arg5[%c1_42, %c0_43, %c0_44] : memref<3x3x128xf32, #tpu.memory_space<vmem>>, vector<1x1x128xf32>
    %44 = vector.shape_cast %43 : vector<1x1x128xf32> to vector<128xf32>
    %c5_45 = arith.constant 5 : index
    %c4_46 = arith.constant 4 : index
    %c0_47 = arith.constant 0 : index
    %45 = vector.load %arg13[%c5_45, %c4_46, %c0_47] : memref<18x18x128xf32, #tpu.memory_space<vmem>>, vector<8x8x128xf32>
    %46 = vector.shape_cast %44 : vector<128xf32> to vector<1x1x128xf32>
    %47 = vector.broadcast %46 : vector<1x1x128xf32> to vector<8x8x128xf32>
    %48 = arith.mulf %47, %45 : vector<8x8x128xf32>
    %49 = arith.addf %42, %48 : vector<8x8x128xf32>
    %c1_48 = arith.constant 1 : index
    %c1_49 = arith.constant 1 : index
    %c0_50 = arith.constant 0 : index
    %50 = vector.load %arg5[%c1_48, %c1_49, %c0_50] : memref<3x3x128xf32, #tpu.memory_space<vmem>>, vector<1x1x128xf32>
    %51 = vector.shape_cast %50 : vector<1x1x128xf32> to vector<128xf32>
    %c5_51 = arith.constant 5 : index
    %c5_52 = arith.constant 5 : index
    %c0_53 = arith.constant 0 : index
    %52 = vector.load %arg13[%c5_51, %c5_52, %c0_53] : memref<18x18x128xf32, #tpu.memory_space<vmem>>, vector<8x8x128xf32>
    %53 = vector.shape_cast %51 : vector<128xf32> to vector<1x1x128xf32>
    %54 = vector.broadcast %53 : vector<1x1x128xf32> to vector<8x8x128xf32>
    %55 = arith.mulf %54, %52 : vector<8x8x128xf32>
    %56 = arith.addf %49, %55 : vector<8x8x128xf32>
    %c1_54 = arith.constant 1 : index
    %c2_55 = arith.constant 2 : index
    %c0_56 = arith.constant 0 : index
    %57 = vector.load %arg5[%c1_54, %c2_55, %c0_56] : memref<3x3x128xf32, #tpu.memory_space<vmem>>, vector<1x1x128xf32>
    %58 = vector.shape_cast %57 : vector<1x1x128xf32> to vector<128xf32>
    %c5_57 = arith.constant 5 : index
    %c6_58 = arith.constant 6 : index
    %c0_59 = arith.constant 0 : index
    %59 = vector.load %arg13[%c5_57, %c6_58, %c0_59] : memref<18x18x128xf32, #tpu.memory_space<vmem>>, vector<8x8x128xf32>
    %60 = vector.shape_cast %58 : vector<128xf32> to vector<1x1x128xf32>
    %61 = vector.broadcast %60 : vector<1x1x128xf32> to vector<8x8x128xf32>
    %62 = arith.mulf %61, %59 : vector<8x8x128xf32>
    %63 = arith.addf %56, %62 : vector<8x8x128xf32>
    %c2_60 = arith.constant 2 : index
    %c0_61 = arith.constant 0 : index
    %c0_62 = arith.constant 0 : index
    %64 = vector.load %arg5[%c2_60, %c0_61, %c0_62] : memref<3x3x128xf32, #tpu.memory_space<vmem>>, vector<1x1x128xf32>
    %65 = vector.shape_cast %64 : vector<1x1x128xf32> to vector<128xf32>
    %c6_63 = arith.constant 6 : index
    %c4_64 = arith.constant 4 : index
    %c0_65 = arith.constant 0 : index
    %66 = vector.load %arg13[%c6_63, %c4_64, %c0_65] : memref<18x18x128xf32, #tpu.memory_space<vmem>>, vector<8x8x128xf32>
    %67 = vector.shape_cast %65 : vector<128xf32> to vector<1x1x128xf32>
    %68 = vector.broadcast %67 : vector<1x1x128xf32> to vector<8x8x128xf32>
    %69 = arith.mulf %68, %66 : vector<8x8x128xf32>
    %70 = arith.addf %63, %69 : vector<8x8x128xf32>
    %c2_66 = arith.constant 2 : index
    %c1_67 = arith.constant 1 : index
    %c0_68 = arith.constant 0 : index
    %71 = vector.load %arg5[%c2_66, %c1_67, %c0_68] : memref<3x3x128xf32, #tpu.memory_space<vmem>>, vector<1x1x128xf32>
    %72 = vector.shape_cast %71 : vector<1x1x128xf32> to vector<128xf32>
    %c6_69 = arith.constant 6 : index
    %c5_70 = arith.constant 5 : index
    %c0_71 = arith.constant 0 : index
    %73 = vector.load %arg13[%c6_69, %c5_70, %c0_71] : memref<18x18x128xf32, #tpu.memory_space<vmem>>, vector<8x8x128xf32>
    %74 = vector.shape_cast %72 : vector<128xf32> to vector<1x1x128xf32>
    %75 = vector.broadcast %74 : vector<1x1x128xf32> to vector<8x8x128xf32>
    %76 = arith.mulf %75, %73 : vector<8x8x128xf32>
    %77 = arith.addf %70, %76 : vector<8x8x128xf32>
    %c2_72 = arith.constant 2 : index
    %c2_73 = arith.constant 2 : index
    %c0_74 = arith.constant 0 : index
    %78 = vector.load %arg5[%c2_72, %c2_73, %c0_74] : memref<3x3x128xf32, #tpu.memory_space<vmem>>, vector<1x1x128xf32>
    %79 = vector.shape_cast %78 : vector<1x1x128xf32> to vector<128xf32>
    %c6_75 = arith.constant 6 : index
    %c6_76 = arith.constant 6 : index
    %c0_77 = arith.constant 0 : index
    %80 = vector.load %arg13[%c6_75, %c6_76, %c0_77] : memref<18x18x128xf32, #tpu.memory_space<vmem>>, vector<8x8x128xf32>
    %81 = vector.shape_cast %79 : vector<128xf32> to vector<1x1x128xf32>
    %82 = vector.broadcast %81 : vector<1x1x128xf32> to vector<8x8x128xf32>
    %83 = arith.mulf %82, %80 : vector<8x8x128xf32>
    %84 = arith.addf %77, %83 : vector<8x8x128xf32>
    %c0_78 = arith.constant 0 : index
    %c0_79 = arith.constant 0 : index
    %c0_80 = arith.constant 0 : index
    %85 = vector.load %arg6[%c0_78, %c0_79, %c0_80] : memref<3x3x128xf32, #tpu.memory_space<vmem>>, vector<1x1x128xf32>
    %86 = vector.shape_cast %85 : vector<1x1x128xf32> to vector<128xf32>
    %c2_81 = arith.constant 2 : index
    %c2_82 = arith.constant 2 : index
    %c0_83 = arith.constant 0 : index
    %87 = vector.load %arg13[%c2_81, %c2_82, %c0_83] : memref<18x18x128xf32, #tpu.memory_space<vmem>>, vector<8x8x128xf32>
    %88 = vector.shape_cast %86 : vector<128xf32> to vector<1x1x128xf32>
    %89 = vector.broadcast %88 : vector<1x1x128xf32> to vector<8x8x128xf32>
    %90 = arith.mulf %89, %87 : vector<8x8x128xf32>
    %91 = arith.addf %84, %90 : vector<8x8x128xf32>
    %c0_84 = arith.constant 0 : index
    %c1_85 = arith.constant 1 : index
    %c0_86 = arith.constant 0 : index
    %92 = vector.load %arg6[%c0_84, %c1_85, %c0_86] : memref<3x3x128xf32, #tpu.memory_space<vmem>>, vector<1x1x128xf32>
    %93 = vector.shape_cast %92 : vector<1x1x128xf32> to vector<128xf32>
    %c2_87 = arith.constant 2 : index
    %c5_88 = arith.constant 5 : index
    %c0_89 = arith.constant 0 : index
    %94 = vector.load %arg13[%c2_87, %c5_88, %c0_89] : memref<18x18x128xf32, #tpu.memory_space<vmem>>, vector<8x8x128xf32>
    %95 = vector.shape_cast %93 : vector<128xf32> to vector<1x1x128xf32>
    %96 = vector.broadcast %95 : vector<1x1x128xf32> to vector<8x8x128xf32>
    %97 = arith.mulf %96, %94 : vector<8x8x128xf32>
    %98 = arith.addf %91, %97 : vector<8x8x128xf32>
    %c0_90 = arith.constant 0 : index
    %c2_91 = arith.constant 2 : index
    %c0_92 = arith.constant 0 : index
    %99 = vector.load %arg6[%c0_90, %c2_91, %c0_92] : memref<3x3x128xf32, #tpu.memory_space<vmem>>, vector<1x1x128xf32>
    %100 = vector.shape_cast %99 : vector<1x1x128xf32> to vector<128xf32>
    %c2_93 = arith.constant 2 : index
    %c8 = arith.constant 8 : index
    %c0_94 = arith.constant 0 : index
    %101 = vector.load %arg13[%c2_93, %c8, %c0_94] : memref<18x18x128xf32, #tpu.memory_space<vmem>>, vector<8x8x128xf32>
    %102 = vector.shape_cast %100 : vector<128xf32> to vector<1x1x128xf32>
    %103 = vector.broadcast %102 : vector<1x1x128xf32> to vector<8x8x128xf32>
    %104 = arith.mulf %103, %101 : vector<8x8x128xf32>
    %105 = arith.addf %98, %104 : vector<8x8x128xf32>
    %c1_95 = arith.constant 1 : index
    %c0_96 = arith.constant 0 : index
    %c0_97 = arith.constant 0 : index
    %106 = vector.load %arg6[%c1_95, %c0_96, %c0_97] : memref<3x3x128xf32, #tpu.memory_space<vmem>>, vector<1x1x128xf32>
    %107 = vector.shape_cast %106 : vector<1x1x128xf32> to vector<128xf32>
    %c5_98 = arith.constant 5 : index
    %c2_99 = arith.constant 2 : index
    %c0_100 = arith.constant 0 : index
    %108 = vector.load %arg13[%c5_98, %c2_99, %c0_100] : memref<18x18x128xf32, #tpu.memory_space<vmem>>, vector<8x8x128xf32>
    %109 = vector.shape_cast %107 : vector<128xf32> to vector<1x1x128xf32>
    %110 = vector.broadcast %109 : vector<1x1x128xf32> to vector<8x8x128xf32>
    %111 = arith.mulf %110, %108 : vector<8x8x128xf32>
    %112 = arith.addf %105, %111 : vector<8x8x128xf32>
    %c1_101 = arith.constant 1 : index
    %c1_102 = arith.constant 1 : index
    %c0_103 = arith.constant 0 : index
    %113 = vector.load %arg6[%c1_101, %c1_102, %c0_103] : memref<3x3x128xf32, #tpu.memory_space<vmem>>, vector<1x1x128xf32>
    %114 = vector.shape_cast %113 : vector<1x1x128xf32> to vector<128xf32>
    %c5_104 = arith.constant 5 : index
    %c5_105 = arith.constant 5 : index
    %c0_106 = arith.constant 0 : index
    %115 = vector.load %arg13[%c5_104, %c5_105, %c0_106] : memref<18x18x128xf32, #tpu.memory_space<vmem>>, vector<8x8x128xf32>
    %116 = vector.shape_cast %114 : vector<128xf32> to vector<1x1x128xf32>
    %117 = vector.broadcast %116 : vector<1x1x128xf32> to vector<8x8x128xf32>
    %118 = arith.mulf %117, %115 : vector<8x8x128xf32>
    %119 = arith.addf %112, %118 : vector<8x8x128xf32>
    %c1_107 = arith.constant 1 : index
    %c2_108 = arith.constant 2 : index
    %c0_109 = arith.constant 0 : index
    %120 = vector.load %arg6[%c1_107, %c2_108, %c0_109] : memref<3x3x128xf32, #tpu.memory_space<vmem>>, vector<1x1x128xf32>
    %121 = vector.shape_cast %120 : vector<1x1x128xf32> to vector<128xf32>
    %c5_110 = arith.constant 5 : index
    %c8_111 = arith.constant 8 : index
    %c0_112 = arith.constant 0 : index
    %122 = vector.load %arg13[%c5_110, %c8_111, %c0_112] : memref<18x18x128xf32, #tpu.memory_space<vmem>>, vector<8x8x128xf32>
    %123 = vector.shape_cast %121 : vector<128xf32> to vector<1x1x128xf32>
    %124 = vector.broadcast %123 : vector<1x1x128xf32> to vector<8x8x128xf32>
    %125 = arith.mulf %124, %122 : vector<8x8x128xf32>
    %126 = arith.addf %119, %125 : vector<8x8x128xf32>
    %c2_113 = arith.constant 2 : index
    %c0_114 = arith.constant 0 : index
    %c0_115 = arith.constant 0 : index
    %127 = vector.load %arg6[%c2_113, %c0_114, %c0_115] : memref<3x3x128xf32, #tpu.memory_space<vmem>>, vector<1x1x128xf32>
    %128 = vector.shape_cast %127 : vector<1x1x128xf32> to vector<128xf32>
    %c8_116 = arith.constant 8 : index
    %c2_117 = arith.constant 2 : index
    %c0_118 = arith.constant 0 : index
    %129 = vector.load %arg13[%c8_116, %c2_117, %c0_118] : memref<18x18x128xf32, #tpu.memory_space<vmem>>, vector<8x8x128xf32>
    %130 = vector.shape_cast %128 : vector<128xf32> to vector<1x1x128xf32>
    %131 = vector.broadcast %130 : vector<1x1x128xf32> to vector<8x8x128xf32>
    %132 = arith.mulf %131, %129 : vector<8x8x128xf32>
    %133 = arith.addf %126, %132 : vector<8x8x128xf32>
    %c2_119 = arith.constant 2 : index
    %c1_120 = arith.constant 1 : index
    %c0_121 = arith.constant 0 : index
    %134 = vector.load %arg6[%c2_119, %c1_120, %c0_121] : memref<3x3x128xf32, #tpu.memory_space<vmem>>, vector<1x1x128xf32>
    %135 = vector.shape_cast %134 : vector<1x1x128xf32> to vector<128xf32>
    %c8_122 = arith.constant 8 : index
    %c5_123 = arith.constant 5 : index
    %c0_124 = arith.constant 0 : index
    %136 = vector.load %arg13[%c8_122, %c5_123, %c0_124] : memref<18x18x128xf32, #tpu.memory_space<vmem>>, vector<8x8x128xf32>
    %137 = vector.shape_cast %135 : vector<128xf32> to vector<1x1x128xf32>
    %138 = vector.broadcast %137 : vector<1x1x128xf32> to vector<8x8x128xf32>
    %139 = arith.mulf %138, %136 : vector<8x8x128xf32>
    %140 = arith.addf %133, %139 : vector<8x8x128xf32>
    %c2_125 = arith.constant 2 : index
    %c2_126 = arith.constant 2 : index
    %c0_127 = arith.constant 0 : index
    %141 = vector.load %arg6[%c2_125, %c2_126, %c0_127] : memref<3x3x128xf32, #tpu.memory_space<vmem>>, vector<1x1x128xf32>
    %142 = vector.shape_cast %141 : vector<1x1x128xf32> to vector<128xf32>
    %c8_128 = arith.constant 8 : index
    %c8_129 = arith.constant 8 : index
    %c0_130 = arith.constant 0 : index
    %143 = vector.load %arg13[%c8_128, %c8_129, %c0_130] : memref<18x18x128xf32, #tpu.memory_space<vmem>>, vector<8x8x128xf32>
    %144 = vector.shape_cast %142 : vector<128xf32> to vector<1x1x128xf32>
    %145 = vector.broadcast %144 : vector<1x1x128xf32> to vector<8x8x128xf32>
    %146 = arith.mulf %145, %143 : vector<8x8x128xf32>
    %147 = arith.addf %140, %146 : vector<8x8x128xf32>
    %c0_131 = arith.constant 0 : index
    %c0_132 = arith.constant 0 : index
    %c0_133 = arith.constant 0 : index
    %148 = vector.load %arg7[%c0_131, %c0_132, %c0_133] : memref<3x3x128xf32, #tpu.memory_space<vmem>>, vector<1x1x128xf32>
    %149 = vector.shape_cast %148 : vector<1x1x128xf32> to vector<128xf32>
    %c0_134 = arith.constant 0 : index
    %c0_135 = arith.constant 0 : index
    %c0_136 = arith.constant 0 : index
    %150 = vector.load %arg13[%c0_134, %c0_135, %c0_136] : memref<18x18x128xf32, #tpu.memory_space<vmem>>, vector<8x8x128xf32>
    %151 = vector.shape_cast %149 : vector<128xf32> to vector<1x1x128xf32>
    %152 = vector.broadcast %151 : vector<1x1x128xf32> to vector<8x8x128xf32>
    %153 = arith.mulf %152, %150 : vector<8x8x128xf32>
    %154 = arith.addf %147, %153 : vector<8x8x128xf32>
    %c0_137 = arith.constant 0 : index
    %c1_138 = arith.constant 1 : index
    %c0_139 = arith.constant 0 : index
    %155 = vector.load %arg7[%c0_137, %c1_138, %c0_139] : memref<3x3x128xf32, #tpu.memory_space<vmem>>, vector<1x1x128xf32>
    %156 = vector.shape_cast %155 : vector<1x1x128xf32> to vector<128xf32>
    %c0_140 = arith.constant 0 : index
    %c5_141 = arith.constant 5 : index
    %c0_142 = arith.constant 0 : index
    %157 = vector.load %arg13[%c0_140, %c5_141, %c0_142] : memref<18x18x128xf32, #tpu.memory_space<vmem>>, vector<8x8x128xf32>
    %158 = vector.shape_cast %156 : vector<128xf32> to vector<1x1x128xf32>
    %159 = vector.broadcast %158 : vector<1x1x128xf32> to vector<8x8x128xf32>
    %160 = arith.mulf %159, %157 : vector<8x8x128xf32>
    %161 = arith.addf %154, %160 : vector<8x8x128xf32>
    %c0_143 = arith.constant 0 : index
    %c2_144 = arith.constant 2 : index
    %c0_145 = arith.constant 0 : index
    %162 = vector.load %arg7[%c0_143, %c2_144, %c0_145] : memref<3x3x128xf32, #tpu.memory_space<vmem>>, vector<1x1x128xf32>
    %163 = vector.shape_cast %162 : vector<1x1x128xf32> to vector<128xf32>
    %c0_146 = arith.constant 0 : index
    %c10 = arith.constant 10 : index
    %c0_147 = arith.constant 0 : index
    %164 = vector.load %arg13[%c0_146, %c10, %c0_147] : memref<18x18x128xf32, #tpu.memory_space<vmem>>, vector<8x8x128xf32>
    %165 = vector.shape_cast %163 : vector<128xf32> to vector<1x1x128xf32>
    %166 = vector.broadcast %165 : vector<1x1x128xf32> to vector<8x8x128xf32>
    %167 = arith.mulf %166, %164 : vector<8x8x128xf32>
    %168 = arith.addf %161, %167 : vector<8x8x128xf32>
    %c1_148 = arith.constant 1 : index
    %c0_149 = arith.constant 0 : index
    %c0_150 = arith.constant 0 : index
    %169 = vector.load %arg7[%c1_148, %c0_149, %c0_150] : memref<3x3x128xf32, #tpu.memory_space<vmem>>, vector<1x1x128xf32>
    %170 = vector.shape_cast %169 : vector<1x1x128xf32> to vector<128xf32>
    %c5_151 = arith.constant 5 : index
    %c0_152 = arith.constant 0 : index
    %c0_153 = arith.constant 0 : index
    %171 = vector.load %arg13[%c5_151, %c0_152, %c0_153] : memref<18x18x128xf32, #tpu.memory_space<vmem>>, vector<8x8x128xf32>
    %172 = vector.shape_cast %170 : vector<128xf32> to vector<1x1x128xf32>
    %173 = vector.broadcast %172 : vector<1x1x128xf32> to vector<8x8x128xf32>
    %174 = arith.mulf %173, %171 : vector<8x8x128xf32>
    %175 = arith.addf %168, %174 : vector<8x8x128xf32>
    %c1_154 = arith.constant 1 : index
    %c1_155 = arith.constant 1 : index
    %c0_156 = arith.constant 0 : index
    %176 = vector.load %arg7[%c1_154, %c1_155, %c0_156] : memref<3x3x128xf32, #tpu.memory_space<vmem>>, vector<1x1x128xf32>
    %177 = vector.shape_cast %176 : vector<1x1x128xf32> to vector<128xf32>
    %c5_157 = arith.constant 5 : index
    %c5_158 = arith.constant 5 : index
    %c0_159 = arith.constant 0 : index
    %178 = vector.load %arg13[%c5_157, %c5_158, %c0_159] : memref<18x18x128xf32, #tpu.memory_space<vmem>>, vector<8x8x128xf32>
    %179 = vector.shape_cast %177 : vector<128xf32> to vector<1x1x128xf32>
    %180 = vector.broadcast %179 : vector<1x1x128xf32> to vector<8x8x128xf32>
    %181 = arith.mulf %180, %178 : vector<8x8x128xf32>
    %182 = arith.addf %175, %181 : vector<8x8x128xf32>
    %c1_160 = arith.constant 1 : index
    %c2_161 = arith.constant 2 : index
    %c0_162 = arith.constant 0 : index
    %183 = vector.load %arg7[%c1_160, %c2_161, %c0_162] : memref<3x3x128xf32, #tpu.memory_space<vmem>>, vector<1x1x128xf32>
    %184 = vector.shape_cast %183 : vector<1x1x128xf32> to vector<128xf32>
    %c5_163 = arith.constant 5 : index
    %c10_164 = arith.constant 10 : index
    %c0_165 = arith.constant 0 : index
    %185 = vector.load %arg13[%c5_163, %c10_164, %c0_165] : memref<18x18x128xf32, #tpu.memory_space<vmem>>, vector<8x8x128xf32>
    %186 = vector.shape_cast %184 : vector<128xf32> to vector<1x1x128xf32>
    %187 = vector.broadcast %186 : vector<1x1x128xf32> to vector<8x8x128xf32>
    %188 = arith.mulf %187, %185 : vector<8x8x128xf32>
    %189 = arith.addf %182, %188 : vector<8x8x128xf32>
    %c2_166 = arith.constant 2 : index
    %c0_167 = arith.constant 0 : index
    %c0_168 = arith.constant 0 : index
    %190 = vector.load %arg7[%c2_166, %c0_167, %c0_168] : memref<3x3x128xf32, #tpu.memory_space<vmem>>, vector<1x1x128xf32>
    %191 = vector.shape_cast %190 : vector<1x1x128xf32> to vector<128xf32>
    %c10_169 = arith.constant 10 : index
    %c0_170 = arith.constant 0 : index
    %c0_171 = arith.constant 0 : index
    %192 = vector.load %arg13[%c10_169, %c0_170, %c0_171] : memref<18x18x128xf32, #tpu.memory_space<vmem>>, vector<8x8x128xf32>
    %193 = vector.shape_cast %191 : vector<128xf32> to vector<1x1x128xf32>
    %194 = vector.broadcast %193 : vector<1x1x128xf32> to vector<8x8x128xf32>
    %195 = arith.mulf %194, %192 : vector<8x8x128xf32>
    %196 = arith.addf %189, %195 : vector<8x8x128xf32>
    %c2_172 = arith.constant 2 : index
    %c1_173 = arith.constant 1 : index
    %c0_174 = arith.constant 0 : index
    %197 = vector.load %arg7[%c2_172, %c1_173, %c0_174] : memref<3x3x128xf32, #tpu.memory_space<vmem>>, vector<1x1x128xf32>
    %198 = vector.shape_cast %197 : vector<1x1x128xf32> to vector<128xf32>
    %c10_175 = arith.constant 10 : index
    %c5_176 = arith.constant 5 : index
    %c0_177 = arith.constant 0 : index
    %199 = vector.load %arg13[%c10_175, %c5_176, %c0_177] : memref<18x18x128xf32, #tpu.memory_space<vmem>>, vector<8x8x128xf32>
    %200 = vector.shape_cast %198 : vector<128xf32> to vector<1x1x128xf32>
    %201 = vector.broadcast %200 : vector<1x1x128xf32> to vector<8x8x128xf32>
    %202 = arith.mulf %201, %199 : vector<8x8x128xf32>
    %203 = arith.addf %196, %202 : vector<8x8x128xf32>
    %c2_178 = arith.constant 2 : index
    %c2_179 = arith.constant 2 : index
    %c0_180 = arith.constant 0 : index
    %204 = vector.load %arg7[%c2_178, %c2_179, %c0_180] : memref<3x3x128xf32, #tpu.memory_space<vmem>>, vector<1x1x128xf32>
    %205 = vector.shape_cast %204 : vector<1x1x128xf32> to vector<128xf32>
    %c10_181 = arith.constant 10 : index
    %c10_182 = arith.constant 10 : index
    %c0_183 = arith.constant 0 : index
    %206 = vector.load %arg13[%c10_181, %c10_182, %c0_183] : memref<18x18x128xf32, #tpu.memory_space<vmem>>, vector<8x8x128xf32>
    %207 = vector.shape_cast %205 : vector<128xf32> to vector<1x1x128xf32>
    %208 = vector.broadcast %207 : vector<1x1x128xf32> to vector<8x8x128xf32>
    %209 = arith.mulf %208, %206 : vector<8x8x128xf32>
    %210 = arith.addf %203, %209 : vector<8x8x128xf32>
    %211 = vector.shape_cast %210 : vector<8x8x128xf32> to vector<64x128xf32>
    %c0_184 = arith.constant 0 : index
    %c0_185 = arith.constant 0 : index
    %c0_186 = arith.constant 0 : index
    %212 = vector.load %arg2[%c0_184, %c0_185, %c0_186] : memref<1x64x1xf32, #tpu.memory_space<vmem>>, vector<1x64x1xf32>
    %213 = vector.shape_cast %212 : vector<1x64x1xf32> to vector<64x1xf32>
    %214 = vector.broadcast %213 : vector<64x1xf32> to vector<64x128xf32>
    %215 = arith.mulf %211, %214 : vector<64x128xf32>
    %c0_187 = arith.constant 0 : index
    %c0_188 = arith.constant 0 : index
    %c0_189 = arith.constant 0 : index
    %216 = vector.load %arg3[%c0_187, %c0_188, %c0_189] : memref<1x64x128xf32, #tpu.memory_space<vmem>>, vector<1x64x128xf32>
    %217 = vector.shape_cast %216 : vector<1x64x128xf32> to vector<64x128xf32>
    %c0_190 = arith.constant 0 : index
    %c0_191 = arith.constant 0 : index
    %218 = vector.load %arg8[%c0_190, %c0_191] : memref<1x128xf32, #tpu.memory_space<vmem>>, vector<1x128xf32>
    %219 = vector.shape_cast %218 : vector<1x128xf32> to vector<128xf32>
    %220 = vector.shape_cast %219 : vector<128xf32> to vector<1x128xf32>
    %221 = vector.broadcast %220 : vector<1x128xf32> to vector<64x128xf32>
    %222 = arith.mulf %217, %221 : vector<64x128xf32>
    %223 = arith.addf %215, %222 : vector<64x128xf32>
    %cst_192 = arith.constant dense<0.000000e+00> : vector<64xf32>
    %224 = vector.multi_reduction <add>, %223, %cst_192 [1] : vector<64x128xf32> to vector<64xf32>
    %225 = vector.shape_cast %224 : vector<64xf32> to vector<64x1xf32>
    %cst_193 = arith.constant 1.280000e+02 : f32
    %226 = vector.broadcast %cst_193 : f32 to vector<64x1xf32>
    %227 = arith.divf %225, %226 : vector<64x1xf32>
    %228 = vector.broadcast %227 : vector<64x1xf32> to vector<64x128xf32>
    %229 = arith.subf %223, %228 : vector<64x128xf32>
    %230 = arith.mulf %229, %229 : vector<64x128xf32>
    %cst_194 = arith.constant dense<0.000000e+00> : vector<64xf32>
    %231 = vector.multi_reduction <add>, %230, %cst_194 [1] : vector<64x128xf32> to vector<64xf32>
    %232 = vector.shape_cast %231 : vector<64xf32> to vector<64x1xf32>
    %cst_195 = arith.constant 1.280000e+02 : f32
    %233 = vector.broadcast %cst_195 : f32 to vector<64x1xf32>
    %234 = arith.divf %232, %233 : vector<64x1xf32>
    %235 = vector.broadcast %227 : vector<64x1xf32> to vector<64x128xf32>
    %236 = arith.subf %223, %235 : vector<64x128xf32>
    %cst_196 = arith.constant 9.99999974E-6 : f32
    %237 = vector.broadcast %cst_196 : f32 to vector<64x1xf32>
    %238 = arith.addf %234, %237 : vector<64x1xf32>
    %239 = math.rsqrt %238 : vector<64x1xf32>
    %240 = vector.broadcast %239 : vector<64x1xf32> to vector<64x128xf32>
    %241 = arith.mulf %236, %240 : vector<64x128xf32>
    %c0_197 = arith.constant 0 : index
    %c0_198 = arith.constant 0 : index
    %242 = vector.load %arg9[%c0_197, %c0_198] : memref<1x128xf32, #tpu.memory_space<vmem>>, vector<1x128xf32>
    %243 = vector.shape_cast %242 : vector<1x128xf32> to vector<128xf32>
    %244 = vector.shape_cast %243 : vector<128xf32> to vector<1x128xf32>
    %245 = vector.broadcast %244 : vector<1x128xf32> to vector<64x128xf32>
    %246 = arith.mulf %241, %245 : vector<64x128xf32>
    %c0_199 = arith.constant 0 : index
    %c0_200 = arith.constant 0 : index
    %247 = vector.load %arg10[%c0_199, %c0_200] : memref<1x128xf32, #tpu.memory_space<vmem>>, vector<1x128xf32>
    %248 = vector.shape_cast %247 : vector<1x128xf32> to vector<128xf32>
    %249 = vector.shape_cast %248 : vector<128xf32> to vector<1x128xf32>
    %250 = vector.broadcast %249 : vector<1x128xf32> to vector<64x128xf32>
    %251 = arith.addf %246, %250 : vector<64x128xf32>
    %c0_201 = arith.constant 0 : index
    %c0_202 = arith.constant 0 : index
    %c0_203 = arith.constant 0 : index
    %252 = vector.load %arg4[%c0_201, %c0_202, %c0_203] : memref<1x64x128xf32, #tpu.memory_space<vmem>>, vector<1x64x128xf32>
    %253 = vector.shape_cast %252 : vector<1x64x128xf32> to vector<64x128xf32>
    %cst_204 = arith.constant 0.000000e+00 : f32
    %254 = vector.broadcast %cst_204 : f32 to vector<64x128xf32>
    %255 = arith.subf %254, %253 : vector<64x128xf32>
    %256 = math.exp %255 : vector<64x128xf32>
    %cst_205 = arith.constant 1.000000e+00 : f32
    %257 = vector.broadcast %cst_205 : f32 to vector<64x128xf32>
    %258 = arith.addf %257, %256 : vector<64x128xf32>
    %259 = tpu.reciprocal %258 {approx = true} : vector<64x128xf32> -> vector<64x128xf32>
    %260 = arith.mulf %253, %259 : vector<64x128xf32>
    %261 = arith.mulf %251, %260 : vector<64x128xf32>
    %262 = arith.truncf %261 : vector<64x128xf32> to vector<64x128xbf16>
    %c0_206 = arith.constant 0 : index
    %c0_207 = arith.constant 0 : index
    %263 = vector.load %arg11[%c0_206, %c0_207] : memref<128x128xbf16, #tpu.memory_space<vmem>>, vector<128x128xbf16>
    %cst_208 = arith.constant dense<0.000000e+00> : vector<64x128xf32>
    %264 = tpu.matmul %262, %263, %cst_208 {dimension_numbers = #tpu.dot_dimension_numbers<[1], [0], [0], [1], [0, 0, 1, 1], [], []>} : vector<64x128xbf16>, vector<128x128xbf16>, vector<64x128xf32> -> vector<64x128xf32>
    %c0_209 = arith.constant 0 : index
    %c0_210 = arith.constant 0 : index
    %c0_211 = arith.constant 0 : index
    %265 = vector.load %arg12[%c0_209, %c0_210, %c0_211] : memref<1x64x128xf32, #tpu.memory_space<vmem>>, vector<1x64x128xf32>
    %266 = vector.shape_cast %265 : vector<1x64x128xf32> to vector<64x128xf32>
    %267 = vector.shape_cast %264 : vector<64x128xf32> to vector<1x64x128xf32>
    tpu.vector_store %arg12[%c0_209, %c0_210, %c0_211], %267 {strides = array<i32>} : memref<1x64x128xf32, #tpu.memory_space<vmem>>, vector<1x64x128xf32>,
    return
  }
  func.func @transform_0(%arg0: i32) -> (i32, i32, i32, i32) {
    %c0_i32 = arith.constant 0 : i32
    %c0_i32_0 = arith.constant 0 : i32
    %c0_i32_1 = arith.constant 0 : i32
    %c0_i32_2 = arith.constant 0 : i32
    return %arg0, %c0_i32, %c0_i32_0, %c0_i32_1 : i32, i32, i32, i32
  }
  func.func @transform_1(%arg0: i32) -> (i32, i32, i32) {
    %c0_i32 = arith.constant 0 : i32
    %c0_i32_0 = arith.constant 0 : i32
    %c0_i32_1 = arith.constant 0 : i32
    return %arg0, %c0_i32, %c0_i32_0 : i32, i32, i32
  }
  func.func @transform_2(%arg0: i32) -> (i32, i32, i32) {
    %c0_i32 = arith.constant 0 : i32
    %c0_i32_0 = arith.constant 0 : i32
    %c0_i32_1 = arith.constant 0 : i32
    return %arg0, %c0_i32, %c0_i32_0 : i32, i32, i32
  }
  func.func @transform_3(%arg0: i32) -> (i32, i32, i32) {
    %c0_i32 = arith.constant 0 : i32
    %c0_i32_0 = arith.constant 0 : i32
    %c0_i32_1 = arith.constant 0 : i32
    return %arg0, %c0_i32, %c0_i32_0 : i32, i32, i32
  }
  func.func @transform_4(%arg0: i32) -> (i32, i32, i32) {
    %c0_i32 = arith.constant 0 : i32
    %c0_i32_0 = arith.constant 0 : i32
    %c0_i32_1 = arith.constant 0 : i32
    %c0_i32_2 = arith.constant 0 : i32
    return %c0_i32, %c0_i32_0, %c0_i32_1 : i32, i32, i32
  }
  func.func @transform_5(%arg0: i32) -> (i32, i32, i32) {
    %c0_i32 = arith.constant 0 : i32
    %c0_i32_0 = arith.constant 0 : i32
    %c0_i32_1 = arith.constant 0 : i32
    %c0_i32_2 = arith.constant 0 : i32
    return %c0_i32, %c0_i32_0, %c0_i32_1 : i32, i32, i32
  }
  func.func @transform_6(%arg0: i32) -> (i32, i32, i32) {
    %c0_i32 = arith.constant 0 : i32
    %c0_i32_0 = arith.constant 0 : i32
    %c0_i32_1 = arith.constant 0 : i32
    %c0_i32_2 = arith.constant 0 : i32
    return %c0_i32, %c0_i32_0, %c0_i32_1 : i32, i32, i32
  }
  func.func @transform_7(%arg0: i32) -> (i32, i32) {
    %c0_i32 = arith.constant 0 : i32
    %c0_i32_0 = arith.constant 0 : i32
    %c0_i32_1 = arith.constant 0 : i32
    return %c0_i32, %c0_i32_0 : i32, i32
  }
  func.func @transform_8(%arg0: i32) -> (i32, i32) {
    %c0_i32 = arith.constant 0 : i32
    %c0_i32_0 = arith.constant 0 : i32
    %c0_i32_1 = arith.constant 0 : i32
    return %c0_i32, %c0_i32_0 : i32, i32
  }
  func.func @transform_9(%arg0: i32) -> (i32, i32) {
    %c0_i32 = arith.constant 0 : i32
    %c0_i32_0 = arith.constant 0 : i32
    %c0_i32_1 = arith.constant 0 : i32
    return %c0_i32, %c0_i32_0 : i32, i32
  }
  func.func @transform_10(%arg0: i32) -> (i32, i32) {
    %c0_i32 = arith.constant 0 : i32
    %c0_i32_0 = arith.constant 0 : i32
    %c0_i32_1 = arith.constant 0 : i32
    return %c0_i32, %c0_i32_0 : i32, i32
  }
  func.func @transform_11(%arg0: i32) -> (i32, i32, i32) {
    %c0_i32 = arith.constant 0 : i32
    %c0_i32_0 = arith.constant 0 : i32
    %c0_i32_1 = arith.constant 0 : i32
    return %arg0, %c0_i32, %c0_i32_0 : i32, i32, i32
  }
}

</mosaic_0001>

<bundles_post_ra>
// kernel: forward.4
= control target key start
LH: loop header
LB: loop body
LE: loop exit
PB: predicated region body
PF: predicated region fallthrough
CT: control target
= control target key end

     0   :  { %v510_v1 = vmov 0   ;;  %vm184_vm0 = vcmask 523264   ;;  %s678_s1 = inlined_call_operand.vmem [shape: bf16[64,256], index: 1, kind: input, shape index: {}]   ;;  %s679_s0 = inlined_call_operand.vmem [shape: bf16[128,64], index: 0, kind: input, shape index: {}]   ;;  %s680_s2 = inlined_call_operand.vmem [shape: f32[128,256], index: 2, kind: output, shape index: {}]  }
   0x1   :  { %v490_v0 = vld [vmem:[%s678_s1 + $0x4] ss:$8 sps:$4 sm:$0xff]   ;;  %241 = vmatprep.mubr.bf16.mxu0 %v510_v1  ;;  %281 = vmatprep.mubr.bf16.mxu1 %v510_v1  ;;  %v492_v2 = vld [vmem:[%s678_s1] ss:$8 sps:$4 sm:$0xff]   ;;  %v493_v3 = vld [vmem:[%s678_s1 + $0x14] ss:$8 sps:$4 sm:$0xff]  }
   0x2   :  { %209 = vmatprep.subr.bf16.mxu0 %v490_v0  ;;  %481 = vmatprep.subr.bf16.mxu1 %v490_v0  ;;  %v495_v4 = vld [vmem:[%s678_s1 + $0x10] ss:$8 sps:$4 sm:$0xff]   ;;  %v496_v5 = vld [vmem:[%s678_s1 + $0x24] ss:$8 sps:$4 sm:$0xff]   ;;  %v498_v6 = vld [vmem:[%s678_s1 + $0x20] ss:$8 sps:$4 sm:$0xff]  }
   0x3   :  { %210 = vmatpush1.bf16.msra.mxu0 %v492_v2  ;;  %485 = vmatpush1.bf16.msra.mxu1 %v492_v2  ;;  %v499_v7 = vld [vmem:[%s678_s1 + $0x34] ss:$8 sps:$4 sm:$0xff]   ;;  %v501_v8 = vld [vmem:[%s678_s1 + $0x30] ss:$8 sps:$4 sm:$0xff]   ;;  %v502_v9 = vld [vmem:[%s679_s0] sm:$0xff]  }
   0x4   :  { %211 = vmatprep.subr.bf16.mxu0 %v493_v3  ;;  %482 = vmatprep.subr.bf16.mxu1 %v493_v3  ;;  %v503_v10 = vld [vmem:[%s679_s0 + $0x20] sm:$0xff]   ;;  %v504_v11 = vld [vmem:[%s679_s0 + $0x8] sm:$0xff]   ;;  %v506_v13 = vld [vmem:[%s679_s0 + $0x10] sm:$0xff]  }
   0x5   :  { %v505_v12 = vld [vmem:[%s679_s0 + $0x28] sm:$0xff]   ;;  %v507_v14 = vld [vmem:[%s679_s0 + $0x30] sm:$0xff]   ;;  %v508_v15 = vld [vmem:[%s679_s0 + $0x18] sm:$0xff]  }
   0x6   :  { %v509_v16 = vld [vmem:[%s679_s0 + $0x38] sm:$0xff]  }
   0x7   :  { %212 = vmatpush1.bf16.msra.mxu0 %v495_v4  ;;  %486 = vmatpush1.bf16.msra.mxu1 %v495_v4 }
   0x8   :  { %213 = vmatprep.subr.bf16.mxu0 %v496_v5  ;;  %483 = vmatprep.subr.bf16.mxu1 %v496_v5 }
   0xb   :  { %214 = vmatpush1.bf16.msra.mxu0 %v498_v6  ;;  %487 = vmatpush1.bf16.msra.mxu1 %v498_v6 }
   0xc   :  { %215 = vmatprep.subr.bf16.mxu0 %v499_v7  ;;  %484 = vmatprep.subr.bf16.mxu1 %v499_v7 }
   0xf   :  { %216 = vmatpush1.bf16.msra.mxu0 %v501_v8  ;;  %488 = vmatpush1.bf16.msra.mxu1 %v501_v8 }
  0x12   :  { %473 = vmatmul.mubr.msk.bf16.vlgmr.msra.gmra.mrb[0].mxu0 %vm184_vm0, %v502_v9  ;;  %477 = vmatmul.mubr.msk.bf16.vlgmr.msra.gmra.mrb[0].mxu1 %vm184_vm0, %v503_v10 }
  0x13   :  { %251 = vmatprep.mubr.bf16.mxu0 %v510_v1  ;;  %291 = vmatprep.mubr.bf16.mxu1 %v510_v1 }
  0x1a   :  { %474 = vmatmul.mubr.msk.bf16.gmra.mrb[4].mxu0 %vm184_vm0, %v504_v11  ;;  %478 = vmatmul.mubr.msk.bf16.gmra.mrb[4].mxu1 %vm184_vm0, %v505_v12 }
  0x1b   :  { %261 = vmatprep.mubr.bf16.mxu0 %v510_v1  ;;  %301 = vmatprep.mubr.bf16.mxu1 %v510_v1 }
  0x22   :  { %475 = vmatmul.mubr.msk.bf16.gmra.mrb[8].mxu0 %vm184_vm0, %v506_v13  ;;  %479 = vmatmul.mubr.msk.bf16.gmra.mrb[8].mxu1 %vm184_vm0, %v507_v14 }
  0x23   :  { %271 = vmatprep.mubr.bf16.mxu0 %v510_v1  ;;  %311 = vmatprep.mubr.bf16.mxu1 %v510_v1 }
  0x2a   :  { %476 = vmatmul.mubr.msk.bf16.gmra.mrb[12].mxu0 %vm184_vm0, %v508_v15  ;;  %480 = vmatmul.mubr.msk.bf16.gmra.mrb[12].mxu1 %vm184_vm0, %v509_v16 }
  0xe5   :  { %v243_v17 = vpop.f32.mrb[0].mxu0  ;;  %v283_v18 = vpop.f32.mrb[0].mxu1 }
  0xe6   :  { %421 = vst [vmem:[%s680_s2] sm:$0xff] %v243_v17  ;;  %437 = vst [vmem:[%s680_s2 + $0x80] sm:$0xff] %v283_v18  ;;  %v245_v19 = vpop.f32.mrb[1].mxu0  ;;  %v285_v20 = vpop.f32.mrb[1].mxu1 }
  0xe7   :  { %422 = vst [vmem:[%s680_s2 + $0x8] sm:$0xff] %v245_v19  ;;  %438 = vst [vmem:[%s680_s2 + $0x88] sm:$0xff] %v285_v20  ;;  %v247_v21 = vpop.f32.mrb[2].mxu0  ;;  %v287_v22 = vpop.f32.mrb[2].mxu1 }
  0xe8   :  { %423 = vst [vmem:[%s680_s2 + $0x10] sm:$0xff] %v247_v21  ;;  %439 = vst [vmem:[%s680_s2 + $0x90] sm:$0xff] %v287_v22  ;;  %v249_v23 = vpop.f32.mrb[3].mxu0  ;;  %v289_v24 = vpop.f32.mrb[3].mxu1 }
  0xe9   :  { %424 = vst [vmem:[%s680_s2 + $0x18] sm:$0xff] %v249_v23  ;;  %440 = vst [vmem:[%s680_s2 + $0x98] sm:$0xff] %v289_v24 }
  0xed   :  { %v253_v25 = vpop.f32.mrb[4].mxu0  ;;  %v293_v26 = vpop.f32.mrb[4].mxu1 }
  0xee   :  { %425 = vst [vmem:[%s680_s2 + $0x20] sm:$0xff] %v253_v25  ;;  %441 = vst [vmem:[%s680_s2 + $0xa0] sm:$0xff] %v293_v26  ;;  %v255_v27 = vpop.f32.mrb[5].mxu0  ;;  %v295_v28 = vpop.f32.mrb[5].mxu1 }
  0xef   :  { %426 = vst [vmem:[%s680_s2 + $0x28] sm:$0xff] %v255_v27  ;;  %442 = vst [vmem:[%s680_s2 + $0xa8] sm:$0xff] %v295_v28  ;;  %v257_v29 = vpop.f32.mrb[6].mxu0  ;;  %v297_v30 = vpop.f32.mrb[6].mxu1 }
  0xf0   :  { %427 = vst [vmem:[%s680_s2 + $0x30] sm:$0xff] %v257_v29  ;;  %443 = vst [vmem:[%s680_s2 + $0xb0] sm:$0xff] %v297_v30  ;;  %v259_v31 = vpop.f32.mrb[7].mxu0  ;;  %v299_v32 = vpop.f32.mrb[7].mxu1 }
  0xf1   :  { %428 = vst [vmem:[%s680_s2 + $0x38] sm:$0xff] %v259_v31  ;;  %444 = vst [vmem:[%s680_s2 + $0xb8] sm:$0xff] %v299_v32 }
  0xf5   :  { %v263_v33 = vpop.f32.mrb[8].mxu0  ;;  %v303_v34 = vpop.f32.mrb[8].mxu1 }
  0xf6   :  { %429 = vst [vmem:[%s680_s2 + $0x40] sm:$0xff] %v263_v33  ;;  %445 = vst [vmem:[%s680_s2 + $0xc0] sm:$0xff] %v303_v34  ;;  %v265_v35 = vpop.f32.mrb[9].mxu0  ;;  %v305_v36 = vpop.f32.mrb[9].mxu1 }
  0xf7   :  { %430 = vst [vmem:[%s680_s2 + $0x48] sm:$0xff] %v265_v35  ;;  %446 = vst [vmem:[%s680_s2 + $0xc8] sm:$0xff] %v305_v36  ;;  %v267_v37 = vpop.f32.mrb[10].mxu0  ;;  %v307_v38 = vpop.f32.mrb[10].mxu1 }
  0xf8   :  { %431 = vst [vmem:[%s680_s2 + $0x50] sm:$0xff] %v267_v37  ;;  %447 = vst [vmem:[%s680_s2 + $0xd0] sm:$0xff] %v307_v38  ;;  %v269_v39 = vpop.f32.mrb[11].mxu0  ;;  %v309_v40 = vpop.f32.mrb[11].mxu1 }
  0xf9   :  { %432 = vst [vmem:[%s680_s2 + $0x58] sm:$0xff] %v269_v39  ;;  %448 = vst [vmem:[%s680_s2 + $0xd8] sm:$0xff] %v309_v40 }
  0xfd   :  { %v273_v41 = vpop.f32.mrb[12].mxu0  ;;  %v313_v42 = vpop.f32.mrb[12].mxu1 }
  0xfe   :  { %433 = vst [vmem:[%s680_s2 + $0x60] sm:$0xff] %v273_v41  ;;  %449 = vst [vmem:[%s680_s2 + $0xe0] sm:$0xff] %v313_v42  ;;  %v275_v43 = vpop.f32.mrb[13].mxu0  ;;  %v315_v44 = vpop.f32.mrb[13].mxu1 }
  0xff   :  { %434 = vst [vmem:[%s680_s2 + $0x68] sm:$0xff] %v275_v43  ;;  %450 = vst [vmem:[%s680_s2 + $0xe8] sm:$0xff] %v315_v44  ;;  %v277_v45 = vpop.f32.mrb[14].mxu0  ;;  %v317_v46 = vpop.f32.mrb[14].mxu1 }
 0x100   :  { %435 = vst [vmem:[%s680_s2 + $0x70] sm:$0xff] %v277_v45  ;;  %451 = vst [vmem:[%s680_s2 + $0xf0] sm:$0xff] %v317_v46  ;;  %v279_v47 = vpop.f32.mrb[15].mxu0  ;;  %v319_v48 = vpop.f32.mrb[15].mxu1 }
 0x101   :  { %436 = vst [vmem:[%s680_s2 + $0x78] sm:$0xff] %v279_v47  ;;  %452 = vst [vmem:[%s680_s2 + $0xf8] sm:$0xff] %v319_v48 }

// kernel: forward.5
= control target key start
LH: loop header
LB: loop body
LE: loop exit
PB: predicated region body
PF: predicated region fallthrough
CT: control target
= control target key end

     0   :  { %s690_s12 = smov 0   ;;  %s927_s0 = inlined_call_operand.vmem [shape: f32[2,8,8,128], index: 0, kind: input, shape index: {}]   ;;  %s928_s1 = inlined_call_operand.vmem [shape: f32[3,3,128], index: 1, kind: input, shape index: {}]   ;;  %s929_s2 = inlined_call_operand.vmem [shape: f32[1,128], index: 2, kind: input, shape index: {}]   ;;  %s930_s3 = inlined_call_operand.vmem [shape: f32[2,8,8,128], index: 3, kind: output, shape index: {}]  }
   0x1 LB: > { %s591_s13 = sadd.s32 4294967295, %s667_s12   ;;  %p595_p0 = scmp.ge.s32.totalorder %s667_s12, 1  ;;  %s667_s12 = sphi %s690_s12, %s13_s12  }
   0x2   : > { %p137_p1 = scmp.lt.s32.totalorder %s667_s12, 3 }
   0x4   : > { %p138_p2 = pnand %p595_p0, %p137_p1 }
   0x5   : > { %p698_p3 = scmp.lt.s32.totalorder (!%p138_p2), %s591_s13, 1  ;;  %v705_v0 = vld [vmem:[%s928_s1] ss:$0 sm:$0xff] (!%p138_p2)  ;;  %v669_v1 = vmov (!%p138_p2), 0.0   ;;  %v602_v4 = vld [vmem:[%s928_s1 + $0x1] ss:$0 sm:$0xff] (!%p138_p2) }
   0x6   : > { %141 = sbr.rel (%p138_p2) target bundleno = 100 (0x64), region = 32  ;;  %171 = vst [vmem:[#allocation2] sm:$0xff] (!%p138_p2), %v669_v1  ;;  %172 = vst [vmem:[#allocation2 + $0x8] sm:$0x3] (!%p138_p2), %v669_v1  ;;  %v229_v2 = vmul.f32 (!%p138_p2), 0.0, %v705_v0 }
   0x7   : > { %173 = vst [vmem:[#allocation2 + $0x10] sm:$0xff] (!%p138_p2), %v669_v1  ;;  %174 = vst [vmem:[#allocation2 + $0x18] sm:$0x3] (!%p138_p2), %v669_v1  ;;  %v716_v3 = vld [vmem:[%s929_s2] ss:$0 sm:$0xff] (!%p138_p2) }
   0x8   : > { %175 = vst [vmem:[#allocation2 + $0x20] sm:$0xff] (!%p138_p2), %v669_v1  ;;  %176 = vst [vmem:[#allocation2 + $0x28] sm:$0x3] (!%p138_p2), %v669_v1  ;;  %v729_v5 = vld [vmem:[%s928_s1 + $0x2] ss:$0 sm:$0xff] (!%p138_p2)  ;;  %v237_v14 = vadd.f32 (!%p138_p2), %v716_v3, %v229_v2 }
   0x9   : > { %177 = vst [vmem:[#allocation2 + $0x30] sm:$0xff] (!%p138_p2), %v669_v1  ;;  %178 = vst [vmem:[#allocation2 + $0x38] sm:$0x3] (!%p138_p2), %v669_v1  ;;  %v734_v6 = vld [vmem:[%s928_s1 + $0x5] ss:$0 sm:$0xff] (!%p138_p2) }
   0xa   : > { %179 = vst [vmem:[#allocation2 + $0x40] sm:$0xff] (!%p138_p2), %v669_v1  ;;  %180 = vst [vmem:[#allocation2 + $0x48] sm:$0x3] (!%p138_p2), %v669_v1  ;;  %v739_v7 = vld [vmem:[%s928_s1 + $0x9] ss:$0 sm:$0xff] (!%p138_p2) }
   0xb   : > { %181 = vst [vmem:[#allocation2 + $0x50] sm:$0xff] (!%p138_p2), %v669_v1  ;;  %182 = vst [vmem:[#allocation2 + $0x58] sm:$0x3] (!%p138_p2), %v669_v1  ;;  %v759_v28 = vld [vmem:[%s928_s1 + $0x4] ss:$0 sm:$0xff] (!%p138_p2) }
   0xc   : > { %183 = vst [vmem:[#allocation2 + $0x60] sm:$0xff] (!%p138_p2), %v669_v1  ;;  %184 = vst [vmem:[#allocation2 + $0x68] sm:$0x3] (!%p138_p2), %v669_v1  ;;  %v773_v34 = vld [vmem:[%s928_s1 + $0x6] ss:$0 sm:$0xff] (!%p138_p2) }
   0xd   : > { %185 = vst [vmem:[#allocation2 + $0x70] sm:$0xff] %v669_v1  ;;  %186 = vst [vmem:[#allocation2 + $0x78] sm:$0x3] %v669_v1  ;;  %s933_s13 = smov (!%p698_p3, %s591_s13), 1  ;;  %v245_v17 = vld [vmem:[#allocation2 + $0x1] sm:$0xff] }
   0xe   : > { %187 = vst [vmem:[#allocation2 + $0x80] sm:$0xff] %v669_v1  ;;  %188 = vst [vmem:[#allocation2 + $0x88] sm:$0x3] %v669_v1  ;;  %s618_s17 = sshll.u32 %s933_s13, 6  ;;  %v258_v18 = vmul.f32 %v602_v4, %v245_v17  ;;  %v274_v19 = vld [vmem:[#allocation2 + $0x2] sm:$0xff] }
   0xf   : > { %189 = vst [vmem:[#allocation2 + $0x90] sm:$0xff] %v669_v1  ;;  %190 = vst [vmem:[#allocation2 + $0x98] sm:$0x3] %v669_v1  ;;  %s165_s24 = scalar_lea.vmem %s927_s0, %s618_s17  ;;  %v287_v20 = vmul.f32 %v729_v5, %v274_v19  ;;  %v778_v35 = vld [vmem:[%s928_s1 + $0x8] ss:$0 sm:$0xff]  ;;  %s908_s16 = scalar_lea.vmem %s930_s3, %s618_s17 }
  0x10   : > { %v191_v8 = vld [vmem:[%s165_s24] sm:$0xff]  ;;  %v192_v9 = vld [vmem:[%s165_s24 + $0x8] sm:$0xff]  ;;  %v193_v10 = vld [vmem:[%s165_s24 + $0x10] sm:$0xff]  ;;  %v266_v24 = vadd.f32 %v258_v18, %v237_v14 }
  0x11   : > { %200 = vst [vmem:[#allocation2 + $0x11] sm:$0xff] %v191_v8  ;;  %201 = vst [vmem:[#allocation2 + $0x21] sm:$0xff] %v192_v9  ;;  %v194_v11 = vld [vmem:[%s165_s24 + $0x18] sm:$0xff]  ;;  %v195_v12 = vld [vmem:[%s165_s24 + $0x20] sm:$0xff]  ;;  %v346_v21 = vmul.f32 %v734_v6, %v191_v8  ;;  %v748_v22 = vmul.f32 %v739_v7, %v192_v9  ;;  %v259_v23 = vmul.f32 %v602_v4, %v191_v8 }
  0x12   : > { %202 = vst [vmem:[#allocation2 + $0x31] sm:$0xff] %v193_v10  ;;  %v196_v13 = vld [vmem:[%s165_s24 + $0x28] sm:$0xff]  ;;  %203 = vst [vmem:[#allocation2 + $0x41] sm:$0xff] %v194_v11  ;;  %v197_v15 = vld [vmem:[%s165_s24 + $0x30] sm:$0xff]  ;;  %v751_v25 = vmul.f32 %v734_v6, %v192_v9  ;;  %v754_v26 = vmul.f32 %v739_v7, %v193_v10  ;;  %v260_v27 = vmul.f32 %v602_v4, %v192_v9 }
  0x13   : > { %204 = vst [vmem:[#allocation2 + $0x51] sm:$0xff] %v195_v12  ;;  %205 = vst [vmem:[#allocation2 + $0x61] sm:$0xff] %v196_v13  ;;  %v742_v16 = vld [vmem:[%s165_s24 + $0x38] sm:$0xff]  ;;  %v762_v29 = vmul.f32 %v734_v6, %v193_v10  ;;  %v765_v30 = vmul.f32 %v739_v7, %v194_v11  ;;  %v261_v31 = vmul.f32 %v602_v4, %v193_v10  ;;  %v783_v36 = vld [vmem:[%s928_s1 + $0xa] ss:$0 sm:$0xff] }
  0x14   : > { %206 = vst [vmem:[#allocation2 + $0x71] sm:$0xff] %v197_v15  ;;  %207 = vst [vmem:[#allocation2 + $0x81] sm:$0xff] %v742_v16  ;;  %v768_v32 = vmul.f32 %v734_v6, %v194_v11  ;;  %v295_v33 = vadd.f32 %v287_v20, %v266_v24  ;;  %v786_v37 = vmul.f32 %v739_v7, %v195_v12 }
  0x15   : > { %v262_v38 = vmul.f32 %v602_v4, %v194_v11  ;;  %v789_v39 = vmul.f32 %v734_v6, %v195_v12  ;;  %v792_v43 = vmul.f32 %v739_v7, %v196_v13  ;;  %v794_v44 = vmul.f32 %v602_v4, %v195_v12 }
  0x16   : > { %v797_v45 = vmul.f32 %v734_v6, %v196_v13  ;;  %v800_v46 = vmul.f32 %v739_v7, %v197_v15  ;;  %v804_v51 = vmul.f32 %v602_v4, %v196_v13  ;;  %v807_v52 = vmul.f32 %v734_v6, %v197_v15 }
  0x17   : > { %v813_v56 = vmul.f32 %v739_v7, %v742_v16  ;;  %v815_v57 = vmul.f32 %v602_v4, %v197_v15 }
  0x18   : > { %v303_v40 = vld [vmem:[#allocation2 + $0x10] sm:$0xff]  ;;  %v392_v42 = vld [vmem:[#allocation2 + $0x20] sm:$0xff] }
  0x19   : > { %v362_v41 = vld [vmem:[#allocation2 + $0x12] sm:$0xff]  ;;  %v317_v47 = vmul.f32 %v759_v28, %v303_v40  ;;  %v451_v48 = vld [vmem:[#allocation2 + $0x22] sm:$0xff]  ;;  %v230_v49 = vmul.f32 %v705_v0, %v303_v40  ;;  %v406_v54 = vmul.f32 %v778_v35, %v392_v42  ;;  %v318_v62 = vmul.f32 %v759_v28, %v392_v42 }
  0x1a   : > { %v393_v50 = vld [vmem:[#allocation2 + $0x30] sm:$0xff]  ;;  %v375_v53 = vmul.f32 %v773_v34, %v362_v41  ;;  %v464_v59 = vmul.f32 %v783_v36, %v451_v48  ;;  %v288_v61 = vmul.f32 %v729_v5, %v362_v41  ;;  %v376_v63 = vmul.f32 %v773_v34, %v451_v48  ;;  %v394_v8 = vld [vmem:[#allocation2 + $0x40] sm:$0xff] }
  0x1b   : > { %v452_v55 = vld [vmem:[#allocation2 + $0x32] sm:$0xff]  ;;  %v325_v58 = vadd.f32 %v317_v47, %v295_v33  ;;  %v238_v60 = vadd.f32 %v716_v3, %v230_v49  ;;  %v407_v1 = vmul.f32 %v778_v35, %v393_v50  ;;  %v231_v2 = vmul.f32 %v705_v0, %v392_v42  ;;  %v453_v9 = vld [vmem:[#allocation2 + $0x42] sm:$0xff] }
  0x1c   : > { %v465_v11 = vmul.f32 %v783_v36, %v452_v55  ;;  %v289_v12 = vmul.f32 %v729_v5, %v451_v48  ;;  %v319_v14 = vmul.f32 %v759_v28, %v393_v50  ;;  %v377_v15 = vmul.f32 %v773_v34, %v452_v55  ;;  %v454_v41 = vld [vmem:[#allocation2 + $0x52] sm:$0xff] }
  0x1d   : > { %v354_v10 = vadd.f32 %v346_v21, %v325_v58  ;;  %v267_v4 = vadd.f32 %v259_v23, %v238_v60  ;;  %v239_v13 = vadd.f32 %v716_v3, %v231_v2  ;;  %v232_v17 = vmul.f32 %v705_v0, %v393_v50  ;;  %v395_v21 = vld [vmem:[#allocation2 + $0x50] sm:$0xff] }
  0x1e   : > { %v408_v20 = vmul.f32 %v778_v35, %v394_v8  ;;  %v466_v24 = vmul.f32 %v783_v36, %v453_v9  ;;  %v290_v40 = vmul.f32 %v729_v5, %v452_v55  ;;  %v233_v42 = vmul.f32 %v705_v0, %v394_v8 }
  0x1f   : > { %v383_v18 = vadd.f32 %v375_v53, %v354_v10  ;;  %v296_v19 = vadd.f32 %v288_v61, %v267_v4  ;;  %v268_v23 = vadd.f32 %v260_v27, %v239_v13  ;;  %v240_v33 = vadd.f32 %v716_v3, %v232_v17 }
  0x20   : > { %v320_v49 = vmul.f32 %v759_v28, %v394_v8  ;;  %v378_v50 = vmul.f32 %v773_v34, %v453_v9  ;;  %v409_v60 = vmul.f32 %v778_v35, %v395_v21  ;;  %v241_v61 = vadd.f32 %v716_v3, %v233_v42  ;;  %v396_v8 = vld [vmem:[#allocation2 + $0x60] sm:$0xff] }
  0x21   : > { %v414_v47 = vadd.f32 %v406_v54, %v383_v18  ;;  %v326_v48 = vadd.f32 %v318_v62, %v296_v19  ;;  %v297_v53 = vadd.f32 %v289_v12, %v268_v23  ;;  %v269_v58 = vadd.f32 %v261_v31, %v240_v33 }
  0x22   : > { %v467_v55 = vmul.f32 %v783_v36, %v454_v41  ;;  %v291_v10 = vmul.f32 %v729_v5, %v453_v9  ;;  %v270_v4 = vadd.f32 %v262_v38, %v241_v61  ;;  %v234_v13 = vmul.f32 %v705_v0, %v395_v21 }
  0x23   : > { %v443_v27 = vadd.f32 %v748_v22, %v414_v47  ;;  %v355_v2 = vadd.f32 %v751_v25, %v326_v48  ;;  %v327_v54 = vadd.f32 %v319_v14, %v297_v53  ;;  %v298_v62 = vadd.f32 %v290_v40, %v269_v58 }
  0x24   : > { %v321_v17 = vmul.f32 %v759_v28, %v395_v21  ;;  %v379_v18 = vmul.f32 %v773_v34, %v454_v41  ;;  %v299_v19 = vadd.f32 %v291_v10, %v270_v4  ;;  %v242_v23 = vadd.f32 %v716_v3, %v234_v13  ;;  %v455_v21 = vld [vmem:[#allocation2 + $0x62] sm:$0xff]  ;;  %v397_v10 = vld [vmem:[#allocation2 + $0x70] sm:$0xff] }
  0x25   : > { %v844_v12 = vadd.f32 %v464_v59, %v443_v27  ;;  %v384_v31 = vadd.f32 %v376_v63, %v355_v2  ;;  %v356_v22 = vadd.f32 %v762_v29, %v327_v54  ;;  %v328_v25 = vadd.f32 %v320_v49, %v298_v62 }
  0x26   : > { %v410_v38 = vmul.f32 %v778_v35, %v396_v8  ;;  %v292_v33 = vmul.f32 %v729_v5, %v454_v41  ;;  %v329_v40 = vadd.f32 %v321_v17, %v299_v19  ;;  %v271_v42 = vadd.f32 %v794_v44, %v242_v23 }
  0x27   : > { %v480_v9 = vsub.f32 0.0, %v844_v12  ;;  %v415_v14 = vadd.f32 %v407_v1, %v384_v31  ;;  %v385_v59 = vadd.f32 %v377_v15, %v356_v22  ;;  %v357_v63 = vadd.f32 %v768_v32, %v328_v25  ;;  %v398_v25 = vld [vmem:[#allocation2 + $0x80] sm:$0xff] }
  0x28   : > { %v322_v48 = vmul.f32 %v759_v28, %v396_v8  ;;  %v235_v49 = vmul.f32 %v705_v0, %v396_v8  ;;  %v358_v58 = vadd.f32 %v789_v39, %v329_v40  ;;  %v300_v61 = vadd.f32 %v292_v33, %v271_v42 }
  0x29   : > { %v488_v47 = vmul.f32 1.442695, %v480_v9  ;;  %v444_v29 = vadd.f32 %v754_v26, %v415_v14  ;;  %v416_v53 = vadd.f32 %v408_v20, %v385_v59  ;;  %v386_v1 = vadd.f32 %v378_v50, %v357_v63 }
  0x2a   : > { %v468_v32 = vmul.f32 %v783_v36, %v455_v21  ;;  %v243_v41 = vadd.f32 %v716_v3, %v235_v49  ;;  %v387_v26 = vadd.f32 %v379_v18, %v358_v58  ;;  %v330_v2 = vadd.f32 %v322_v48, %v300_v61 }
  0x2b   : > { %629 = vpow2.f32 %v488_v47  ;;  %v859_v15 = vadd.f32 %v465_v11, %v444_v29  ;;  %v445_v44 = vadd.f32 %v765_v30, %v416_v53  ;;  %v417_v27 = vadd.f32 %v409_v60, %v386_v1  ;;  %v456_v30 = vld [vmem:[#allocation2 + $0x72] sm:$0xff] }
  0x2c   : > { %v380_v20 = vmul.f32 %v773_v34, %v455_v21  ;;  %v272_v39 = vadd.f32 %v804_v51, %v243_v41  ;;  %v293_v50 = vmul.f32 %v729_v5, %v455_v21  ;;  %v418_v4 = vadd.f32 %v410_v38, %v387_v26  ;;  %v429_v41 = vld [vmem:[#allocation2 + $0x91] sm:$0xff] }
  0x2d   : > { %v481_v54 = vsub.f32 0.0, %v859_v15  ;;  %v868_v11 = vadd.f32 %v466_v24, %v445_v44  ;;  %v446_v62 = vadd.f32 %v786_v37, %v417_v27  ;;  %v359_v8 = vadd.f32 %v797_v45, %v330_v2 }
  0x2e   : > { %v411_v13 = vmul.f32 %v778_v35, %v397_v10  ;;  %v301_v31 = vadd.f32 %v293_v50, %v272_v39  ;;  %v323_v17 = vmul.f32 %v759_v28, %v397_v10  ;;  %v447_v51 = vadd.f32 %v792_v43, %v418_v4  ;;  %v458_v39 = vld [vmem:[#allocation2 + $0x92] sm:$0xff] }
  0x2f   : > { %v490_v60 = vmul.f32 1.442695, %v481_v54  ;;  %v482_v18 = vsub.f32 0.0, %v868_v11  ;;  %v875_v22 = vadd.f32 %v467_v55, %v446_v62  ;;  %v388_v24 = vadd.f32 %v380_v20, %v359_v8 }
  0x30   : > { %v469_v37 = vmul.f32 %v783_v36, %v456_v30  ;;  %v331_v19 = vadd.f32 %v323_v17, %v301_v31  ;;  %v236_v45 = vmul.f32 %v705_v0, %v397_v10  ;;  %v881_v14 = vadd.f32 %v468_v32, %v447_v51 }
  0x31   : > { %631 = vpow2.f32 %v490_v60  ;;  %v492_v23 = vmul.f32 1.442695, %v482_v18  ;;  %v483_v9 = vsub.f32 0.0, %v875_v22  ;;  %v419_v38 = vadd.f32 %v411_v13, %v388_v24 }
  0x32   : > { %v360_v33 = vadd.f32 %v807_v52, %v331_v19  ;;  %v381_v55 = vmul.f32 %v773_v34, %v456_v30  ;;  %v412_v43 = vmul.f32 %v778_v35, %v398_v25  ;;  %v244_v59 = vadd.f32 %v716_v3, %v236_v45  ;;  %v457_v3 = vld [vmem:[#allocation2 + $0x82] sm:$0xff] }
  0x33   : > { %633 = vpow2.f32 %v492_v23  ;;  %v494_v63 = vmul.f32 1.442695, %v483_v9  ;;  %v484_v40 = vsub.f32 0.0, %v881_v14  ;;  %v448_v0 = vadd.f32 %v800_v46, %v419_v38 }
  0x34   : > { %v389_v42 = vadd.f32 %v381_v55, %v360_v33  ;;  %v273_v47 = vadd.f32 %v815_v57, %v244_v59  ;;  %v294_v29 = vmul.f32 %v729_v5, %v456_v30  ;;  %v324_v52 = vmul.f32 %v759_v28, %v398_v25 }
  0x35   : > { %v630_v21 = vpop.eup %629  ;;  %635 = vpow2.f32 %v494_v63  ;;  %v496_v49 = vmul.f32 1.442695, %v484_v40  ;;  %v892_v53 = vadd.f32 %v469_v37, %v448_v0  ;;  %v353_v61 = vmul.f32 %v734_v6, %v742_v16 }
  0x36   : > { %v504_v48 = vadd.f32 1.0, %v630_v21  ;;  %v420_v1 = vadd.f32 %v412_v43, %v389_v42  ;;  %v302_v58 = vadd.f32 %v294_v29, %v273_v47  ;;  %v470_v5 = vmul.f32 %v783_v36, %v457_v3 }
  0x37   : > { %v485_v46 = vsub.f32 0.0, %v892_v53  ;;  %v382_v2 = vmul.f32 %v773_v34, %v457_v3  ;;  %v413_v10 = vmul.f32 0.0, %v778_v35  ;;  %v442_v20 = vmul.f32 %v739_v7, %v429_v41 }
  0x38   : > { %637 = vrcp.f32 %v504_v48  ;;  %v449_v57 = vadd.f32 %v813_v56, %v420_v1  ;;  %v332_v28 = vadd.f32 %v324_v52, %v302_v58  ;;  %v471_v34 = vmul.f32 %v783_v36, %v458_v39 }
  0x39   : > { %639 = vpow2.f32 %v496_v49  ;;  %v498_v32 = vmul.f32 1.442695, %v485_v46 }
  0x3a   : > { %v478_v27 = vadd.f32 %v470_v5, %v449_v57  ;;  %v361_v26 = vadd.f32 %v353_v61, %v332_v28 }
  0x3b   : > { %v632_v44 = vpop.eup %631  ;;  %641 = vpow2.f32 %v498_v32 }
  0x3c   : > { %v505_v54 = vadd.f32 1.0, %v632_v44  ;;  %v486_v6 = vsub.f32 0.0, %v478_v27  ;;  %v390_v16 = vadd.f32 %v382_v2, %v361_v26 }
  0x3d   : > { %v634_v56 = vpop.eup %633 }
  0x3e   : > { %643 = vrcp.f32 %v505_v54  ;;  %v506_v50 = vadd.f32 1.0, %v634_v56  ;;  %v500_v62 = vmul.f32 1.442695, %v486_v6  ;;  %v421_v4 = vadd.f32 %v413_v10, %v390_v16 }
  0x3f   : > { %v636_v8 = vpop.eup %635 }
  0x40   : > { %645 = vrcp.f32 %v506_v50  ;;  %v507_v30 = vadd.f32 1.0, %v636_v8  ;;  %v450_v60 = vadd.f32 %v442_v20, %v421_v4 }
  0x41   : > { %647 = vpow2.f32 %v500_v62 }
  0x42   : > { %v638_v35 = vpop.eup %637  ;;  %649 = vrcp.f32 %v507_v30  ;;  %v479_v31 = vadd.f32 %v471_v34, %v450_v60 }
  0x43   : > { %v640_v7 = vpop.eup %639  ;;  %v520_v13 = vmul.f32 %v638_v35, %v844_v12 }
  0x44   : > { %v508_v17 = vadd.f32 1.0, %v640_v7  ;;  %v487_v18 = vsub.f32 0.0, %v479_v31 }
  0x45   : > { %528 = vst [vmem:[%s908_s16] sm:$0xff] %v520_v13  ;;  %v642_v36 = vpop.eup %641 }
  0x46   : > { %651 = vrcp.f32 %v508_v17  ;;  %v509_v51 = vadd.f32 1.0, %v642_v36  ;;  %v502_v24 = vmul.f32 1.442695, %v487_v18 }
  0x48   : > { %v644_v25 = vpop.eup %643  ;;  %653 = vrcp.f32 %v509_v51 }
  0x49   : > { %v521_v37 = vmul.f32 %v644_v25, %v859_v15  ;;  %655 = vpow2.f32 %v502_v24 }
  0x4a   : > { %v646_v19 = vpop.eup %645 }
  0x4b   : > { %529 = vst [vmem:[%s908_s16 + $0x8] sm:$0xff] %v521_v37  ;;  %v648_v12 = vpop.eup %647  ;;  %v522_v45 = vmul.f32 %v646_v19, %v868_v11 }
  0x4c   : > { %v650_v23 = vpop.eup %649  ;;  %v510_v9 = vadd.f32 1.0, %v648_v12 }
  0x4d   : > { %530 = vst [vmem:[%s908_s16 + $0x10] sm:$0xff] %v522_v45  ;;  %v523_v38 = vmul.f32 %v650_v23, %v875_v22 }
  0x4e   : > { %657 = vrcp.f32 %v510_v9 }
  0x4f   : > { %531 = vst [vmem:[%s908_s16 + $0x18] sm:$0xff] %v523_v38 }
  0x50   : > { %v652_v33 = vpop.eup %651 }
  0x51   : > { %v524_v15 = vmul.f32 %v652_v33, %v881_v14 }
  0x52   : > { %v654_v55 = vpop.eup %653 }
  0x53   : > { %532 = vst [vmem:[%s908_s16 + $0x20] sm:$0xff] %v524_v15  ;;  %v656_v43 = vpop.eup %655  ;;  %v525_v59 = vmul.f32 %v654_v55, %v892_v53 }
  0x54   : > { %v511_v63 = vadd.f32 1.0, %v656_v43 }
  0x55   : > { %533 = vst [vmem:[%s908_s16 + $0x28] sm:$0xff] %v525_v59 }
  0x56   : > { %659 = vrcp.f32 %v511_v63 }
  0x58   : > { %v658_v11 = vpop.eup %657 }
  0x59   : > { %v526_v40 = vmul.f32 %v658_v11, %v478_v27 }
  0x5b   : > { %534 = vst [vmem:[%s908_s16 + $0x30] sm:$0xff] %v526_v40 }
  0x60   : > { %v660_v0 = vpop.eup %659 }
  0x61   : > { %v527_v21 = vmul.f32 %v660_v0, %v479_v31 }
  0x63   : > { %535 = vst [vmem:[%s908_s16 + $0x38] sm:$0xff] %v527_v21 }
  0x64 PF: > { %s13_s12 = sadd.s32 1, %s667_s12  }
  0x65   : > { %p10_p4 = scmp.ge.s32.totalorder %s13_s12, 4  }
  0x67   :  { %12 = sbr.rel (!%p10_p4) target bundleno = 1 (0x1), region = 66 }

// kernel: forward.6
= control target key start
LH: loop header
LB: loop body
LE: loop exit
PB: predicated region body
PF: predicated region fallthrough
CT: control target
= control target key end

     0   :  { %s1110_s21 = smov 0   ;;  %s1315_s0 = inlined_call_operand.vmem [shape: f32[2,64,128], index: 0, kind: input, shape index: {}]   ;;  %s1316_s1 = inlined_call_operand.vmem [shape: bf16[128,128], index: 1, kind: input, shape index: {}]   ;;  %s1317_s2 = inlined_call_operand.vmem [shape: f32[1,128], index: 2, kind: input, shape index: {}]   ;;  %s1318_s3 = inlined_call_operand.vmem [shape: f32[2,128], index: 3, kind: input, shape index: {}]   ;;  %s1319_s4 = inlined_call_operand.vmem [shape: f32[1,128], index: 4, kind: input, shape index: {}]   ;;  %s1320_s5 = inlined_call_operand.vmem [shape: f32[2,64,128], index: 5, kind: output, shape index: {0}]   ;;  %s1321_s6 = inlined_call_operand.vmem [shape: f32[2,64,1], index: 6, kind: output, shape index: {1}]  }
   0x1 LB: > { %s879_s22 = sadd.s32 4294967295, %s1062_s21   ;;  %p883_p0 = scmp.ge.s32.totalorder %s1062_s21, 1  ;;  %s1062_s21 = sphi %s1110_s21, %s17_s21  }
   0x2   : > { %p215_p1 = scmp.lt.s32.totalorder %s1062_s21, 3 }
   0x4   : > { %p216_p2 = pnand %p883_p0, %p215_p1 }
   0x5   : > { %v1004_v0 = vld [vmem:[%s1316_s1] sm:$0xff] (!%p216_p2)   ;;  %p250_p3 = scmp.lt.s32.totalorder (!%p216_p2), %s879_s22, 1  ;;  %v1005_v1 = vld [vmem:[%s1316_s1 + $0x8] sm:$0xff] (!%p216_p2)   ;;  %v1006_v2 = vld [vmem:[%s1316_s1 + $0x10] sm:$0xff] (!%p216_p2)   ;;  %v600_v42 = vlaneseq (!%p216_p2)  ;;  %v1072_v47 = vmov (!%p216_p2), 0.0   ;;  %vm544_vm1 = vcmask (!%p216_p2), 7168  }
   0x6   : > { %219 = sbr.rel (%p216_p2) target bundleno = 754 (0x2f2), region = 40  ;;  %927 = vmatprep.subr.bf16.mxu0 (!%p216_p2), %v1004_v0  ;;  %961 = vmatprep.subr.bf16.mxu1 (!%p216_p2), %v1004_v0  ;;  %v1007_v3 = vld [vmem:[%s1316_s1 + $0x18] sm:$0xff] (!%p216_p2)   ;;  %v899_v11 = vld [vmem:[%s1318_s3] ss:$0 sm:$0xff] (!%p216_p2)  ;;  %v1009_v18 = vld [vmem:[%s1316_s1 + $0x28] sm:$0xff] (!%p216_p2)   ;;  %s1295_s12 = smov (!%p216_p2), 0  }
   0x7   : > { %928 = vmatpush3.bf16.msra.mxu0 (!%p216_p2), %v1004_v0  ;;  %969 = vmatpush3.bf16.msra.mxu1 (!%p216_p2), %v1004_v0  ;;  %v1008_v14 = vld [vmem:[%s1316_s1 + $0x20] sm:$0xff] (!%p216_p2)   ;;  %v1010_v21 = vld [vmem:[%s1316_s1 + $0x30] sm:$0xff] (!%p216_p2)   ;;  %v1011_v27 = vld [vmem:[%s1316_s1 + $0x38] sm:$0xff] (!%p216_p2)   ;;  %v1220_v45 = vshrl.u32 (!%p216_p2), %v600_v42, 7  ;;  %v603_v46 = vand.u32 (!%p216_p2), 127, %v600_v42 }
   0x8   : > { %929 = vmatprep.subr.bf16.mxu0 (!%p216_p2), %v1005_v1  ;;  %962 = vmatprep.subr.bf16.mxu1 (!%p216_p2), %v1005_v1  ;;  %v900_v26 = vld [vmem:[%s1318_s3 + $0x1] ss:$0 sm:$0xff] (!%p216_p2)  ;;  %v890_v59 = vld [vmem:[%s1317_s2] ss:$0 sm:$0xff] (!%p216_p2) }
   0x9   : > { %vm604_vm0 = vcmp.le.s32.totalorder (!%p216_p2), %v603_v46, %v1220_v45 }
   0xa   : > { %v1223_v48 = vsel (!%p216_p2), %vm604_vm0, 1.0, %v1072_v47 }
   0xb   : > { %930 = vmatpush3.bf16.msra.mxu0 (!%p216_p2), %v1005_v1  ;;  %970 = vmatpush3.bf16.msra.mxu1 (!%p216_p2), %v1005_v1 }
   0xc   : > { %931 = vmatprep.subr.bf16.mxu0 (!%p216_p2), %v1006_v2  ;;  %963 = vmatprep.subr.bf16.mxu1 (!%p216_p2), %v1006_v2 }
   0xd   : > { %s1323_s22 = smov (!%p250_p3, %s879_s22), 1 }
   0xe   : > { %s1127_s29 = sshll.u32 %s1323_s22, 6 }
   0xf   : > { %s1133_s8 = scalar_lea.vmem %s1315_s0, %s1127_s29  ;;  %s259_s11 = scalar_lea.vmem %s1320_s5, %s1127_s29  ;;  %932 = vmatpush3.bf16.msra.mxu0 %v1006_v2  ;;  %971 = vmatpush3.bf16.msra.mxu1 %v1006_v2 }
  0x10   : > { %v1143_v4 = vld [vmem:[%s1133_s8] sm:$0xff]  ;;  %v1146_v5 = vld [vmem:[%s1133_s8 + $0x8] sm:$0xff]  ;;  %v1159_v10 = vld [vmem:[%s1133_s8 + $0x10] sm:$0xff]  ;;  %933 = vmatprep.subr.bf16.mxu0 %v1007_v3  ;;  %964 = vmatprep.subr.bf16.mxu1 %v1007_v3  ;;  %s264_s30 = scalar_lea.vmem %s1321_s6, %s1127_s29 }
  0x11   : > { %v1149_v6 = vld [vmem:[%s1133_s8 + $0x20] sm:$0xff]  ;;  %v274_v7 = vpack.c.bf16 %v1146_v5, %v1143_v4  ;;  %v1154_v8 = vld [vmem:[%s1133_s8 + $0x28] sm:$0xff]  ;;  %v493_v12 = vmul.f32 %v899_v11, %v1159_v10  ;;  %v491_v13 = vmul.f32 %v899_v11, %v1143_v4  ;;  %v1170_v15 = vld [vmem:[%s1133_s8 + $0x18] sm:$0xff]  ;;  %v492_v17 = vmul.f32 %v899_v11, %v1146_v5 }
  0x12   : > { %v276_v9 = vpack.c.bf16 %v1154_v8, %v1149_v6  ;;  %v494_v16 = vmul.f32 %v899_v11, %v1170_v15  ;;  %v496_v19 = vmul.f32 %v899_v11, %v1154_v8  ;;  %v495_v20 = vmul.f32 %v899_v11, %v1149_v6  ;;  %v1183_v22 = vld [vmem:[%s1133_s8 + $0x30] sm:$0xff]  ;;  %v1186_v23 = vld [vmem:[%s1133_s8 + $0x38] sm:$0xff] }
  0x13   : > { %943 = vmatprep.mubr.bf16.mxu0 %v274_v7  ;;  %503 = vadd.xlane.f32.xlu1 %v493_v12  ;;  %v498_v24 = vmul.f32 %v899_v11, %v1186_v23  ;;  %v497_v25 = vmul.f32 %v899_v11, %v1183_v22  ;;  %v521_v28 = vmul.f32 %v900_v26, %v1146_v5 }
  0x14   : > { %947 = vmatprep.mubr.bf16.mxu1 %v276_v9  ;;  %499 = vadd.xlane.f32.xlu0 %v491_v13  ;;  %v520_v29 = vmul.f32 %v900_v26, %v1143_v4  ;;  %v275_v30 = vpack.c.bf16 %v1170_v15, %v1159_v10  ;;  %v277_v31 = vpack.c.bf16 %v1186_v23, %v1183_v22 }
  0x15   : > { %934 = vmatpush3.bf16.msra.mxu0 %v1007_v3  ;;  %972 = vmatpush3.bf16.msra.mxu1 %v1007_v3  ;;  %v523_v32 = vmul.f32 %v900_v26, %v1170_v15  ;;  %v522_v33 = vmul.f32 %v900_v26, %v1159_v10  ;;  %v525_v34 = vmul.f32 %v900_v26, %v1154_v8 }
  0x16   : > { %935 = vmatprep.subr.bf16.mxu0 %v1008_v14  ;;  %965 = vmatprep.subr.bf16.mxu1 %v1008_v14  ;;  %v524_v35 = vmul.f32 %v900_v26, %v1149_v6  ;;  %v527_v36 = vmul.f32 %v900_v26, %v1186_v23  ;;  %v526_v37 = vmul.f32 %v900_v26, %v1183_v22 }
  0x17   : > { %505 = vadd.xlane.f32.xlu1 %v494_v16 }
  0x18   : > { %501 = vadd.xlane.f32.xlu0 %v492_v17 }
  0x19   : > { %936 = vmatpush3.bf16.msra.mxu0 %v1008_v14  ;;  %973 = vmatpush3.bf16.msra.mxu1 %v1008_v14 }
  0x1a   : > { %937 = vmatprep.subr.bf16.mxu0 %v1009_v18  ;;  %966 = vmatprep.subr.bf16.mxu1 %v1009_v18 }
  0x1b   : > { %509 = vadd.xlane.f32.xlu1 %v496_v19 }
  0x1c   : > { %507 = vadd.xlane.f32.xlu0 %v495_v20 }
  0x1d   : > { %938 = vmatpush3.bf16.msra.mxu0 %v1009_v18  ;;  %974 = vmatpush3.bf16.msra.mxu1 %v1009_v18 }
  0x1e   : > { %939 = vmatprep.subr.bf16.mxu0 %v1010_v21  ;;  %967 = vmatprep.subr.bf16.mxu1 %v1010_v21 }
  0x1f   : > { %513 = vadd.xlane.f32.xlu1 %v498_v24 }
  0x20   : > { %511 = vadd.xlane.f32.xlu0 %v497_v25 }
  0x21   : > { %940 = vmatpush3.bf16.msra.mxu0 %v1010_v21  ;;  %975 = vmatpush3.bf16.msra.mxu1 %v1010_v21 }
  0x22   : > { %941 = vmatprep.subr.bf16.mxu0 %v1011_v27  ;;  %968 = vmatprep.subr.bf16.mxu1 %v1011_v27 }
  0x23   : > { %530 = vadd.xlane.f32.xlu1 %v521_v28 }
  0x24   : > { %528 = vadd.xlane.f32.xlu0 %v520_v29 }
  0x25   : > { %942 = vmatpush3.bf16.msra.mxu0 %v1011_v27  ;;  %976 = vmatpush3.bf16.msra.mxu1 %v1011_v27 }
  0x27   : > { %534 = vadd.xlane.f32.xlu1 %v523_v32 }
  0x28   : > { %944 = vmatmul.mubr.bf16.vlgmr.msra.gmra.mrb[0].mxu0 %v275_v30  ;;  %948 = vmatmul.mubr.bf16.vlgmr.msra.gmra.mrb[0].mxu1 %v277_v31 }
  0x29   : > { %532 = vadd.xlane.f32.xlu0 %v522_v33 }
  0x2b   : > { %538 = vadd.xlane.f32.xlu1 %v525_v34 }
  0x2d   : > { %536 = vadd.xlane.f32.xlu0 %v524_v35 }
  0x2f   : > { %542 = vadd.xlane.f32.xlu1 %v527_v36 }
  0x31   : > { %540 = vadd.xlane.f32.xlu0 %v526_v37 }
  0xa0   : > { %v1208_v38 = vpop.xlane.xlu1 %503 }
  0xa1   : > { %v1210_v39 = vpop.xlane.xlu0 %499 }
  0xa4   : > { %v1212_v40 = vpop.xlane.xlu1 %505 }
  0xa5   : > { %v1214_v41 = vpop.xlane.xlu0 %501 }
  0xa8   : > { %v1216_v43 = vpop.xlane.xlu1 %509 }
  0xa9   : > { %v1218_v44 = vpop.xlane.xlu0 %507 }
  0xac   : > { %v1225_v49 = vpop.xlane.xlu1 %513 }
  0xad   : > { %v1227_v50 = vpop.xlane.xlu0 %511 }
  0xb0   : > { %v531_v51 = vpop.xlane.xlu1 %530 }
  0xb1   : > { %v529_v52 = vpop.xlane.xlu0 %528  ;;  %546 = vst.msk [vmem:[%s264_s30 + $0x8] sm:$0xff] %vm544_vm1, %v531_v51 }
  0xb2   : > { %545 = vst.msk [vmem:[%s264_s30] sm:$0xff] %vm544_vm1, %v529_v52 }
  0xb4   : > { %v535_v53 = vpop.xlane.xlu1 %534 }
  0xb5   : > { %548 = vst.msk [vmem:[%s264_s30 + $0x18] sm:$0xff] %vm544_vm1, %v535_v53 }
  0xb6   : > { %v533_v54 = vpop.xlane.xlu0 %532 }
  0xb7   : > { %547 = vst.msk [vmem:[%s264_s30 + $0x10] sm:$0xff] %vm544_vm1, %v533_v54 }
  0xb8   : > { %v539_v55 = vpop.xlane.xlu1 %538 }
  0xb9   : > { %550 = vst.msk [vmem:[%s264_s30 + $0x28] sm:$0xff] %vm544_vm1, %v539_v55 }
  0xba   : > { %v537_v56 = vpop.xlane.xlu0 %536 }
  0xbb   : > { %549 = vst.msk [vmem:[%s264_s30 + $0x20] sm:$0xff] %vm544_vm1, %v537_v56 }
  0xbc   : > { %v543_v57 = vpop.xlane.xlu1 %542 }
  0xbd   : > { %552 = vst.msk [vmem:[%s264_s30 + $0x38] sm:$0xff] %vm544_vm1, %v543_v57 }
  0xbe   : > { %v541_v58 = vpop.xlane.xlu0 %540 }
  0xbf   : > { %551 = vst.msk [vmem:[%s264_s30 + $0x30] sm:$0xff] %vm544_vm1, %v541_v58 }
  0xfb   : > { %v945_v60 = vpop.f32.mrb[0].mxu0  ;;  %v949_v61 = vpop.f32.mrb[0].mxu1 }
  0xfc   : > { %v1244_v62 = vadd.f32 %v945_v60, %v890_v59  ;;  %v1246_v63 = vadd.f32 %v949_v61, %v890_v59  ;;  %v383_v0 = vpop.f32.mrb[1].mxu0  ;;  %v399_v1 = vpop.f32.mrb[1].mxu1 }
  0xfd   : > { %v1248_v2 = vadd.f32 %v890_v59, %v383_v0  ;;  %v1250_v3 = vadd.f32 %v890_v59, %v399_v1  ;;  %v946_v7 = vpop.f32.mrb[2].mxu0  ;;  %v950_v9 = vpop.f32.mrb[2].mxu1 }
  0xfe   : > { %v424_v11 = vand.u32 2147483647, %v1244_v62  ;;  %v428_v12 = vand.u32 2147483647, %v1246_v63  ;;  %v1256_v18 = vadd.f32 %v946_v7, %v890_v59  ;;  %v1258_v19 = vadd.f32 %v950_v9, %v890_v59  ;;  %v386_v20 = vpop.f32.mrb[3].mxu0  ;;  %v402_v21 = vpop.f32.mrb[3].mxu1 }
  0xff   : > { %v422_v13 = vand.u32 2147483647, %v1248_v2  ;;  %v426_v14 = vand.u32 2147483647, %v1250_v3  ;;  %v1260_v26 = vadd.f32 %v890_v59, %v386_v20  ;;  %v1262_v27 = vadd.f32 %v890_v59, %v402_v21 }
 0x100   : > { %v432_v16 = vsub.f32 0.0, %v424_v11  ;;  %v436_v17 = vsub.f32 0.0, %v428_v12  ;;  %v425_v32 = vand.u32 2147483647, %v1256_v18  ;;  %v429_v33 = vand.u32 2147483647, %v1258_v19 }
 0x101   : > { %v430_v24 = vsub.f32 0.0, %v422_v13  ;;  %v434_v25 = vsub.f32 0.0, %v426_v14  ;;  %v423_v34 = vand.u32 2147483647, %v1260_v26  ;;  %v427_v36 = vand.u32 2147483647, %v1262_v27 }
 0x102   : > { %v442_v28 = vmul.f32 1.442695, %v432_v16  ;;  %v450_v29 = vmul.f32 1.442695, %v436_v17  ;;  %v433_v35 = vsub.f32 0.0, %v425_v32  ;;  %v437_v37 = vsub.f32 0.0, %v429_v33 }
 0x103   : > { %v438_v30 = vmul.f32 1.442695, %v430_v24  ;;  %v446_v31 = vmul.f32 1.442695, %v434_v25  ;;  %v431_v42 = vsub.f32 0.0, %v423_v34  ;;  %v435_v47 = vsub.f32 0.0, %v427_v36 }
 0x104   : > { %1012 = vpow2.f32 %v442_v28  ;;  %v444_v46 = vmul.f32 1.442695, %v433_v35  ;;  %v452_v51 = vmul.f32 1.442695, %v437_v37  ;;  %v416_v20 = vmax.f32 %v1244_v62, 0.0 }
 0x105   : > { %1014 = vpow2.f32 %v450_v29  ;;  %v440_v52 = vmul.f32 1.442695, %v431_v42  ;;  %v448_v53 = vmul.f32 1.442695, %v435_v47  ;;  %v420_v25 = vmax.f32 %v1246_v63, 0.0 }
 0x106   : > { %1016 = vpow2.f32 %v438_v30  ;;  %v414_v28 = vmax.f32 %v1248_v2, 0.0  ;;  %v901_v29 = vld [vmem:[%s1319_s4] ss:$0 sm:$0xff]  ;;  %v418_v32 = vmax.f32 %v1250_v3, 0.0  ;;  %v417_v33 = vmax.f32 %v1256_v18, 0.0 }
 0x107   : > { %1018 = vpow2.f32 %v446_v31  ;;  %v421_v62 = vmax.f32 %v1258_v19, 0.0  ;;  %v415_v36 = vmax.f32 %v1260_v26, 0.0  ;;  %v419_v2 = vmax.f32 %v1262_v27, 0.0 }
 0x108   : > { %1020 = vpow2.f32 %v444_v46 }
 0x109   : > { %1022 = vpow2.f32 %v452_v51 }
 0x10a   : > { %1024 = vpow2.f32 %v440_v52 }
 0x10b   : > { %1026 = vpow2.f32 %v448_v53 }
 0x10e   : > { %v1013_v54 = vpop.eup %1012 }
 0x10f   : > { %v1015_v55 = vpop.eup %1014  ;;  %v456_v56 = vadd.f32 1.0, %v1013_v54 }
 0x110   : > { %v1017_v57 = vpop.eup %1016  ;;  %v460_v58 = vadd.f32 1.0, %v1015_v55 }
 0x111   : > { %v1019_v59 = vpop.eup %1018  ;;  %v454_v60 = vadd.f32 1.0, %v1017_v57  ;;  %1028 = vlog2.f32 %v456_v56 }
 0x112   : > { %v458_v61 = vadd.f32 1.0, %v1019_v59  ;;  %1030 = vlog2.f32 %v460_v58  ;;  %v1021_v0 = vpop.eup %1020 }
 0x113   : > { %1032 = vlog2.f32 %v454_v60  ;;  %v1023_v1 = vpop.eup %1022  ;;  %v457_v7 = vadd.f32 1.0, %v1021_v0 }
 0x114   : > { %1034 = vlog2.f32 %v458_v61  ;;  %v1025_v9 = vpop.eup %1024  ;;  %v461_v11 = vadd.f32 1.0, %v1023_v1 }
 0x115   : > { %v1027_v12 = vpop.eup %1026  ;;  %v455_v13 = vadd.f32 1.0, %v1025_v9  ;;  %1036 = vlog2.f32 %v457_v7 }
 0x116   : > { %v459_v14 = vadd.f32 1.0, %v1027_v12  ;;  %1038 = vlog2.f32 %v461_v11 }
 0x117   : > { %1040 = vlog2.f32 %v455_v13 }
 0x118   : > { %1042 = vlog2.f32 %v459_v14 }
 0x11b   : > { %v1029_v16 = vpop.eup %1028 }
 0x11c   : > { %v1031_v17 = vpop.eup %1030  ;;  %v467_v21 = vmul.f32 0.6931472, %v1029_v16 }
 0x11d   : > { %v1033_v24 = vpop.eup %1032  ;;  %v475_v30 = vmul.f32 0.6931472, %v1031_v17 }
 0x11e   : > { %v1035_v31 = vpop.eup %1034  ;;  %v480_v34 = vadd.f32 %v467_v21, %v416_v20  ;;  %v463_v35 = vmul.f32 0.6931472, %v1033_v24 }
 0x11f   : > { %v471_v37 = vmul.f32 0.6931472, %v1035_v31  ;;  %v484_v63 = vadd.f32 %v475_v30, %v420_v25  ;;  %v1037_v42 = vpop.eup %1036 }
 0x120   : > { %v562_v46 = vmul.f32 %v901_v29, %v480_v34  ;;  %v578_v47 = vmul.f32 %v1208_v38, %v480_v34  ;;  %v478_v51 = vadd.f32 %v463_v35, %v414_v28  ;;  %v1039_v52 = vpop.eup %1038  ;;  %v469_v53 = vmul.f32 0.6931472, %v1037_v42 }
 0x121   : > { %v482_v3 = vadd.f32 %v471_v37, %v418_v32  ;;  %v566_v54 = vmul.f32 %v901_v29, %v484_v63  ;;  %v582_v18 = vmul.f32 %v1227_v50, %v484_v63  ;;  %v1041_v55 = vpop.eup %1040  ;;  %v477_v57 = vmul.f32 0.6931472, %v1039_v52 }
 0x122   : > { %570 = vst [vmem:[#allocation2 + $0x10] sm:$0xff] %v562_v46  ;;  %v586_v19 = vmul.f32 %v578_v47, %v1159_v10  ;;  %v560_v26 = vmul.f32 %v901_v29, %v478_v51  ;;  %v576_v56 = vmul.f32 %v1210_v39, %v478_v51  ;;  %v1043_v58 = vpop.eup %1042  ;;  %v481_v27 = vadd.f32 %v469_v53, %v417_v33 }
 0x123   : > { %v465_v59 = vmul.f32 0.6931472, %v1041_v55  ;;  %v564_v60 = vmul.f32 %v901_v29, %v482_v3  ;;  %v580_v38 = vmul.f32 %v1218_v44, %v482_v3  ;;  %574 = vst [vmem:[#allocation2 + $0x30] sm:$0xff] %v566_v54  ;;  %v473_v50 = vmul.f32 0.6931472, %v1043_v58 }
 0x124   : > { %594 = vst [vmem:[#allocation3 + $0x10] sm:$0xff] %v586_v19  ;;  %568 = vst [vmem:[#allocation2] sm:$0xff] %v560_v26  ;;  %v584_v61 = vmul.f32 %v576_v56, %v1143_v4  ;;  %v485_v0 = vadd.f32 %v477_v57, %v421_v62  ;;  %v590_v1 = vmul.f32 %v582_v18, %v1183_v22 }
 0x125   : > { %v563_v10 = vmul.f32 %v901_v29, %v481_v27  ;;  %v579_v7 = vmul.f32 %v1212_v40, %v481_v27  ;;  %v479_v39 = vadd.f32 %v465_v59, %v415_v36  ;;  %572 = vst [vmem:[#allocation2 + $0x20] sm:$0xff] %v564_v60  ;;  %v588_v9 = vmul.f32 %v580_v38, %v1149_v6 }
 0x126   : > { %592 = vst [vmem:[#allocation3] sm:$0xff] %v584_v61  ;;  %v483_v11 = vadd.f32 %v473_v50, %v419_v2  ;;  %v567_v12 = vmul.f32 %v901_v29, %v485_v0  ;;  %v583_v44 = vmul.f32 %v1225_v49, %v485_v0  ;;  %598 = vst [vmem:[#allocation3 + $0x30] sm:$0xff] %v590_v1 }
 0x127   : > { %571 = vst [vmem:[#allocation2 + $0x18] sm:$0xff] %v563_v10  ;;  %v587_v4 = vmul.f32 %v579_v7, %v1170_v15  ;;  %v561_v13 = vmul.f32 %v901_v29, %v479_v39  ;;  %v577_v14 = vmul.f32 %v1214_v41, %v479_v39  ;;  %596 = vst [vmem:[#allocation3 + $0x20] sm:$0xff] %v588_v9  ;;  %v1064_v15 = vmov 0.0  }
 0x128   : > { %v565_v22 = vmul.f32 %v901_v29, %v483_v11  ;;  %v581_v40 = vmul.f32 %v1216_v43, %v483_v11  ;;  %575 = vst [vmem:[#allocation2 + $0x38] sm:$0xff] %v567_v12  ;;  %v591_v16 = vmul.f32 %v583_v44, %v1186_v23 }
 0x129   : > { %595 = vst [vmem:[#allocation3 + $0x18] sm:$0xff] %v587_v4  ;;  %569 = vst [vmem:[#allocation2 + $0x8] sm:$0xff] %v561_v13  ;;  %v585_v6 = vmul.f32 %v577_v14, %v1146_v5 }
 0x12a   : > { %573 = vst [vmem:[#allocation2 + $0x28] sm:$0xff] %v565_v22  ;;  %v589_v49 = vmul.f32 %v581_v40, %v1154_v8  ;;  %599 = vst [vmem:[#allocation3 + $0x38] sm:$0xff] %v591_v16 }
 0x12b   : > { %593 = vst [vmem:[#allocation3 + $0x8] sm:$0xff] %v585_v6 }
 0x12c   : > { %597 = vst [vmem:[#allocation3 + $0x28] sm:$0xff] %v589_v49 }
 0x12d LB: >> { %v1073_v23 = vmov 0.0   ;;  %vm1074_vm2 = vmmov 0   ;;  %s903_s13 = sshll.u32 %s1070_s12, 3  ;;  %vm619_vm3 = vcmask 64512   ;;  %v771_v28 = vsub.s32 7, %v1220_v45  ;;  %s612_s12 = sadd.s32 1, %s1070_s12   ;;  %s1070_s12 = sphi %s1295_s12, %s612_s12   ;;  %v1066_v15 = vphi %v1064_v15, %v774_v15  }
 0x12e   : >> { %951 = vmatprep.subr.mxu0 %v1073_v23  ;;  %953 = vmatprep.mubr.msk.f32.mxu0 %vm1074_vm2, %v1073_v23  ;;  %s615_s14 = scalar_lea.vmem [#allocation2], %s903_s13  ;;  %s617_s15 = scalar_lea.vmem [#allocation3], %s903_s13 }
 0x12f   : >> { %956 = vmatprep.subr.mxu1 %v1073_v23  ;;  %958 = vmatprep.mubr.msk.f32.mxu1 %vm1074_vm2, %v1073_v23  ;;  %v772_v29 = vrot.slane %v1066_v15, %v771_v28  ;;  %s775_s18 = scalar_lea.vmem %s259_s11, %s903_s13  ;;  %p609_p4 = scmp.ge.s32.totalorder %s612_s12, 8  }
 0x131   : >> { %v616_v5 = vld [vmem:[%s615_s14] sm:$0xff] }
 0x132   : >> { %952 = vmatpush3.msra.mxu0 %v616_v5 }
 0x133   : >> { %954 = vmatmul.mubr.msk.f32.vlgmr.msra.gmra.mrb[0].mxu0 %vm619_vm3, %v1223_v48  ;;  %v618_v20 = vld [vmem:[%s617_s15] sm:$0xff] }
 0x206   : >> { %v689_v8 = vpop.f32.mrb[0].mxu0 }
 0x207   : >> { %v693_v41 = vsub.f32 0.0, %v689_v8  ;;  %v955_v43 = vpop.f32.mrb[1].mxu0  ;;  %v767_v25 = vmul.f32 1.442695, %v689_v8 }
 0x209   : >> { %v694_v17 = vmul.f32 1.442695, %v693_v41 }
 0x20b   : >> { %1044 = vpow2.f32 %v694_v17 }
 0x20c   : >> { %1046 = vpow2.f32 %v767_v25 }
 0x215   : >> { %v1045_v21 = vpop.eup %1044 }
 0x216   : >> { %v696_v24 = vmul.f32 %v1045_v21, %v618_v20  ;;  %v1047_v33 = vpop.eup %1046 }
 0x218   : >> { %957 = vmatpush3.msra.mxu1 %v696_v24 }
 0x219   : >> { %959 = vmatmul.mubr.msk.f32.vlgmr.msra.gmra.mrb[0].mxu1 %vm619_vm3, %v1223_v48 }
 0x2eb   : > { %611 = sbr.rel (!%p609_p4) target bundleno = 301 (0x12d), region = 92 }
 0x2ec   : >> { %v763_v30 = vpop.f32.mrb[0].mxu1 }
 0x2ed   : >> { %v773_v31 = vadd.f32 %v772_v29, %v763_v30  ;;  %v960_v32 = vpop.f32.mrb[1].mxu1 }
 0x2ef   : >> { %v774_v15 = vmul.f32 %v1047_v33, %v773_v31  }
 0x2f1   : >> { %776 = vst [vmem:[%s775_s18] sm:$0xff] %v774_v15 }
 0x2f2 PF: > { %s17_s21 = sadd.s32 1, %s1062_s21  }
 0x2f3   : > { %p14_p5 = scmp.ge.s32.totalorder %s17_s21, 4  }
 0x2f5   :  { %16 = sbr.rel (!%p14_p5) target bundleno = 1 (0x1), region = 103 }

// kernel: forward.7
= control target key start
LH: loop header
LB: loop body
LE: loop exit
PB: predicated region body
PF: predicated region fallthrough
CT: control target
= control target key end

     0   :  { %s2284_s17 = smov 0   ;;  %s3259_s0 = inlined_call_operand.vmem [shape: f32[2,8,8,128], index: 0, kind: input, shape index: {}]   ;;  %s3260_s1 = inlined_call_operand.vmem [shape: f32[2,64,1], index: 1, kind: input, shape index: {}]   ;;  %s3261_s2 = inlined_call_operand.vmem [shape: f32[2,64,128], index: 2, kind: input, shape index: {}]   ;;  %s3262_s3 = inlined_call_operand.vmem [shape: f32[2,64,128], index: 3, kind: input, shape index: {}]   ;;  %s3263_s4 = inlined_call_operand.vmem [shape: f32[3,3,128], index: 4, kind: input, shape index: {}, may-alias: {4,5,6}]   ;;  %s3264_s5 = inlined_call_operand.vmem [shape: f32[3,3,128], index: 5, kind: input, shape index: {}, may-alias: {4,5,6}]   ;;  %s3265_s6 = inlined_call_operand.vmem [shape: f32[3,3,128], index: 6, kind: input, shape index: {}, may-alias: {4,5,6}]   ;;  %s3266_s7 = inlined_call_operand.vmem [shape: f32[1,128], index: 7, kind: input, shape index: {}, may-alias: {7,8}]   ;;  %s3267_s8 = inlined_call_operand.vmem [shape: f32[1,128], index: 8, kind: input, shape index: {}, may-alias: {7,8}]   ;;  %s3268_s9 = inlined_call_operand.vmem [shape: f32[1,128], index: 9, kind: input, shape index: {}]   ;;  %s3269_s10 = inlined_call_operand.vmem [shape: bf16[128,128], index: 10, kind: input, shape index: {}]   ;;  %s3270_s11 = inlined_call_operand.vmem [shape: f32[2,64,128], index: 11, kind: output, shape index: {}]  }
   0x1 LB: > { %s1975_s18 = sadd.s32 4294967295, %s2221_s17   ;;  %p1979_p0 = scmp.ge.s32.totalorder %s2221_s17, 1  ;;  %s2221_s17 = sphi %s2284_s17, %s21_s17  }
   0x2   : > { %p367_p1 = scmp.lt.s32.totalorder %s2221_s17, 3 }
   0x4   : > { %p368_p2 = pnand %p1979_p0, %p367_p1 }
   0x6   : > { %371 = sbr.rel (%p368_p2) target bundleno = 710 (0x2c6), region = 64 }
   0xd   : > { %p422_p3 = scmp.lt.s32.totalorder %s1975_s18, 1  ;;  %v2223_v0 = vmov 0   ;;  %v2359_v22 = vld [vmem:[%s3263_s4 + $0x9] ss:$0 sm:$0xff]  ;;  %v2364_v26 = vld [vmem:[%s3263_s4 + $0x1] ss:$0 sm:$0xff] }
   0xe   : > { %2152 = vset.pattern.permute.xlu1 %v2223_v0  ;;  %2151 = vset.pattern.permute.xlu0 %v2223_v0  ;;  %3324 = vst [vmem:[#allocation6_spill] sm:$0xff] %v2359_v22  ;;  %3325 = vst [vmem:[#allocation7_spill] sm:$0xff] %v2364_v26  ;;  %v2369_v27 = vld [vmem:[%s3264_s5 + $0x1] ss:$0 sm:$0xff]  ;;  %v2374_v31 = vld [vmem:[%s3263_s4 + $0x5] ss:$0 sm:$0xff] }
   0xf   : > { %s3448_s18 = smov (!%p422_p3, %s1975_s18), 1  ;;  %3326 = vst [vmem:[#allocation8_spill] sm:$0xff] %v2369_v27  ;;  %3327 = vst [vmem:[#allocation9_spill] sm:$0xff] %v2374_v31  ;;  %v2379_v32 = vld [vmem:[%s3264_s5 + $0x5] ss:$0 sm:$0xff] }
  0x10   : > { %s2292_s19 = sshll.u32 %s3448_s18, 6  ;;  %3328 = vst [vmem:[#allocation10_spill] sm:$0xff] %v2379_v32  ;;  %v2384_v39 = vld [vmem:[%s3263_s4] ss:$0 sm:$0xff]  ;;  %v2425_v58 = vld [vmem:[%s3264_s5 + $0x9] ss:$0 sm:$0xff] }
  0x11   : > { %s2298_s22 = scalar_lea.vmem %s3260_s1, %s2292_s19  ;;  %s2304_s25 = scalar_lea.vmem %s3259_s0, %s2292_s19  ;;  %3329 = vst [vmem:[#allocation11_spill] sm:$0xff] %v2425_v58  ;;  %v2430_v59 = vld [vmem:[%s3265_s6 + $0x1] ss:$0 sm:$0xff]  ;;  %v2449_v0 = vld [vmem:[%s3265_s6 + $0x5] ss:$0 sm:$0xff] }
  0x12   : > { %v1477_v1 = vld [vmem:[%s2298_s22 + $0x20] sm:$0xff]  ;;  %v2308_v2 = vld [vmem:[%s2304_s25 + $0x8] sm:$0xff]  ;;  %v2311_v3 = vld [vmem:[%s2304_s25 + $0x10] sm:$0xff]  ;;  %3330 = vst [vmem:[#allocation12_spill] sm:$0xff] %v2430_v59  ;;  %s3075_s16 = scalar_lea.vmem %s3261_s2, %s2292_s19  ;;  %s441_s28 = scalar_lea.vmem %s3262_s3, %s2292_s19 }
  0x13   : > { %3321 = vst [vmem:[#allocation3_spill] sm:$0xff] %v2308_v2  ;;  %1503 = vperm.xlu1 %2152, %v1477_v1   ;;  %v2314_v4 = vld [vmem:[%s2304_s25 + $0x18] sm:$0xff]  ;;  %v2317_v5 = vld [vmem:[%s2304_s25 + $0x28] sm:$0xff]  ;;  %v2320_v6 = vld [vmem:[%s2304_s25 + $0x30] sm:$0xff]  ;;  %v2388_v40 = vmul.f32 %v2369_v27, %v2308_v2  ;;  %v2394_v45 = vmul.f32 %v2359_v22, %v2308_v2  ;;  %v2398_v49 = vmul.f32 %v2369_v27, %v2311_v3 }
  0x14   : > { %3322 = vst [vmem:[#allocation4_spill] sm:$0xff] %v2314_v4  ;;  %3323 = vst [vmem:[#allocation5_spill] sm:$0xff] %v2320_v6  ;;  %v2325_v7 = vld [vmem:[%s2304_s25 + $0x38] sm:$0xff]  ;;  %v2331_v8 = vld [vmem:[%s2304_s25] sm:$0xff]  ;;  %v742_v44 = vmul.f32 %v2364_v26, %v2314_v4  ;;  %v2402_v50 = vmul.f32 %v2374_v31, %v2308_v2  ;;  %v2408_v54 = vmul.f32 %v2359_v22, %v2317_v5 }
  0x15   : > { %458 = vst [vmem:[#allocation2 + $0x95] sm:$0xff] %v2308_v2  ;;  %459 = vst [vmem:[#allocation2 + $0xad] sm:$0xff] %v2311_v3  ;;  %v1473_v9 = vld [vmem:[%s2298_s22] sm:$0xff]  ;;  %v1478_v10 = vld [vmem:[%s2298_s22 + $0x28] sm:$0xff]  ;;  %v2412_v55 = vmul.f32 %v2364_v26, %v2331_v8  ;;  %v2416_v56 = vmul.f32 %v2374_v31, %v2317_v5  ;;  %v2420_v57 = vmul.f32 %v2359_v22, %v2320_v6 }
  0x16   : > { %460 = vst [vmem:[#allocation2 + $0xc5] sm:$0xff] %v2314_v4  ;;  %462 = vst [vmem:[#allocation2 + $0xf5] sm:$0xff] %v2317_v5  ;;  %1483 = vperm.xlu0 %2151, %v1473_v9   ;;  %v1474_v11 = vld [vmem:[%s2298_s22 + $0x8] sm:$0xff]  ;;  %v1476_v12 = vld [vmem:[%s2298_s22 + $0x18] sm:$0xff]  ;;  %v2436_v61 = vmul.f32 %v2374_v31, %v2331_v8  ;;  %v2440_v62 = vmul.f32 %v2369_v27, %v2331_v8  ;;  %v2444_v63 = vmul.f32 %v2379_v32, %v2331_v8 }
  0x17   : > { %463 = vst [vmem:[#allocation2 + $0x10d] sm:$0xff] %v2320_v6  ;;  %464 = vst [vmem:[#allocation2 + $0x125] sm:$0xff] %v2325_v7  ;;  %1508 = vperm.xlu1 %2152, %v1478_v10   ;;  %v1475_v13 = vld [vmem:[%s2298_s22 + $0x10] sm:$0xff]  ;;  %v1480_v14 = vld [vmem:[%s2298_s22 + $0x38] sm:$0xff]  ;;  %v2453_v1 = vmul.f32 %v2379_v32, %v2317_v5  ;;  %v2457_v9 = vmul.f32 %v2359_v22, %v2311_v3  ;;  %v2461_v10 = vmul.f32 %v2379_v32, %v2308_v2 }
  0x18   : > { %466 = vst [vmem:[#allocation2 + $0x5] sm:$0xff] %v2331_v8  ;;  %467 = vst [vmem:[#allocation2 + $0x1d] sm:$0xff] %v2331_v8  ;;  %v2352_v15 = vld [vmem:[%s2304_s25 + $0x20] sm:$0xff]  ;;  %v1479_v18 = vld [vmem:[%s2298_s22 + $0x30] sm:$0xff] }
  0x19   : > { %468 = vst [vmem:[#allocation2 + $0x35] sm:$0xff] %v2331_v8  ;;  %469 = vst [vmem:[#allocation2 + $0x4d] sm:$0xff] %v2331_v8  ;;  %v2608_v2 = vld [vmem:[%s3264_s5 + $0xa] ss:$0 sm:$0xff] }
  0x1a   : > { %470 = vst [vmem:[#allocation2 + $0x65] sm:$0xff] %v2331_v8  ;;  %474 = vst [vmem:[#allocation2 + $0x13d] sm:$0xff] %v2325_v7  ;;  %1488 = vperm.xlu0 %2151, %v1474_v11   ;;  %v2465_v11 = vmul.f32 %v2364_v26, %v2311_v3  ;;  %v2485_v3 = vmul.f32 %v2374_v31, %v2314_v4 }
  0x1b   : > { %475 = vst [vmem:[#allocation2 + $0x155] sm:$0xff] %v2325_v7  ;;  %476 = vst [vmem:[#allocation2 + $0x16d] sm:$0xff] %v2325_v7  ;;  %1498 = vperm.xlu1 %2152, %v1476_v12   ;;  %v2470_v12 = vld [vmem:[%s3263_s4 + $0x2] ss:$0 sm:$0xff] }
  0x1c   : > { %477 = vst [vmem:[#allocation2 + $0x185] sm:$0xff] %v2325_v7  ;;  %478 = vst [vmem:[#allocation2 + $0x19d] sm:$0xff] %v2325_v7  ;;  %v1997_v16 = vld [vmem:[#allocation2 + $0x95] ss:$0 sm:$0xff]  ;;  %v2015_v25 = vld [vmem:[#allocation2 + $0x9c] ss:$0 sm:$0xff] }
  0x1d   : > { %457 = vst [vmem:[#allocation2 + $0x7d] sm:$0xff] %v2331_v8  ;;  %v1999_v17 = vld [vmem:[#allocation2 + $0xc5] ss:$0 sm:$0xff]  ;;  %461 = vst [vmem:[#allocation2 + $0xdd] sm:$0xff] %v2352_v15  ;;  %v2001_v20 = vld [vmem:[#allocation2 + $0xf5] ss:$0 sm:$0xff] }
  0x1e   : > { %v2003_v21 = vld [vmem:[#allocation2 + $0x125] ss:$0 sm:$0xff]  ;;  %593 = vst [vmem:[#allocation2 + $0x90] sm:$0x1f] %v1997_v16  ;;  %595 = vst [vmem:[#allocation2 + $0xc0] sm:$0x1f] %v1999_v17  ;;  %1493 = vperm.xlu0 %2151, %v1475_v13   ;;  %v2481_v17 = vmul.f32 %v2425_v58, %v2325_v7 }
  0x1f   : > { %597 = vst [vmem:[#allocation2 + $0xf0] sm:$0x1f] %v2001_v20  ;;  %599 = vst [vmem:[#allocation2 + $0x120] sm:$0x1f] %v2003_v21  ;;  %v2017_v28 = vld [vmem:[#allocation2 + $0xcc] ss:$0 sm:$0xff]  ;;  %1518 = vperm.xlu1 %2152, %v1480_v14   ;;  %v2500_v21 = vmul.f32 %v2430_v59, %v2331_v8 }
  0x20   : > { %v2019_v29 = vld [vmem:[#allocation2 + $0xfc] ss:$0 sm:$0xff]  ;;  %v2021_v30 = vld [vmem:[#allocation2 + $0x12c] ss:$0 sm:$0xff]  ;;  %683 = vst [vmem:[#allocation2 + $0x9d] sm:$0x1f] %v2015_v25  ;;  %v2508_v25 = vmul.f32 %v2425_v58, %v2320_v6 }
  0x21   : > { %v1995_v19 = vld [vmem:[#allocation2 + $0x65] ss:$0 sm:$0xff]  ;;  %v2013_v24 = vld [vmem:[#allocation2 + $0x6c] ss:$0 sm:$0xff]  ;;  %685 = vst [vmem:[#allocation2 + $0xcd] sm:$0x1f] %v2017_v28 }
  0x22   : > { %v2005_v23 = vld [vmem:[#allocation2 + $0x155] ss:$0 sm:$0xff]  ;;  %591 = vst [vmem:[#allocation2 + $0x60] sm:$0x1f] %v1995_v19  ;;  %681 = vst [vmem:[#allocation2 + $0x6d] sm:$0x1f] %v2013_v24  ;;  %1513 = vperm.xlu0 %2151, %v1479_v18   ;;  %v2489_v18 = vmul.f32 %v2379_v32, %v2314_v4  ;;  %v2504_v24 = vmul.f32 %v2425_v58, %v2314_v4 }
  0x23   : > { %601 = vst [vmem:[#allocation2 + $0x150] sm:$0x1f] %v2005_v23  ;;  %v2023_v33 = vld [vmem:[#allocation2 + $0x15c] ss:$0 sm:$0xff]  ;;  %687 = vst [vmem:[#allocation2 + $0xfd] sm:$0x1f] %v2019_v29 }
  0x24   : > { %689 = vst [vmem:[#allocation2 + $0x12d] sm:$0x1f] %v2021_v30  ;;  %v1991_v34 = vld [vmem:[#allocation2 + $0x5] ss:$0 sm:$0xff]  ;;  %v1993_v35 = vld [vmem:[#allocation2 + $0x35] ss:$0 sm:$0xff] }
  0x25   : > { %691 = vst [vmem:[#allocation2 + $0x15d] sm:$0x1f] %v2023_v33  ;;  %v1996_v36 = vld [vmem:[#allocation2 + $0x7d] ss:$0 sm:$0xff]  ;;  %v2009_v37 = vld [vmem:[#allocation2 + $0xc] ss:$0 sm:$0xff] }
  0x26   : > { %v2011_v38 = vld [vmem:[#allocation2 + $0x3c] ss:$0 sm:$0xff]  ;;  %587 = vst [vmem:[#allocation2] sm:$0x1f] %v1991_v34  ;;  %589 = vst [vmem:[#allocation2 + $0x30] sm:$0x1f] %v1993_v35  ;;  %v2519_v34 = vmul.f32 %v2449_v0, %v2331_v8  ;;  %v2523_v35 = vmul.f32 %v2449_v0, %v2317_v5  ;;  %v2539_v8 = vmul.f32 %v2379_v32, %v2352_v15 }
  0x27   : > { %v2014_v41 = vld [vmem:[#allocation2 + $0x84] ss:$0 sm:$0xff]  ;;  %592 = vst [vmem:[#allocation2 + $0x78] sm:$0x1f] %v1996_v36  ;;  %677 = vst [vmem:[#allocation2 + $0xd] sm:$0x1f] %v2009_v37  ;;  %v830_v37 = vmul.f32 %v2374_v31, %v2352_v15 }
  0x28   : > { %679 = vst [vmem:[#allocation2 + $0x3d] sm:$0x1f] %v2011_v38  ;;  %v1998_v42 = vld [vmem:[#allocation2 + $0xad] ss:$0 sm:$0xff]  ;;  %682 = vst [vmem:[#allocation2 + $0x85] sm:$0x1f] %v2014_v41 }
  0x29   : > { %v2002_v43 = vld [vmem:[#allocation2 + $0x10d] ss:$0 sm:$0xff]  ;;  %v2004_v46 = vld [vmem:[#allocation2 + $0x13d] ss:$0 sm:$0xff]  ;;  %v2016_v48 = vld [vmem:[#allocation2 + $0xb4] ss:$0 sm:$0xff] }
  0x2a   : > { %v2006_v47 = vld [vmem:[#allocation2 + $0x16d] ss:$0 sm:$0xff]  ;;  %594 = vst [vmem:[#allocation2 + $0xa8] sm:$0x1f] %v1998_v42  ;;  %598 = vst [vmem:[#allocation2 + $0x108] sm:$0x1f] %v2002_v43 }
  0x2b   : > { %v2000_v51 = vld [vmem:[#allocation2 + $0xdd] ss:$0 sm:$0xff]  ;;  %v2018_v52 = vld [vmem:[#allocation2 + $0xe4] ss:$0 sm:$0xff]  ;;  %600 = vst [vmem:[#allocation2 + $0x138] sm:$0x1f] %v2004_v46 }
  0x2c   : > { %v2404_v53 = vld [vmem:[#allocation2 + $0xc4] sm:$0xff]  ;;  %602 = vst [vmem:[#allocation2 + $0x168] sm:$0x1f] %v2006_v47  ;;  %684 = vst [vmem:[#allocation2 + $0xb5] sm:$0x1f] %v2016_v48  ;;  %v878_v43 = vld [vmem:[#allocation2 + $0xf4] sm:$0xff]  ;;  %v2550_v47 = vmul.f32 %v2449_v0, %v2352_v15 }
  0x2d   : > { %596 = vst [vmem:[#allocation2 + $0xd8] sm:$0x1f] %v2000_v51  ;;  %686 = vst [vmem:[#allocation2 + $0xe5] sm:$0x1f] %v2018_v52  ;;  %v713_v60 = vmul.f32 %v2384_v39, %v2404_v53  ;;  %v2475_v13 = vld [vmem:[%s3265_s6 + $0x9] ss:$0 sm:$0xff] }
  0x2e   : > { %3331 = vst [vmem:[#allocation13_spill] sm:$0xff] %v2449_v0  ;;  %3332 = vst [vmem:[#allocation14_spill] sm:$0xff] %v2453_v1  ;;  %v2477_v16 = vld [vmem:[#allocation2 + $0xc6] sm:$0xff]  ;;  %v2494_v19 = vld [vmem:[%s3263_s4 + $0x4] ss:$0 sm:$0xff]  ;;  %v2512_v28 = vmul.f32 %v2475_v13, %v2325_v7  ;;  %v2544_v41 = vmul.f32 %v2475_v13, %v2317_v5 }
  0x2f   : > { %3333 = vst [vmem:[#allocation15_spill] sm:$0xff] %v2461_v10  ;;  %3334 = vst [vmem:[#allocation16_spill] sm:$0xff] %v2475_v13  ;;  %v750_v14 = vadd.f32 %v742_v44, %v713_v60  ;;  %v771_v20 = vmul.f32 %v2470_v12, %v2477_v16  ;;  %v697_v23 = vld [vmem:[#allocation2 + $0x64] sm:$0xff]  ;;  %v2515_v33 = vld [vmem:[#allocation2 + $0x7c] sm:$0xff] }
  0x30   : > { %3335 = vst [vmem:[#allocation17_spill] sm:$0xff] %v2477_v16  ;;  %3336 = vst [vmem:[#allocation18_spill] sm:$0xff] %v2481_v17  ;;  %v709_v29 = vmul.f32 %v2384_v39, %v697_v23  ;;  %v755_v30 = vld [vmem:[#allocation2 + $0x66] sm:$0xff]  ;;  %v2546_v44 = vld [vmem:[#allocation2 + $0x92] sm:$0xff]  ;;  %v797_v51 = vmul.f32 %v2494_v19, %v2515_v33  ;;  %v2575_v23 = vmul.f32 %v2494_v19, %v2404_v53 }
  0x31   : > { %3337 = vst [vmem:[#allocation19_spill] sm:$0xff] %v2485_v3  ;;  %3338 = vst [vmem:[#allocation20_spill] sm:$0xff] %v2489_v18  ;;  %v2528_v36 = vld [vmem:[%s3263_s4 + $0x6] ss:$0 sm:$0xff]  ;;  %v2533_v7 = vld [vmem:[%s3263_s4 + $0x8] ss:$0 sm:$0xff]  ;;  %v767_v38 = vmul.f32 %v2470_v12, %v755_v30  ;;  %v779_v42 = vadd.f32 %v771_v20, %v750_v14  ;;  %v743_v14 = vmul.f32 %v2364_v26, %v2352_v15 }
  0x32   : > { %3339 = vst [vmem:[#allocation21_spill] sm:$0xff] %v2500_v21  ;;  %3340 = vst [vmem:[#allocation22_spill] sm:$0xff] %v2504_v24  ;;  %v1135_v46 = vld [vmem:[#allocation2 + $0x122] sm:$0xff]  ;;  %v746_v48 = vadd.f32 %v2412_v55, %v709_v29  ;;  %v2558_v52 = vld [vmem:[%s3264_s5] ss:$0 sm:$0xff]  ;;  %v2571_v20 = vmul.f32 %v2425_v58, %v2352_v15  ;;  %v2579_v29 = vmul.f32 %v2359_v22, %v2352_v15 }
  0x33   : > { %3341 = vst [vmem:[#allocation23_spill] sm:$0xff] %v2508_v25  ;;  %3342 = vst [vmem:[#allocation24_spill] sm:$0xff] %v2512_v28  ;;  %v2563_v5 = vld [vmem:[%s3264_s5 + $0x8] ss:$0 sm:$0xff]  ;;  %v2584_v30 = vld [vmem:[%s3263_s4 + $0xa] ss:$0 sm:$0xff]  ;;  %v890_v15 = vmul.f32 %v2533_v7, %v878_v43  ;;  %v2603_v0 = vmul.f32 %v2533_v7, %v2404_v53 }
  0x34   : > { %3343 = vst [vmem:[#allocation25_spill] sm:$0xff] %v2519_v34  ;;  %3344 = vst [vmem:[#allocation26_spill] sm:$0xff] %v2523_v35  ;;  %v2565_v60 = vld [vmem:[#allocation2 + $0xdc] sm:$0xff]  ;;  %v1280_v6 = vld [vmem:[#allocation2 + $0x6a] sm:$0xff]  ;;  %v775_v25 = vadd.f32 %v767_v38, %v746_v48  ;;  %v2614_v35 = vmul.f32 %v2558_v52, %v2546_v44  ;;  %v2624_v48 = vmul.f32 %v2494_v19, %v878_v43 }
  0x35   : > { %3345 = vst [vmem:[#allocation27_spill] sm:$0xff] %v2544_v41  ;;  %3346 = vst [vmem:[#allocation28_spill] sm:$0xff] %v2550_v47  ;;  %v2589_v59 = vld [vmem:[%s3264_s5 + $0x2] ss:$0 sm:$0xff]  ;;  %v2594_v58 = vld [vmem:[%s3265_s6] ss:$0 sm:$0xff]  ;;  %v801_v4 = vmul.f32 %v2494_v19, %v2565_v60  ;;  %v2617_v41 = vmul.f32 %v2563_v5, %v1135_v46  ;;  %v714_v53 = vmul.f32 %v2384_v39, %v2565_v60 }
  0x36   : > { %3347 = vst [vmem:[#allocation29_spill] sm:$0xff] %v2565_v60  ;;  %3348 = vst [vmem:[#allocation30_spill] sm:$0xff] %v2571_v20  ;;  %v2599_v32 = vld [vmem:[#allocation2 + $0x98] sm:$0xff]  ;;  %v1222_v13 = vld [vmem:[#allocation2 + $0x60] sm:$0xff]  ;;  %v805_v34 = vadd.f32 %v797_v51, %v775_v25 }
  0x37   : > { %3349 = vst [vmem:[#allocation31_spill] sm:$0xff] %v2575_v23  ;;  %3350 = vst [vmem:[#allocation32_spill] sm:$0xff] %v2579_v29  ;;  %v2610_v27 = vld [vmem:[#allocation2 + $0xde] sm:$0xff]  ;;  %v1193_v28 = vld [vmem:[#allocation2 + $0x128] sm:$0xff]  ;;  %v2653_v25 = vmul.f32 %v2594_v58, %v1222_v13 }
  0x38   : > { %3351 = vst [vmem:[#allocation33_spill] sm:$0xff] %v2599_v32  ;;  %3352 = vst [vmem:[#allocation34_spill] sm:$0xff] %v2603_v0  ;;  %v2619_v38 = vld [vmem:[#allocation2 + $0x7e] sm:$0xff]  ;;  %v809_v0 = vadd.f32 %v801_v4, %v779_v42  ;;  %v859_v22 = vmul.f32 %v2528_v36, %v2610_v27  ;;  %v936_v46 = vld [vmem:[#allocation2 + $0xf6] sm:$0xff]  ;;  %v2650_v42 = vmul.f32 %v2589_v59, %v2599_v32 }
  0x39   : > { %3353 = vst [vmem:[#allocation35_spill] sm:$0xff] %v2610_v27  ;;  %3354 = vst [vmem:[#allocation36_spill] sm:$0xff] %v2617_v41  ;;  %v2629_v18 = vld [vmem:[%s3265_s6 + $0x2] ss:$0 sm:$0xff]  ;;  %v1391_v20 = vld [vmem:[#allocation2 + $0x150] sm:$0xff]  ;;  %v855_v47 = vmul.f32 %v2528_v36, %v2619_v38  ;;  %v2646_v4 = vmul.f32 %v2584_v30, %v936_v46  ;;  %v2661_v1 = vmul.f32 %v2608_v2, %v1193_v28 }
  0x3a   : > { %v2638_v43 = vld [vmem:[%s3264_s5 + $0x4] ss:$0 sm:$0xff]  ;;  %v2643_v31 = vld [vmem:[%s3264_s5 + $0x6] ss:$0 sm:$0xff]  ;;  %3356 = vst [vmem:[#allocation38_spill] sm:$0xff] %v2653_v25  ;;  %v2656_v51 = vmul.f32 %v2629_v18, %v1280_v6  ;;  %v2658_v10 = vld [vmem:[#allocation2 + $0x94] sm:$0xff]  ;;  %v838_v26 = vadd.f32 %v830_v37, %v809_v0  ;;  %v834_v24 = vadd.f32 %v2436_v61, %v805_v34  ;;  %v751_v28 = vadd.f32 %v743_v14, %v714_v53 }
  0x3b   : > { %3355 = vst [vmem:[#allocation37_spill] sm:$0xff] %v2638_v43  ;;  %v962_v21 = vld [vmem:[#allocation2 + $0x32] sm:$0xff]  ;;  %3358 = vst [vmem:[#allocation40_spill] sm:$0xff] %v2661_v1  ;;  %v886_v32 = vmul.f32 %v2533_v7, %v2658_v10  ;;  %v2022_v60 = vld [vmem:[#allocation2 + $0x144] ss:$0 sm:$0xff]  ;;  %v772_v61 = vmul.f32 %v2470_v12, %v2610_v27  ;;  %v860_v34 = vmul.f32 %v2528_v36, %v936_v46 }
  0x3c   : > { %3357 = vst [vmem:[#allocation39_spill] sm:$0xff] %v2656_v51  ;;  %v2020_v29 = vld [vmem:[#allocation2 + $0x114] ss:$0 sm:$0xff]  ;;  %v1020_v17 = vld [vmem:[#allocation2 + $0x38] sm:$0xff]  ;;  %v2669_v6 = vld [vmem:[%s3265_s6 + $0x8] ss:$0 sm:$0xff]  ;;  %v710_v37 = vmul.f32 %v2384_v39, %v2515_v33  ;;  %v863_v41 = vadd.f32 %v855_v47, %v834_v24  ;;  %v2691_v14 = vmul.f32 %v2638_v43, %v2546_v44  ;;  %v974_v33 = vmul.f32 %v2558_v52, %v962_v21 }
  0x3d   : > { %v2024_v13 = vld [vmem:[#allocation2 + $0x174] ss:$0 sm:$0xff]  ;;  %688 = vst [vmem:[#allocation2 + $0x115] sm:$0x1f] %v2020_v29  ;;  %3359 = vst [vmem:[#allocation41_spill] sm:$0xff] %v2669_v6  ;;  %v2671_v51 = vld [vmem:[#allocation2 + $0x7a] sm:$0xff]  ;;  %v867_v29 = vadd.f32 %v859_v22, %v838_v26  ;;  %v2685_v3 = vmul.f32 %v2669_v6, %v1391_v20  ;;  %v2697_v22 = vmul.f32 %v2589_v59, %v1020_v17 }
  0x3e   : > { %3360 = vst [vmem:[#allocation42_spill] sm:$0xff] %v2671_v51  ;;  %v2673_v0 = vld [vmem:[#allocation2 + $0x80] sm:$0xff]  ;;  %690 = vst [vmem:[#allocation2 + $0x145] sm:$0x1f] %v2022_v60  ;;  %v2687_v60 = vld [vmem:[#allocation2 + $0x96] sm:$0xff]  ;;  %v780_v26 = vadd.f32 %v772_v61, %v751_v28  ;;  %v2706_v27 = vmul.f32 %v2638_v43, %v2671_v51  ;;  %v798_v16 = vmul.f32 %v2494_v19, %v2658_v10 }
  0x3f   : > { %3361 = vst [vmem:[#allocation43_spill] sm:$0xff] %v2673_v0  ;;  %692 = vst [vmem:[#allocation2 + $0x175] sm:$0x1f] %v2024_v13  ;;  %v2680_v25 = vld [vmem:[#allocation2 + $0xda] sm:$0xff]  ;;  %v944_v53 = vmul.f32 %v2584_v30, %v2687_v60  ;;  %v1994_v13 = vld [vmem:[#allocation2 + $0x4d] ss:$0 sm:$0xff]  ;;  %v898_v47 = vadd.f32 %v890_v15, %v867_v29  ;;  %v2710_v17 = vmul.f32 %v2643_v31, %v2673_v0 }
  0x40   : > { %3362 = vst [vmem:[#allocation44_spill] sm:$0xff] %v2680_v25  ;;  %v2682_v1 = vld [vmem:[#allocation2 + $0xe0] sm:$0xff]  ;;  %3364 = vst [vmem:[#allocation46_spill] sm:$0xff] %v2685_v3  ;;  %v1992_v46 = vld [vmem:[#allocation2 + $0x1d] ss:$0 sm:$0xff]  ;;  %v810_v29 = vadd.f32 %v2624_v48, %v780_v26 }
  0x41   : > { %3363 = vst [vmem:[#allocation45_spill] sm:$0xff] %v2682_v1  ;;  %3365 = vst [vmem:[#allocation47_spill] sm:$0xff] %v2691_v14  ;;  %v2010_v20 = vld [vmem:[#allocation2 + $0x24] ss:$0 sm:$0xff]  ;;  %v1310_v44 = vld [vmem:[#allocation2 + $0xd8] sm:$0xff]  ;;  %v894_v14 = vadd.f32 %v886_v32, %v863_v41  ;;  %v1066_v32 = vmul.f32 %v2638_v43, %v2680_v25  ;;  %v2721_v41 = vmul.f32 %v2643_v31, %v2682_v1 }
  0x42   : > { %v2702_v24 = vld [vmem:[%s3265_s6 + $0x4] ss:$0 sm:$0xff]  ;;  %v2012_v21 = vld [vmem:[#allocation2 + $0x54] ss:$0 sm:$0xff]  ;;  %588 = vst [vmem:[#allocation2 + $0x18] sm:$0x1f] %v1992_v46  ;;  %v747_v46 = vadd.f32 %v2412_v55, %v710_v37  ;;  %v768_v1 = vmul.f32 %v2470_v12, %v2619_v38 }
  0x43   : > { %v1360_v3 = vld [vmem:[#allocation2 + $0xe2] sm:$0xff]  ;;  %590 = vst [vmem:[#allocation2 + $0x48] sm:$0x1f] %v1994_v13  ;;  %678 = vst [vmem:[#allocation2 + $0x25] sm:$0x1f] %v2010_v20  ;;  %v927_v13 = vadd.f32 %v2408_v54, %v898_v47  ;;  %v923_v20 = vadd.f32 %v2394_v45, %v894_v14  ;;  %v1276_v51 = vld [vmem:[#allocation2 + $0xa] sm:$0xff]  ;;  %v2738_v23 = vmul.f32 %v2702_v24, %v1310_v44 }
  0x44   : > { %v2715_v28 = vld [vmem:[%s3265_s6 + $0x6] ss:$0 sm:$0xff]  ;;  %v2725_v61 = vld [vmem:[#allocation2 + $0xc8] sm:$0xff]  ;;  %680 = vst [vmem:[#allocation2 + $0x55] sm:$0x1f] %v2012_v21  ;;  %v839_v54 = vadd.f32 %v2416_v56, %v810_v29  ;;  %v776_v14 = vadd.f32 %v768_v1, %v747_v46  ;;  %v2759_v56 = vmul.f32 %v2629_v18, %v1276_v51  ;;  %v1306_v47 = vld [vmem:[#allocation2 + $0x78] sm:$0xff]  ;;  %v856_v46 = vmul.f32 %v2528_v36, %v2687_v60 }
  0x45   : > { %v2723_v15 = vld [vmem:[#allocation2 + $0xc2] sm:$0xff]  ;;  %3366 = vst [vmem:[#allocation48_spill] sm:$0xff] %v2725_v61  ;;  %v2731_v25 = vld [vmem:[#allocation2 + $0x10c] sm:$0xff]  ;;  %v2741_v48 = vmul.f32 %v2715_v28, %v1360_v3  ;;  %v956_v55 = vadd.f32 %v2646_v4, %v927_v13  ;;  %v952_v37 = vadd.f32 %v944_v53, %v923_v20  ;;  %v2753_v26 = vmul.f32 %v2608_v2, %v2725_v61  ;;  %v2802_v61 = vld [vmem:[#allocation2 + $0xf8] sm:$0xff] }
  0x46   : > { %v1218_v0 = vld [vmem:[#allocation2] sm:$0xff]  ;;  %3367 = vst [vmem:[#allocation49_spill] sm:$0xff] %v2731_v25  ;;  %v891_v45 = vmul.f32 %v2533_v7, %v2731_v25  ;;  %v2749_v38 = vmul.f32 %v2563_v5, %v2723_v15  ;;  %v868_v44 = vadd.f32 %v860_v34, %v839_v54  ;;  %v2762_v29 = vld [vmem:[#allocation2 + $0x10e] sm:$0xff]  ;;  %v806_v1 = vadd.f32 %v798_v16, %v776_v14 }
  0x47   : > { %3368 = vst [vmem:[#allocation50_spill] sm:$0xff] %v2741_v48  ;;  %v2756_v3 = vmul.f32 %v2594_v58, %v1218_v0  ;;  %v986_v4 = vadd.f32 %v2614_v35, %v956_v55  ;;  %v982_v53 = vadd.f32 %v974_v33, %v952_v37  ;;  %v1356_v21 = vld [vmem:[#allocation2 + $0x82] sm:$0xff]  ;;  %3369 = vst [vmem:[#allocation51_spill] sm:$0xff] %v2762_v29  ;;  %v2764_v13 = vld [vmem:[#allocation2 + $0xaa] sm:$0xff] }
  0x48   : > { %3370 = vst [vmem:[#allocation52_spill] sm:$0xff] %v2764_v13  ;;  %v2769_v0 = vmul.f32 %v2702_v24, %v1306_v47  ;;  %v2772_v51 = vmul.f32 %v2715_v28, %v1356_v21  ;;  %v899_v20 = vadd.f32 %v891_v45, %v868_v44  ;;  %v949_v35 = vmul.f32 %v2584_v30, %v2762_v29  ;;  %v2776_v34 = vld [vmem:[#allocation2 + $0xb0] sm:$0xff]  ;;  %v2813_v48 = vld [vmem:[#allocation2 + $0xfa] sm:$0xff] }
  0x49   : > { %3372 = vst [vmem:[#allocation54_spill] sm:$0xff] %v2776_v34  ;;  %v2778_v33 = vld [vmem:[#allocation2 + $0xac] sm:$0xff]  ;;  %v1015_v54 = vadd.f32 %v2388_v40, %v986_v4  ;;  %v1011_v16 = vadd.f32 %v2440_v62, %v982_v53  ;;  %v835_v14 = vadd.f32 %v2402_v50, %v806_v1  ;;  %v979_v29 = vmul.f32 %v2558_v52, %v2764_v13 }
  0x4a   : > { %3371 = vst [vmem:[#allocation53_spill] sm:$0xff] %v2772_v51  ;;  %v1387_v55 = vld [vmem:[#allocation2 + $0xf0] sm:$0xff]  ;;  %v887_v25 = vmul.f32 %v2533_v7, %v2778_v33  ;;  %v928_v44 = vadd.f32 %v2420_v57, %v899_v20  ;;  %v2794_v40 = vmul.f32 %v2594_v58, %v1306_v47  ;;  %v1037_v1 = vmul.f32 %v2589_v59, %v2776_v34 }
  0x4b   : > { %v2782_v37 = vld [vmem:[#allocation2 + $0xf2] sm:$0xff]  ;;  %v2788_v45 = vmul.f32 %v2669_v6, %v1387_v55  ;;  %v1044_v53 = vadd.f32 %v2650_v42, %v1015_v54  ;;  %v1040_v50 = vadd.f32 %v2697_v22, %v1011_v16  ;;  %v864_v51 = vadd.f32 %v856_v46, %v835_v14  ;;  %v963_v13 = vld [vmem:[#allocation2 + $0x4a] sm:$0xff]  ;;  %3375 = vst [vmem:[#allocation57_spill] sm:$0xff] %v2813_v48 }
  0x4c   : > { %3373 = vst [vmem:[#allocation55_spill] sm:$0xff] %v2782_v37  ;;  %v2796_v4 = vld [vmem:[#allocation2 + $0xae] sm:$0xff]  ;;  %v957_v57 = vadd.f32 %v949_v35, %v928_v44  ;;  %v1067_v20 = vmul.f32 %v2638_v43, %v2782_v37  ;;  %v712_v42 = vmul.f32 %v2384_v39, %v2778_v33  ;;  %v1117_v35 = vmul.f32 %v2643_v31, %v2802_v61  ;;  %v2008_v37 = vld [vmem:[#allocation2 + $0x19d] ss:$0 sm:$0xff] }
  0x4d   : > { %3374 = vst [vmem:[#allocation56_spill] sm:$0xff] %v2788_v45  ;;  %v1136_v45 = vld [vmem:[#allocation2 + $0x13a] sm:$0xff]  ;;  %v945_v47 = vmul.f32 %v2584_v30, %v2796_v4  ;;  %v1074_v54 = vadd.f32 %v1066_v32, %v1044_v53  ;;  %v1070_v22 = vadd.f32 %v2706_v27, %v1040_v50  ;;  %v895_v16 = vadd.f32 %v887_v25, %v864_v51  ;;  %v1392_v27 = vld [vmem:[#allocation2 + $0x168] sm:$0xff]  ;;  %v2026_v53 = vld [vmem:[#allocation2 + $0x1a4] ss:$0 sm:$0xff] }
  0x4e   : > { %v770_v34 = vmul.f32 %v2470_v12, %v2796_v4  ;;  %v987_v46 = vadd.f32 %v979_v29, %v957_v57  ;;  %v1148_v14 = vmul.f32 %v2563_v5, %v1136_v45  ;;  %v749_v44 = vadd.f32 %v2465_v11, %v712_v42  ;;  %604 = vst [vmem:[#allocation2 + $0x198] sm:$0x1f] %v2008_v37  ;;  %v1021_v11 = vld [vmem:[#allocation2 + $0x50] sm:$0xff] }
  0x4f   : > { %v1095_v43 = vadd.f32 %v2539_v8, %v1074_v54  ;;  %v1091_v32 = vadd.f32 %v2444_v63, %v1070_v22  ;;  %v924_v25 = vadd.f32 %v2457_v9, %v895_v16  ;;  %v975_v51 = vmul.f32 %v2558_v52, %v963_v13  ;;  %694 = vst [vmem:[#allocation2 + $0x1a5] sm:$0x1f] %v2026_v53  ;;  %v1194_v9 = vld [vmem:[#allocation2 + $0x140] sm:$0xff]  ;;  %v3376_v42 = vld [vmem:[#allocation31_spill] sm:$0xff]  ;;  %v3378_v22 = vld [vmem:[#allocation36_spill] sm:$0xff] }
  0x50   : > { %v1016_v29 = vadd.f32 %v2398_v49, %v987_v46  ;;  %v2825_v50 = vmul.f32 %v2629_v18, %v1356_v21  ;;  %v2828_v45 = vmul.f32 %v2702_v24, %v1387_v55  ;;  %v778_v57 = vadd.f32 %v770_v34, %v749_v44  ;;  %v3377_v54 = vld [vmem:[#allocation17_spill] sm:$0xff]  ;;  %v2025_v53 = vld [vmem:[#allocation2 + $0x18c] ss:$0 sm:$0xff] }
  0x51   : > { %v1124_v63 = vadd.f32 %v2721_v41, %v1095_v43  ;;  %v1120_v8 = vadd.f32 %v2710_v17, %v1091_v32  ;;  %v2834_v13 = vmul.f32 %v2715_v28, %v2813_v48  ;;  %v953_v37 = vadd.f32 %v945_v47, %v924_v25  ;;  %v3379_v47 = vld [vmem:[#allocation19_spill] sm:$0xff]  ;;  %v3380_v32 = vld [vmem:[#allocation29_spill] sm:$0xff]  ;;  %693 = vst [vmem:[#allocation2 + $0x18d] sm:$0x1f] %v2025_v53 }
  0x52   : > { %v1045_v49 = vadd.f32 %v1037_v1, %v1016_v29  ;;  %v2837_v21 = vmul.f32 %v2669_v6, %v1392_v27  ;;  %v808_v55 = vadd.f32 %v3376_v42, %v778_v57  ;;  %v858_v34 = vmul.f32 %v2528_v36, %v3377_v54  ;;  %v2007_v25 = vld [vmem:[#allocation2 + $0x185] ss:$0 sm:$0xff]  ;;  %v3381_v29 = vld [vmem:[#allocation18_spill] sm:$0xff]  ;;  %v3390_v53 = vld [vmem:[#allocation7_spill] sm:$0xff] }
  0x53   : > { %v1155_v16 = vadd.f32 %v3378_v22, %v1124_v63  ;;  %v1151_v43 = vadd.f32 %v2749_v38, %v1120_v8  ;;  %v983_v17 = vadd.f32 %v975_v51, %v953_v37  ;;  %v1033_v41 = vmul.f32 %v2589_v59, %v1021_v11  ;;  %v3382_v42 = vld [vmem:[#allocation22_spill] sm:$0xff]  ;;  %v3383_v38 = vld [vmem:[#allocation33_spill] sm:$0xff]  ;;  %v2854_v11 = vld [vmem:[#allocation2 + $0x95] sm:$0xff]  ;;  %603 = vst [vmem:[#allocation2 + $0x180] sm:$0x1f] %v2007_v25 }
  0x54   : > { %v1075_v46 = vadd.f32 %v1067_v20, %v1045_v49  ;;  %v1206_v44 = vmul.f32 %v2608_v2, %v1194_v9  ;;  %v837_v1 = vadd.f32 %v3379_v47, %v808_v55  ;;  %v889_v27 = vmul.f32 %v2533_v7, %v3380_v32  ;;  %3384 = vst [vmem:[#allocation31_spill] sm:$0xff] %v2854_v11  ;;  %v3385_v20 = vld [vmem:[#allocation14_spill] sm:$0xff]  ;;  %v3386_v9 = vld [vmem:[#allocation44_spill] sm:$0xff]  ;;  %v3387_v55 = vld [vmem:[#allocation35_spill] sm:$0xff] }
  0x55   : > { %v1184_v57 = vadd.f32 %v3381_v29, %v1155_v16  ;;  %v1180_v48 = vadd.f32 %v3382_v42, %v1151_v43  ;;  %v1012_v63 = vadd.f32 %v2440_v62, %v983_v17  ;;  %v1113_v51 = vmul.f32 %v2643_v31, %v3383_v38  ;;  %v3388_v16 = vld [vmem:[#allocation40_spill] sm:$0xff]  ;;  %v3389_v32 = vld [vmem:[#allocation42_spill] sm:$0xff] }
  0x56   : > { %v1096_v8 = vadd.f32 %v3385_v20, %v1075_v46  ;;  %v1144_v37 = vmul.f32 %v2563_v5, %v3386_v9  ;;  %v866_v49 = vadd.f32 %v858_v34, %v837_v1  ;;  %v947_v22 = vmul.f32 %v2584_v30, %v3387_v55  ;;  %v2869_v34 = vld [vmem:[#allocation2 + $0xad] sm:$0xff] }
  0x57   : > { %v1213_v43 = vadd.f32 %v3388_v16, %v1184_v57  ;;  %v1209_v17 = vadd.f32 %v2753_v26, %v1180_v48  ;;  %v1041_v47 = vadd.f32 %v1033_v41, %v1012_v63  ;;  %v977_v42 = vmul.f32 %v2558_v52, %v3389_v32  ;;  %v3391_v1 = vld [vmem:[#allocation38_spill] sm:$0xff]  ;;  %v3392_v55 = vld [vmem:[#allocation47_spill] sm:$0xff] }
  0x58   : > { %v1125_v38 = vadd.f32 %v1117_v35, %v1096_v8  ;;  %v897_v25 = vadd.f32 %v889_v27, %v866_v49  ;;  %v711_v46 = vmul.f32 %v2384_v39, %v2658_v10  ;;  %v740_v20 = vmul.f32 %v3390_v53, %v2854_v11  ;;  %v3393_v35 = vld [vmem:[#allocation32_spill] sm:$0xff]  ;;  %v3394_v8 = vld [vmem:[#allocation21_spill] sm:$0xff]  ;;  %v3395_v32 = vld [vmem:[#allocation15_spill] sm:$0xff] }
  0x59   : > { %v1242_v9 = vadd.f32 %v3391_v1, %v1213_v43  ;;  %v1238_v57 = vadd.f32 %v2756_v3, %v1209_v17  ;;  %v1071_v48 = vadd.f32 %v3392_v55, %v1041_v47  ;;  %v769_v26 = vmul.f32 %v2470_v12, %v2687_v60  ;;  %v3396_v1 = vld [vmem:[#allocation45_spill] sm:$0xff]  ;;  %v1219_v47 = vld [vmem:[#allocation2 + $0x18] sm:$0xff] }
  0x5a   : > { %v1156_v41 = vadd.f32 %v1148_v14, %v1125_v38  ;;  %v926_v27 = vadd.f32 %v3393_v35, %v897_v25  ;;  %v748_v63 = vadd.f32 %v740_v20, %v711_v46  ;;  %v799_v10 = vmul.f32 %v2494_v19, %v2778_v33  ;;  %v1277_v60 = vld [vmem:[#allocation2 + $0x22] sm:$0xff]  ;;  %v3398_v20 = vld [vmem:[#allocation39_spill] sm:$0xff] }
  0x5b   : > { %v1271_v49 = vadd.f32 %v3394_v8, %v1242_v9  ;;  %v1267_v16 = vadd.f32 %v3394_v8, %v1238_v57  ;;  %v1092_v43 = vadd.f32 %v3395_v32, %v1071_v48  ;;  %v1202_v3 = vmul.f32 %v2608_v2, %v3396_v1  ;;  %v3397_v25 = vld [vmem:[#allocation9_spill] sm:$0xff]  ;;  %v3399_v57 = vld [vmem:[#allocation43_spill] sm:$0xff] }
  0x5c   : > { %v1185_v17 = vadd.f32 %v3381_v29, %v1156_v41  ;;  %v955_v14 = vadd.f32 %v947_v22, %v926_v27  ;;  %v777_v38 = vadd.f32 %v769_v26, %v748_v63  ;;  %v828_v46 = vmul.f32 %v3397_v25, %v2869_v34  ;;  %v2896_v63 = vld [vmem:[#allocation2 + $0xc5] sm:$0xff] }
  0x5d   : > { %v1300_v33 = vadd.f32 %v3398_v20, %v1271_v49  ;;  %v1296_v9 = vadd.f32 %v2759_v56, %v1267_v16  ;;  %v1121_v55 = vadd.f32 %v1113_v51, %v1092_v43  ;;  %v1035_v48 = vmul.f32 %v2589_v59, %v3399_v57  ;;  %v3401_v49 = vld [vmem:[#allocation28_spill] sm:$0xff] }
  0x5e   : > { %v1214_v35 = vadd.f32 %v1206_v44, %v1185_v17  ;;  %v985_v32 = vadd.f32 %v977_v42, %v955_v14  ;;  %v807_v1 = vadd.f32 %v799_v10, %v777_v38  ;;  %v857_v29 = vmul.f32 %v2528_v36, %v2796_v4  ;;  %v3400_v44 = vld [vmem:[#allocation37_spill] sm:$0xff] }
  0x5f   : > { %v1330_v22 = vadd.f32 %v2738_v23, %v1300_v33  ;;  %v1326_v26 = vadd.f32 %v2769_v0, %v1296_v9  ;;  %v1152_v41 = vadd.f32 %v1144_v37, %v1121_v55  ;;  %v1231_v27 = vmul.f32 %v2594_v58, %v1219_v47  ;;  %v3402_v4 = vld [vmem:[#allocation25_spill] sm:$0xff]  ;;  %v3403_v23 = vld [vmem:[#allocation30_spill] sm:$0xff]  ;;  %v3407_v55 = vld [vmem:[#allocation48_spill] sm:$0xff] }
  0x60   : > { %v1243_v56 = vadd.f32 %v2794_v40, %v1214_v35  ;;  %v1014_v51 = vadd.f32 %v2440_v62, %v985_v32  ;;  %v1065_v42 = vmul.f32 %v3400_v44, %v2723_v15  ;;  %v836_v10 = vadd.f32 %v828_v46, %v807_v1  ;;  %v3404_v40 = vld [vmem:[#allocation6_spill] sm:$0xff]  ;;  %v3406_v33 = vld [vmem:[#allocation53_spill] sm:$0xff]  ;;  %v2914_v1 = vld [vmem:[#allocation2 + $0x90] sm:$0xff] }
  0x61   : > { %v1351_v16 = vadd.f32 %v3401_v49, %v1330_v22  ;;  %v1347_v43 = vadd.f32 %v3402_v4, %v1326_v26  ;;  %v1181_v17 = vadd.f32 %v3403_v23, %v1152_v41  ;;  %v1289_v0 = vmul.f32 %v2629_v18, %v1277_v60  ;;  %v3405_v62 = vld [vmem:[#allocation50_spill] sm:$0xff]  ;;  %3408 = vst [vmem:[#allocation17_spill] sm:$0xff] %v2914_v1  ;;  %v3412_v4 = vld [vmem:[#allocation20_spill] sm:$0xff] }
  0x62   : > { %v1272_v37 = vadd.f32 %v3394_v8, %v1243_v56  ;;  %v1043_v47 = vadd.f32 %v1035_v48, %v1014_v51  ;;  %v865_v14 = vadd.f32 %v857_v29, %v836_v10  ;;  %v917_v38 = vmul.f32 %v3404_v40, %v2896_v63  ;;  %v964_v35 = vld [vmem:[#allocation2 + $0x62] sm:$0xff]  ;;  %v2916_v22 = vld [vmem:[#allocation2 + $0x10a] sm:$0xff]  ;;  %v3411_v51 = vld [vmem:[#allocation56_spill] sm:$0xff] }
  0x63   : > { %v1380_v20 = vadd.f32 %v3405_v62, %v1351_v16  ;;  %v1376_v9 = vadd.f32 %v3406_v33, %v1347_v43  ;;  %v1210_v46 = vadd.f32 %v1202_v3, %v1181_v17  ;;  %v1115_v57 = vmul.f32 %v2643_v31, %v3407_v55  ;;  %v3409_v48 = vld [vmem:[#allocation34_spill] sm:$0xff]  ;;  %v3413_v17 = vld [vmem:[#allocation24_spill] sm:$0xff] }
  0x64   : > { %v1301_v32 = vadd.f32 %v2825_v50, %v1272_v37  ;;  %v1073_v60 = vadd.f32 %v1065_v42, %v1043_v47  ;;  %v896_v29 = vadd.f32 %v3409_v48, %v865_v14  ;;  %v946_v26 = vmul.f32 %v2584_v30, %v3377_v54  ;;  %v3410_v41 = vld [vmem:[#allocation46_spill] sm:$0xff]  ;;  %v3415_v54 = vld [vmem:[#allocation27_spill] sm:$0xff] }
  0x65   : > { %v1411_v56 = vadd.f32 %v3410_v41, %v1380_v20  ;;  %v1407_v3 = vadd.f32 %v3411_v51, %v1376_v9  ;;  %v1239_v10 = vadd.f32 %v1231_v27, %v1210_v46  ;;  %v1146_v49 = vmul.f32 %v2563_v5, %v2916_v22  ;;  %v993_v16 = vld [vmem:[#allocation2 + $0x65] sm:$0xff] }
  0x66   : > { %v1331_v50 = vadd.f32 %v2828_v45, %v1301_v32  ;;  %v1094_v42 = vadd.f32 %v3412_v4, %v1073_v60  ;;  %v925_v43 = vadd.f32 %v917_v38, %v896_v29  ;;  %v976_v23 = vmul.f32 %v2558_v52, %v964_v35  ;;  %v1022_v62 = vld [vmem:[#allocation2 + $0x68] sm:$0xff]  ;;  %v2938_v45 = vld [vmem:[#allocation2 + $0x9a] sm:$0xff]  ;;  %v2940_v38 = vld [vmem:[#allocation2 + $0x110] sm:$0xff] }
  0x67   : > { %v2929_v37 = vadd.f32 %v3413_v17, %v1411_v56  ;;  %v2932_v47 = vadd.f32 %v3415_v54, %v1407_v3  ;;  %v1268_v14 = vadd.f32 %v3394_v8, %v1239_v10  ;;  %v1319_v27 = vmul.f32 %v2702_v24, %v2914_v1  ;;  %v3417_v20 = vld [vmem:[#allocation26_spill] sm:$0xff]  ;;  %3418 = vst [vmem:[#allocation29_spill] sm:$0xff] %v2938_v45  ;;  %v3419_v32 = vld [vmem:[#allocation8_spill] sm:$0xff]  ;;  %v3420_v29 = vld [vmem:[#allocation3_spill] sm:$0xff] }
  0x68   : > { %v1352_v33 = vadd.f32 %v3417_v20, %v1331_v50  ;;  %v1123_v9 = vadd.f32 %v1115_v57, %v1094_v42  ;;  %v1221_v46 = vld [vmem:[#allocation2 + $0x48] sm:$0xff]  ;;  %v954_v35 = vadd.f32 %v946_v26, %v925_v43  ;;  %v1005_v60 = vmul.f32 %v3419_v32, %v993_v16  ;;  %v3421_v41 = vld [vmem:[#allocation13_spill] sm:$0xff]  ;;  %v3423_v43 = vld [vmem:[#allocation23_spill] sm:$0xff] }
  0x69   : > { %3414 = vst [vmem:[#allocation36_spill] sm:$0xff] %v2929_v37  ;;  %3416 = vst [vmem:[#allocation19_spill] sm:$0xff] %v2932_v47  ;;  %v1297_v48 = vadd.f32 %v1289_v0, %v1268_v14  ;;  %v1340_v56 = vmul.f32 %v3421_v41, %v3420_v29  ;;  %v1204_v51 = vmul.f32 %v2608_v2, %v2940_v38  ;;  %v2948_v10 = vld [vmem:[#allocation2 + $0x108] sm:$0xff]  ;;  %v3424_v20 = vld [vmem:[#allocation52_spill] sm:$0xff] }
  0x6a   : > { %v1381_v3 = vadd.f32 %v2834_v13, %v1352_v33  ;;  %3422 = vst [vmem:[#allocation18_spill] sm:$0xff] %v2948_v10  ;;  %v1154_v50 = vadd.f32 %v1146_v49, %v1123_v9  ;;  %v984_v4 = vadd.f32 %v976_v23, %v954_v35  ;;  %v1034_v57 = vmul.f32 %v2589_v59, %v1022_v62  ;;  %v2958_v33 = vld [vmem:[#allocation2 + $0x10d] sm:$0xff]  ;;  %v3426_v62 = vld [vmem:[#allocation16_spill] sm:$0xff] }
  0x6b   : > { %v1327_v42 = vadd.f32 %v1319_v27, %v1297_v48  ;;  %v1369_v26 = vmul.f32 %v2715_v28, %v2938_v45  ;;  %v1233_v0 = vmul.f32 %v2594_v58, %v1221_v46  ;;  %v1064_v13 = vmul.f32 %v3400_v44, %v3424_v20  ;;  %v3425_v27 = vld [vmem:[#allocation5_spill] sm:$0xff]  ;;  %v1279_v35 = vld [vmem:[#allocation2 + $0x52] sm:$0xff]  ;;  %v3431_v45 = vld [vmem:[#allocation54_spill] sm:$0xff] }
  0x6c   : > { %v1412_v16 = vadd.f32 %v2837_v21, %v1381_v3  ;;  %v1183_v54 = vadd.f32 %v3423_v43, %v1154_v50  ;;  %v1013_v14 = vadd.f32 %v1005_v60, %v984_v4  ;;  %v1400_v23 = vmul.f32 %v2669_v6, %v2948_v10  ;;  %v3428_v60 = vld [vmem:[#allocation10_spill] sm:$0xff]  ;;  %v1309_v4 = vld [vmem:[#allocation2 + $0xc0] sm:$0xff]  ;;  %v3430_v20 = vld [vmem:[#allocation51_spill] sm:$0xff] }
  0x6d   : > { %v1348_v49 = vadd.f32 %v1340_v56, %v1327_v42  ;;  %v1429_v9 = vmul.f32 %v3426_v62, %v3425_v27  ;;  %v1085_v29 = vmul.f32 %v3428_v60, %v2869_v34  ;;  %v2969_v3 = vld [vmem:[#allocation2 + $0x124] sm:$0xff]  ;;  %v745_v43 = vmul.f32 %v3390_v53, %v2958_v33  ;;  %v969_v1 = vld [vmem:[#allocation2 + $0xda] sm:$0xff] }
  0x6e   : > { %v2965_v46 = vadd.f32 %v3413_v17, %v1412_v16  ;;  %v1212_v21 = vadd.f32 %v1204_v51, %v1183_v54  ;;  %v1042_v48 = vadd.f32 %v1034_v57, %v1013_v14  ;;  %v3429_v56 = vld [vmem:[#allocation49_spill] sm:$0xff]  ;;  %v774_v27 = vmul.f32 %v2470_v12, %v3430_v20 }
  0x6f   : > { %v1377_v50 = vadd.f32 %v1369_v26, %v1348_v49  ;;  %v716_v42 = vmul.f32 %v2384_v39, %v3429_v56  ;;  %v1291_v51 = vmul.f32 %v2629_v18, %v1279_v35  ;;  %v2978_v54 = vld [vmem:[#allocation2 + $0x125] sm:$0xff]  ;;  %v804_v26 = vmul.f32 %v2494_v19, %v2969_v3 }
  0x70   : > { %3427 = vst [vmem:[#allocation22_spill] sm:$0xff] %v2965_v46  ;;  %v1241_v16 = vadd.f32 %v1233_v0, %v1212_v21  ;;  %v1072_v57 = vadd.f32 %v1064_v13, %v1042_v48  ;;  %v1321_v46 = vmul.f32 %v2702_v24, %v1309_v4  ;;  %v1114_v47 = vmul.f32 %v2643_v31, %v3431_v45  ;;  %v2986_v37 = vld [vmem:[#allocation2 + $0x126] sm:$0xff]  ;;  %v3433_v48 = vld [vmem:[#allocation4_spill] sm:$0xff] }
  0x71   : > { %v1408_v14 = vadd.f32 %v1400_v23, %v1377_v50  ;;  %v753_v62 = vadd.f32 %v745_v43, %v716_v42  ;;  %v1359_v13 = vld [vmem:[#allocation2 + $0xca] sm:$0xff]  ;;  %v833_v23 = vmul.f32 %v3397_v25, %v2978_v54  ;;  %v1342_v50 = vmul.f32 %v3421_v41, %v3433_v48  ;;  %v1390_v42 = vld [vmem:[#allocation2 + $0x138] sm:$0xff] }
  0x72   : > { %v1270_v49 = vadd.f32 %v3394_v8, %v1241_v16  ;;  %v1093_v10 = vadd.f32 %v1085_v29, %v1072_v57  ;;  %v881_v8 = vld [vmem:[#allocation2 + $0x13c] sm:$0xff]  ;;  %v862_v29 = vmul.f32 %v2528_v36, %v2986_v37  ;;  %v1371_v43 = vmul.f32 %v2715_v28, %v1359_v13  ;;  %v3434_v16 = vld [vmem:[#allocation55_spill] sm:$0xff] }
  0x73   : > { %v2988_v0 = vadd.f32 %v1429_v9, %v1408_v14  ;;  %v782_v35 = vadd.f32 %v774_v27, %v753_v62  ;;  %v1145_v27 = vmul.f32 %v2563_v5, %v3434_v16  ;;  %v910_v57 = vld [vmem:[#allocation2 + $0x13d] sm:$0xff]  ;;  %v1402_v48 = vmul.f32 %v2669_v6, %v1390_v42 }
  0x74   : > { %v1299_v21 = vadd.f32 %v1291_v51, %v1270_v49  ;;  %v1122_v9 = vadd.f32 %v1114_v47, %v1093_v10  ;;  %v893_v51 = vmul.f32 %v2533_v7, %v881_v8  ;;  %v939_v62 = vld [vmem:[#allocation2 + $0x13e] sm:$0xff]  ;;  %v3435_v47 = vld [vmem:[#allocation11_spill] sm:$0xff] }
  0x75   : > { %3432 = vst [vmem:[#allocation33_spill] sm:$0xff] %v2988_v0  ;;  %v812_v4 = vadd.f32 %v804_v26, %v782_v35  ;;  %v1162_v0 = vld [vmem:[#allocation2 + $0xf5] sm:$0xff]  ;;  %v951_v16 = vmul.f32 %v2584_v30, %v939_v62 }
  0x76   : > { %v1329_v45 = vadd.f32 %v1321_v46, %v1299_v21  ;;  %v703_v26 = vld [vmem:[#allocation2 + $0xf4] sm:$0xff]  ;;  %v922_v46 = vmul.f32 %v3404_v40, %v910_v57  ;;  %v1153_v13 = vadd.f32 %v1145_v27, %v1122_v9  ;;  %v1174_v10 = vmul.f32 %v3435_v47, %v1162_v0 }
  0x77   : > { %v841_v14 = vadd.f32 %v833_v23, %v812_v4  ;;  %v761_v35 = vld [vmem:[#allocation2 + $0xf6] sm:$0xff]  ;;  %v715_v8 = vmul.f32 %v2384_v39, %v703_v26  ;;  %v1203_v39 = vmul.f32 %v2608_v2, %v2802_v61 }
  0x78   : > { %v1350_v49 = vadd.f32 %v1342_v50, %v1329_v45  ;;  %v744_v50 = vmul.f32 %v3390_v53, %v1162_v0  ;;  %v773_v42 = vmul.f32 %v2470_v12, %v761_v35  ;;  %v998_v45 = vld [vmem:[#allocation2 + $0xdd] sm:$0xff]  ;;  %v1182_v27 = vadd.f32 %v1174_v10, %v1153_v13  ;;  %v1220_v53 = vld [vmem:[#allocation2 + $0x30] sm:$0xff] }
  0x79   : > { %v870_v11 = vadd.f32 %v862_v29, %v841_v14  ;;  %v981_v29 = vmul.f32 %v2558_v52, %v969_v1  ;;  %v1010_v12 = vmul.f32 %v3419_v32, %v998_v45  ;;  %v832_v1 = vmul.f32 %v3397_v25, %v2958_v33  ;;  %v1107_v25 = vld [vmem:[#allocation2 + $0x128] sm:$0xff]  ;;  %v3436_v10 = vld [vmem:[#allocation12_spill] sm:$0xff] }
  0x7a   : > { %v1379_v21 = vadd.f32 %v1371_v43, %v1350_v49  ;;  %v752_v57 = vadd.f32 %v744_v50, %v715_v8  ;;  %v803_v43 = vmul.f32 %v2494_v19, %v3429_v56  ;;  %v1211_v49 = vadd.f32 %v1203_v39, %v1182_v27  ;;  %v1278_v8 = vld [vmem:[#allocation2 + $0x3a] sm:$0xff]  ;;  %v2209_v39 = vld [vmem:[#allocation2 + $0x125] sm:$0xff] }
  0x7b   : > { %v901_v23 = vadd.f32 %v893_v51, %v870_v11  ;;  %v1027_v11 = vld [vmem:[#allocation2 + $0xe0] sm:$0xff]  ;;  %v1232_v61 = vmul.f32 %v2594_v58, %v1220_v53  ;;  %v892_v35 = vmul.f32 %v2533_v7, %v2969_v3  ;;  %v950_v7 = vmul.f32 %v2584_v30, %v2986_v37 }
  0x7c   : > { %v1410_v4 = vadd.f32 %v1402_v48, %v1379_v21  ;;  %v781_v14 = vadd.f32 %v773_v42, %v752_v57  ;;  %v1057_v51 = vld [vmem:[#allocation2 + $0x122] sm:$0xff]  ;;  %v1039_v19 = vmul.f32 %v2589_v59, %v1027_v11  ;;  %v1249_v48 = vld [vmem:[#allocation2 + $0x35] sm:$0xff]  ;;  %v1090_v21 = vmul.f32 %v3428_v60, %v2978_v54  ;;  %v2210_v30 = vld [vmem:[%s3264_s5 + $0x1] ss:$0 sm:$0xff] }
  0x7d   : > { %v930_v6 = vadd.f32 %v922_v46, %v901_v23  ;;  %v1138_v23 = vld [vmem:[#allocation2 + $0x16a] sm:$0xff]  ;;  %v1119_v42 = vmul.f32 %v2643_v31, %v1107_v25  ;;  %v1290_v57 = vmul.f32 %v2629_v18, %v1278_v8  ;;  %v1179_v11 = vmul.f32 %v2209_v39, %v3435_v47  ;;  %v3439_v39 = vld [vmem:[#allocation17_spill] sm:$0xff] }
  0x7e   : > { %v3011_v9 = vadd.f32 %v3413_v17, %v1410_v4  ;;  %v811_v56 = vadd.f32 %v803_v43, %v781_v14  ;;  %v861_v17 = vmul.f32 %v2528_v36, %v3430_v20  ;;  %v921_v36 = vmul.f32 %v3404_v40, %v2978_v54  ;;  %v1196_v43 = vld [vmem:[#allocation2 + $0x170] sm:$0xff]  ;;  %v3066_v8 = vld [vmem:[%s3265_s6 + $0xa] ss:$0 sm:$0xff] }
  0x7f   : > { %v959_v0 = vadd.f32 %v951_v16, %v930_v6  ;;  %v1069_v6 = vmul.f32 %v3400_v44, %v1057_v51  ;;  %v1240_v20 = vadd.f32 %v1232_v61, %v1211_v49  ;;  %v1261_v16 = vmul.f32 %v3436_v10, %v1249_v48  ;;  %v1358_v49 = vld [vmem:[#allocation2 + $0xb2] sm:$0xff] }
  0x80   : > { %v840_v32 = vadd.f32 %v832_v1, %v811_v56  ;;  %v1150_v45 = vmul.f32 %v2563_v5, %v1138_v23  ;;  %v1009_v37 = vmul.f32 %v2210_v30, %v2896_v63  ;;  %v1208_v14 = vmul.f32 %v2608_v2, %v1196_v43  ;;  %v1195_v23 = vld [vmem:[#allocation2 + $0x158] sm:$0xff]  ;;  %v3438_v43 = vld [vmem:[#allocation41_spill] sm:$0xff] }
  0x81   : > { %v989_v62 = vadd.f32 %v981_v29, %v959_v0  ;;  %v980_v29 = vmul.f32 %v2558_v52, %v2723_v15  ;;  %v1269_v40 = vadd.f32 %v1261_v16, %v1240_v20  ;;  %v1308_v0 = vld [vmem:[#allocation2 + $0xa8] sm:$0xff]  ;;  %v1038_v15 = vmul.f32 %v2589_v59, %v3407_v55  ;;  %v2211_v59 = vld [vmem:[%s3264_s5 + $0x5] ss:$0 sm:$0xff] }
  0x82   : > { %v869_v13 = vadd.f32 %v861_v17, %v840_v32  ;;  %v1320_v51 = vmul.f32 %v2702_v24, %v1308_v0  ;;  %v1068_v17 = vmul.f32 %v3400_v44, %v2916_v22  ;;  %v1266_v61 = vmul.f32 %v3436_v10, %v2869_v34  ;;  %v1389_v32 = vld [vmem:[#allocation2 + $0x120] sm:$0xff] }
  0x83   : > { %v1018_v26 = vadd.f32 %v1010_v12, %v989_v62  ;;  %v1298_v1 = vadd.f32 %v1290_v57, %v1269_v40  ;;  %v1089_v55 = vmul.f32 %v2211_v59, %v2958_v33  ;;  %v1295_v44 = vmul.f32 %v2629_v18, %v1358_v49 }
  0x84   : > { %v900_v4 = vadd.f32 %v892_v35, %v869_v13  ;;  %v1137_v35 = vld [vmem:[#allocation2 + $0x152] sm:$0xff] }
  0x85   : > { %v1047_v46 = vadd.f32 %v1039_v19, %v1018_v26  ;;  %v1237_v19 = vmul.f32 %v2594_v58, %v1308_v0  ;;  %v1328_v26 = vadd.f32 %v1320_v51, %v1298_v1  ;;  %v1149_v10 = vmul.f32 %v2563_v5, %v1137_v35  ;;  %v1447_v5 = vld [vmem:[#allocation2 + $0x12a] sm:$0xff]  ;;  %v1450_v0 = vld [vmem:[#allocation2 + $0x172] sm:$0xff]  ;;  %v1448_v35 = vld [vmem:[#allocation2 + $0x142] sm:$0xff] }
  0x86   : > { %v929_v60 = vadd.f32 %v921_v36, %v900_v4  ;;  %v1325_v36 = vmul.f32 %v2702_v24, %v1389_v32  ;;  %v3441_v51 = vld [vmem:[#allocation36_spill] sm:$0xff] }
  0x87   : > { %v1077_v50 = vadd.f32 %v1069_v6, %v1047_v46  ;;  %v1341_v6 = vmul.f32 %v3421_v41, %v2869_v34  ;;  %v1118_v46 = vmul.f32 %v2643_v31, %v2940_v38  ;;  %v1370_v34 = vmul.f32 %v2715_v28, %v1358_v49  ;;  %v2213_v49 = vld [vmem:[%s3265_s6 + $0x9] ss:$0 sm:$0xff] }
  0x88   : > { %v958_v53 = vadd.f32 %v950_v7, %v929_v60  ;;  %v1346_v38 = vmul.f32 %v3421_v41, %v2978_v54  ;;  %v1401_v41 = vmul.f32 %v3438_v43, %v1389_v32 }
  0x89   : > { %v1098_v3 = vadd.f32 %v1090_v21, %v1077_v50  ;;  %v1166_v21 = vld [vmem:[#allocation2 + $0x155] sm:$0xff]  ;;  %v1349_v16 = vadd.f32 %v1341_v6, %v1328_v26  ;;  %v1462_v6 = vmul.f32 %v3066_v8, %v1450_v0 }
  0x8a   : > { %v988_v52 = vadd.f32 %v980_v29, %v958_v53  ;;  %v1449_v50 = vld [vmem:[#allocation2 + $0x15a] sm:$0xff]  ;;  %v1178_v31 = vmul.f32 %v3435_v47, %v1166_v21  ;;  %v1446_v47 = vld [vmem:[#allocation2 + $0x112] sm:$0xff]  ;;  %v1459_v21 = vmul.f32 %v3066_v8, %v1447_v5 }
  0x8b   : > { %v1127_v27 = vadd.f32 %v1119_v42, %v1098_v3  ;;  %v1461_v60 = vmul.f32 %v3066_v8, %v1449_v50  ;;  %v3437_v29 = vld [vmem:[#allocation57_spill] sm:$0xff]  ;;  %v1378_v57 = vadd.f32 %v1370_v34, %v1349_v16 }
  0x8c   : > { %v1017_v56 = vadd.f32 %v1009_v37, %v988_v52  ;;  %v1457_v40 = vmul.f32 %v3066_v8, %v3437_v29  ;;  %v1529_v53 = vld [vmem:[%s3075_s16] sm:$0xff]  ;;  %v1375_v37 = vmul.f32 %v2715_v28, %v1447_v5 }
  0x8d   : > { %v1158_v12 = vadd.f32 %v1150_v45, %v1127_v27  ;;  %v1207_v45 = vmul.f32 %v2608_v2, %v1195_v23  ;;  %v1458_v2 = vmul.f32 %v3066_v8, %v1446_v47  ;;  %v3445_v34 = vld [vmem:[#allocation33_spill] sm:$0xff] }
  0x8e   : > { %v1046_v48 = vadd.f32 %v1038_v15, %v1017_v56  ;;  %v3440_v15 = vld [vmem:[#allocation31_spill] sm:$0xff] }
  0x8f   : > { %v1187_v62 = vadd.f32 %v1179_v11, %v1158_v12  ;;  %v1236_v11 = vmul.f32 %v2594_v58, %v3439_v39  ;;  %v3090_v12 = vld [vmem:[%s3266_s7] ss:$0 sm:$0xff]  ;;  %v2212_v58 = vld [vmem:[%s3265_s6 + $0x1] ss:$0 sm:$0xff]  ;;  %v1466_v23 = vadd.f32 %v1458_v2, %v3445_v34 }
  0x90   : > { %v1076_v22 = vadd.f32 %v1068_v17, %v1046_v48  ;;  %v1265_v1 = vmul.f32 %v2212_v58, %v3440_v15  ;;  %v1409_v17 = vadd.f32 %v1401_v41, %v1378_v57  ;;  %v1544_v32 = vmul.f32 %v3090_v12, %v1529_v53  ;;  %v1393_v57 = vld [vmem:[#allocation2 + $0x180] sm:$0xff]  ;;  %v1534_v41 = vld [vmem:[%s3075_s16 + $0x28] sm:$0xff]  ;;  %v1531_v53 = vld [vmem:[%s3075_s16 + $0x10] sm:$0xff] }
  0x91   : > { %v1216_v63 = vadd.f32 %v1208_v14, %v1187_v62  ;;  %v1394_v14 = vld [vmem:[#allocation2 + $0x198] sm:$0xff]  ;;  %v1469_v62 = vadd.f32 %v1461_v60, %v3441_v51  ;;  %v1405_v15 = vmul.f32 %v3438_v43, %v1393_v57 }
  0x92   : > { %v1097_v20 = vadd.f32 %v1089_v55, %v1076_v22  ;;  %v1504_v48 = vpop.permute.xlu1 %1503  ;;  %v3443_v55 = vld [vmem:[#allocation29_spill] sm:$0xff]  ;;  %v1406_v22 = vmul.f32 %v3438_v43, %v1394_v14 }
  0x93   : > { %v1245_v25 = vadd.f32 %v1237_v19, %v1216_v63  ;;  %v3442_v19 = vld [vmem:[#allocation19_spill] sm:$0xff]  ;;  %v1430_v63 = vmul.f32 %v2213_v49, %v2978_v54  ;;  %v1294_v26 = vmul.f32 %v2629_v18, %v3443_v55  ;;  %v1525_v18 = vmul.f32 %v1504_v48, %v1469_v62 }
  0x94   : > { %v1126_v4 = vadd.f32 %v1118_v46, %v1097_v20  ;;  %v1465_v56 = vadd.f32 %v1457_v40, %v3442_v19  ;;  %v3444_v20 = vld [vmem:[#allocation18_spill] sm:$0xff]  ;;  %v1546_v19 = vmul.f32 %v3090_v12, %v1531_v53 }
  0x95   : > { %v1274_v13 = vadd.f32 %v1266_v61, %v1245_v25  ;;  %v1533_v61 = vld [vmem:[%s3075_s16 + $0x20] sm:$0xff]  ;;  %v1530_v25 = vld [vmem:[%s3075_s16 + $0x8] sm:$0xff]  ;;  %v1484_v46 = vpop.permute.xlu0 %1483  ;;  %v1438_v50 = vadd.f32 %v1430_v63, %v1409_v17 }
  0x96   : > { %v1157_v3 = vadd.f32 %v1149_v10, %v1126_v4  ;;  %v1548_v54 = vmul.f32 %v3090_v12, %v1533_v61  ;;  %v1324_v10 = vmul.f32 %v2702_v24, %v3444_v20  ;;  %v1521_v16 = vmul.f32 %v1484_v46, %v1465_v56  ;;  %v1532_v56 = vld [vmem:[%s3075_s16 + $0x18] sm:$0xff] }
  0x97   : > { %v1303_v42 = vadd.f32 %v1295_v44, %v1274_v13  ;;  %v1423_v13 = vld [vmem:[#allocation2 + $0x19d] sm:$0xff]  ;;  %v1460_v4 = vmul.f32 %v3066_v8, %v1448_v35  ;;  %v1535_v35 = vld [vmem:[%s3075_s16 + $0x30] sm:$0xff] }
  0x98   : > { %v1186_v27 = vadd.f32 %v1178_v31, %v1157_v3  ;;  %v1545_v31 = vmul.f32 %v3090_v12, %v1530_v25  ;;  %v3446_v3 = vld [vmem:[#allocation22_spill] sm:$0xff]  ;;  %v1552_v60 = vadd.f32 %v1544_v32, %v1521_v16  ;;  %v1435_v40 = vmul.f32 %v2213_v49, %v1423_v13 }
  0x99   : > { %v1333_v7 = vadd.f32 %v1325_v36, %v1303_v42  ;;  %v1509_v42 = vpop.permute.xlu1 %1508  ;;  %v1556_v0 = vadd.f32 %v1548_v54, %v1525_v18 }
  0x9a   : > { %v1215_v52 = vadd.f32 %v1207_v45, %v1186_v27  ;;  %v1470_v45 = vadd.f32 %v1462_v6, %v3446_v3  ;;  %v1489_v27 = vpop.permute.xlu0 %1488  ;;  %1560 = vadd.xlane.f32.xlu0 %v1552_v60 }
  0x9b   : > { %v1354_v30 = vadd.f32 %v1346_v38, %v1333_v7  ;;  %v1452_v38 = vld [vmem:[#allocation2 + $0x1a2] sm:$0xff] }
  0x9c   : > { %v1244_v59 = vadd.f32 %v1236_v11, %v1215_v52  ;;  %v2214_v7 = vld [vmem:[%s3265_s6 + $0x5] ss:$0 sm:$0xff]  ;;  %v1374_v11 = vmul.f32 %v2715_v28, %v1446_v47  ;;  %v1464_v2 = vmul.f32 %v3066_v8, %v1452_v38  ;;  %v1468_v52 = vadd.f32 %v1460_v4, %v3011_v9  ;;  %v1451_v47 = vld [vmem:[#allocation2 + $0x18a] sm:$0xff] }
  0x9d   : > { %v1383_v44 = vadd.f32 %v1375_v37, %v1354_v30  ;;  %v1345_v24 = vmul.f32 %v2214_v7, %v2958_v33  ;;  %v1522_v30 = vmul.f32 %v1489_v27, %v1466_v23  ;;  %v1467_v37 = vadd.f32 %v1459_v21, %v1438_v50  ;;  %v1422_v33 = vld [vmem:[#allocation2 + $0x185] sm:$0xff]  ;;  %v1499_v14 = vpop.permute.xlu1 %1498 }
  0x9e   : > { %v1273_v36 = vadd.f32 %v1265_v1, %v1244_v59  ;;  %v1549_v1 = vmul.f32 %v3090_v12, %v1534_v41  ;;  %v1526_v51 = vmul.f32 %v1509_v42, %v1470_v45  ;;  %v1494_v17 = vpop.permute.xlu0 %1493  ;;  %v1434_v61 = vmul.f32 %v2213_v49, %v1422_v33  ;;  %1568 = vadd.xlane.f32.xlu0 %v1556_v0 }
  0x9f   : > { %v1414_v29 = vadd.f32 %v1406_v22, %v1383_v44  ;;  %v1553_v62 = vadd.f32 %v1545_v31, %v1522_v30  ;;  %v1523_v48 = vmul.f32 %v1494_v17, %v1467_v37  ;;  %v1463_v43 = vmul.f32 %v3066_v8, %v1451_v47  ;;  %v1536_v22 = vld [vmem:[%s3075_s16 + $0x38] sm:$0xff]  ;;  %v2158_v47 = vld [vmem:[%s3269_s10 + $0x28] sm:$0xff]   ;;  %v3196_v17 = vld [vmem:[%s441_s28] sm:$0xff]  ;;  %s446_s16 = scalar_lea.vmem %s3270_s11, %s2292_s19 }
  0xa0   : > { %v1302_v5 = vadd.f32 %v1294_v26, %v1273_v36  ;;  %v1547_v59 = vmul.f32 %v3090_v12, %v1532_v56  ;;  %v1524_v55 = vmul.f32 %v1499_v14, %v1468_v52  ;;  %v1557_v6 = vadd.f32 %v1549_v1, %v1526_v51  ;;  %v2154_v1 = vld [vmem:[%s3269_s10 + $0x8] sm:$0xff]   ;;  %v2155_v51 = vld [vmem:[%s3269_s10 + $0x10] sm:$0xff]   ;;  %v2160_v56 = vld [vmem:[%s3269_s10 + $0x38] sm:$0xff]  }
  0xa1   : > { %v1443_v28 = vadd.f32 %v1435_v40, %v1414_v29  ;;  %1562 = vadd.xlane.f32.xlu1 %v1553_v62  ;;  %v1554_v32 = vadd.f32 %v1546_v19, %v1523_v48  ;;  %v1519_v25 = vpop.permute.xlu1 %1518  ;;  %v1550_v21 = vmul.f32 %v3090_v12, %v1535_v35  ;;  %v1551_v8 = vmul.f32 %v3090_v12, %v1536_v22  ;;  %v2159_v19 = vld [vmem:[%s3269_s10 + $0x30] sm:$0xff]   ;;  %v3210_v35 = vld [vmem:[%s441_s28 + $0x18] sm:$0xff] }
  0xa2   : > { %v1332_v39 = vadd.f32 %v1324_v10, %v1302_v5  ;;  %v1514_v46 = vpop.permute.xlu0 %1513  ;;  %1570 = vadd.xlane.f32.xlu0 %v1557_v6  ;;  %v1555_v13 = vadd.f32 %v1547_v59, %v1524_v55  ;;  %v3213_v22 = vld [vmem:[%s441_s28 + $0x30] sm:$0xff] }
  0xa3   : > { %v1472_v26 = vadd.f32 %v1464_v2, %v1443_v28  ;;  %v2157_v28 = vld [vmem:[%s3269_s10 + $0x20] sm:$0xff]  }
  0xa4   : > { %v1353_v58 = vadd.f32 %v1345_v24, %v1332_v39 }
  0xa5   : > { %1564 = vadd.xlane.f32.xlu1 %v1554_v32  ;;  %v1528_v54 = vmul.f32 %v1519_v25, %v1472_v26 }
  0xa6   : > { %v1382_v63 = vadd.f32 %v1374_v11, %v1353_v58  ;;  %1566 = vadd.xlane.f32.xlu0 %v1555_v13 }
  0xa7   : > { %v1559_v10 = vadd.f32 %v1551_v8, %v1528_v54  ;;  %v1693_v54 = vsub.f32 0.0, %v3213_v22 }
  0xa8   : > { %v1413_v9 = vadd.f32 %v1405_v15, %v1382_v63  ;;  %v2153_v15 = vld [vmem:[%s3269_s10] sm:$0xff]   ;;  %v3198_v63 = vld [vmem:[%s441_s28 + $0x8] sm:$0xff] }
  0xa9   : > { %2102 = vmatprep.subr.bf16.mxu0 %v2153_v15  ;;  %2126 = vmatprep.subr.bf16.mxu1 %v2153_v15  ;;  %v1688_v48 = vsub.f32 0.0, %v3198_v63 }
  0xaa   : > { %v1442_v44 = vadd.f32 %v1434_v61, %v1413_v9  ;;  %1574 = vadd.xlane.f32.xlu0 %v1559_v10  ;;  %2103 = vmatpush3.bf16.msra.mxu0 %v2153_v15  ;;  %v1687_v61 = vsub.f32 0.0, %v3196_v17  ;;  %v3202_v9 = vld [vmem:[%s441_s28 + $0x20] sm:$0xff] }
  0xab   : > { %2134 = vmatpush3.bf16.msra.mxu1 %v2153_v15  ;;  %2104 = vmatprep.subr.bf16.mxu0 %v2154_v1  ;;  %v1691_v55 = vsub.f32 0.0, %v3202_v9  ;;  %v1697_v26 = vmul.f32 1.442695, %v1688_v48 }
  0xac   : > { %v1471_v49 = vadd.f32 %v1463_v43, %v1442_v44  ;;  %2127 = vmatprep.subr.bf16.mxu1 %v2154_v1  ;;  %v3204_v43 = vld [vmem:[%s441_s28 + $0x28] sm:$0xff]  ;;  %v1695_v59 = vmul.f32 1.442695, %v1687_v61 }
  0xad   : > { %v1703_v25 = vmul.f32 1.442695, %v1691_v55  ;;  %v3223_v55 = vld [vmem:[%s3267_s8] ss:$0 sm:$0xff] }
  0xae   : > { %v1527_v36 = vmul.f32 %v1514_v46, %v1471_v49  ;;  %2105 = vmatpush3.bf16.msra.mxu0 %v2154_v1  ;;  %2161 = vpow2.f32 %v1695_v59  ;;  %v1690_v49 = vsub.f32 0.0, %v3210_v35 }
  0xaf   : > { %2135 = vmatpush3.bf16.msra.mxu1 %v2154_v1  ;;  %2106 = vmatprep.subr.bf16.mxu0 %v2155_v51  ;;  %2163 = vpow2.f32 %v1697_v26 }
  0xb0   : > { %v1558_v20 = vadd.f32 %v1550_v21, %v1527_v36  ;;  %2128 = vmatprep.subr.bf16.mxu1 %v2155_v51  ;;  %v3216_v21 = vld [vmem:[%s441_s28 + $0x38] sm:$0xff]  ;;  %2165 = vpow2.f32 %v1703_v25  ;;  %v1701_v36 = vmul.f32 1.442695, %v1690_v49 }
  0xb1   : > { %v1694_v8 = vsub.f32 0.0, %v3216_v21 }
  0xb2   : > { %1572 = vadd.xlane.f32.xlu1 %v1558_v20  ;;  %2107 = vmatpush3.bf16.msra.mxu0 %v2155_v51 }
  0xb3   : > { %2136 = vmatpush3.bf16.msra.mxu1 %v2155_v51 }
 0x127   : > { %v1561_v18 = vpop.xlane.xlu0 %1560 }
 0x128   : > { %v1577_v16 = vmul.f32 0.0078125, %v1561_v18  ;;  %v2162_v18 = vpop.eup %2161 }
 0x12a   : > { %v3136_v34 = vsub.f32 %v1552_v60, %v1577_v16 }
 0x12b   : > { %v1569_v23 = vpop.xlane.xlu0 %1568 }
 0x12c   : > { %v1581_v42 = vmul.f32 0.0078125, %v1569_v23  ;;  %v1593_v31 = vmul.f32 %v3136_v34, %v3136_v34  ;;  %v2164_v23 = vpop.eup %2163 }
 0x12e   : > { %v1563_v50 = vpop.xlane.xlu1 %1562  ;;  %v3140_v38 = vsub.f32 %v1556_v0, %v1581_v42  ;;  %1601 = vadd.xlane.f32.xlu1 %v1593_v31  ;;  %v2166_v31 = vpop.eup %2165 }
 0x12f   : > { %v1578_v4 = vmul.f32 0.0078125, %v1563_v50  ;;  %v1571_v5 = vpop.xlane.xlu0 %1570 }
 0x130   : > { %v1582_v24 = vmul.f32 0.0078125, %v1571_v5  ;;  %v1597_v45 = vmul.f32 %v3140_v38, %v3140_v38 }
 0x131   : > { %v3142_v12 = vsub.f32 %v1553_v62, %v1578_v4  ;;  %v2156_v62 = vld [vmem:[%s3269_s10 + $0x18] sm:$0xff]   ;;  %v1711_v4 = vadd.f32 1.0, %v2162_v18 }
 0x132   : > { %v1565_v7 = vpop.xlane.xlu1 %1564  ;;  %v3148_v29 = vsub.f32 %v1557_v6, %v1582_v24  ;;  %1609 = vadd.xlane.f32.xlu1 %v1597_v45  ;;  %2108 = vmatprep.subr.bf16.mxu0 %v2156_v62  ;;  %v1692_v6 = vsub.f32 0.0, %v3204_v43  ;;  %v1712_v24 = vadd.f32 1.0, %v2164_v23 }
 0x133   : > { %v1579_v3 = vmul.f32 0.0078125, %v1565_v7  ;;  %v1594_v60 = vmul.f32 %v3142_v12, %v3142_v12  ;;  %v1567_v57 = vpop.xlane.xlu0 %1566  ;;  %2129 = vmatprep.subr.bf16.mxu1 %v2156_v62  ;;  %2109 = vmatpush3.bf16.msra.mxu0 %v2156_v62 }
 0x134   : > { %v1580_v41 = vmul.f32 0.0078125, %v1567_v57  ;;  %v1598_v27 = vmul.f32 %v3148_v29, %v3148_v29  ;;  %2137 = vmatpush3.bf16.msra.mxu1 %v2156_v62  ;;  %2110 = vmatprep.subr.bf16.mxu0 %v2157_v28  ;;  %v1705_v46 = vmul.f32 1.442695, %v1692_v6 }
 0x135   : > { %v3150_v40 = vsub.f32 %v1554_v32, %v1579_v3  ;;  %1603 = vadd.xlane.f32.xlu0 %v1594_v60  ;;  %2130 = vmatprep.subr.bf16.mxu1 %v2157_v28  ;;  %v3208_v32 = vld [vmem:[%s441_s28 + $0x10] sm:$0xff] }
 0x136   : > { %v3156_v11 = vsub.f32 %v1555_v13, %v1580_v41  ;;  %v1689_v44 = vsub.f32 0.0, %v3208_v32  ;;  %2167 = vpow2.f32 %v1705_v46 }
 0x137   : > { %v1595_v39 = vmul.f32 %v3150_v40, %v3150_v40  ;;  %v1575_v37 = vpop.xlane.xlu0 %1574  ;;  %2111 = vmatpush3.bf16.msra.mxu0 %v2157_v28 }
 0x138   : > { %v1584_v0 = vmul.f32 0.0078125, %v1575_v37  ;;  %v1596_v2 = vmul.f32 %v3156_v11, %v3156_v11  ;;  %2138 = vmatpush3.bf16.msra.mxu1 %v2157_v28  ;;  %2112 = vmatprep.subr.bf16.mxu0 %v2158_v47  ;;  %v1699_v13 = vmul.f32 1.442695, %v1689_v44 }
 0x139   : > { %1611 = vadd.xlane.f32.xlu0 %v1598_v27  ;;  %1605 = vadd.xlane.f32.xlu1 %v1595_v39  ;;  %v1715_v27 = vadd.f32 1.0, %v2166_v31 }
 0x13a   : > { %v3162_v14 = vsub.f32 %v1559_v10, %v1584_v0  ;;  %2131 = vmatprep.subr.bf16.mxu1 %v2158_v47  ;;  %2169 = vpow2.f32 %v1699_v13  ;;  %v1709_v10 = vmul.f32 1.442695, %v1694_v8 }
 0x13b   : > { %2113 = vmatpush3.bf16.msra.mxu0 %v2158_v47  ;;  %2171 = vpow2.f32 %v1701_v36 }
 0x13c   : > { %v1600_v58 = vmul.f32 %v3162_v14, %v3162_v14  ;;  %2139 = vmatpush3.bf16.msra.mxu1 %v2158_v47  ;;  %2114 = vmatprep.subr.bf16.mxu0 %v2159_v19 }
 0x13d   : > { %1607 = vadd.xlane.f32.xlu0 %v1596_v2  ;;  %2132 = vmatprep.subr.bf16.mxu1 %v2159_v19 }
 0x13f   : > { %v1573_v53 = vpop.xlane.xlu1 %1572  ;;  %2115 = vmatpush3.bf16.msra.mxu0 %v2159_v19 }
 0x140   : > { %v1583_v30 = vmul.f32 0.0078125, %v1573_v53  ;;  %2140 = vmatpush3.bf16.msra.mxu1 %v2159_v19  ;;  %2116 = vmatprep.subr.bf16.mxu0 %v2160_v56  ;;  %v2168_v3 = vpop.eup %2167 }
 0x141   : > { %1615 = vadd.xlane.f32.xlu0 %v1600_v58  ;;  %2133 = vmatprep.subr.bf16.mxu1 %v2160_v56  ;;  %v1716_v37 = vadd.f32 1.0, %v2168_v3 }
 0x142   : > { %v3160_v33 = vsub.f32 %v1558_v20, %v1583_v30  ;;  %v1707_v20 = vmul.f32 1.442695, %v1693_v54 }
 0x143   : > { %2117 = vmatpush3.bf16.msra.mxu0 %v2160_v56 }
 0x144   : > { %v1599_v52 = vmul.f32 %v3160_v33, %v3160_v33  ;;  %2141 = vmatpush3.bf16.msra.mxu1 %v2160_v56  ;;  %2173 = vpow2.f32 %v1707_v20  ;;  %v2170_v39 = vpop.eup %2169 }
 0x145   : > { %2175 = vpow2.f32 %v1709_v10  ;;  %v2172_v0 = vpop.eup %2171  ;;  %v1713_v51 = vadd.f32 1.0, %v2170_v39  ;;  %v2074_v10 = vld [vmem:[%s3268_s9] ss:$0 sm:$0xff] }
 0x146   : > { %1613 = vadd.xlane.f32.xlu1 %v1599_v52  ;;  %v1714_v47 = vadd.f32 1.0, %v2172_v0 }
 0x14e   : > { %v2174_v58 = vpop.eup %2173 }
 0x14f   : > { %v2176_v62 = vpop.eup %2175  ;;  %v1717_v56 = vadd.f32 1.0, %v2174_v58 }
 0x150   : > { %v1718_v26 = vadd.f32 1.0, %v2176_v62 }
 0x1bb   : > { %v1602_v16 = vpop.xlane.xlu1 %1601 }
 0x1bc   : > { %v1617_v50 = vmul.f32 0.0078125, %v1602_v16 }
 0x1be   : > { %v1625_v42 = vadd.f32 1e-05, %v1617_v50 }
 0x1bf   : > { %v1610_v7 = vpop.xlane.xlu1 %1609 }
 0x1c0   : > { %2177 = vrsqrt.f32 %v1625_v42  ;;  %v1621_v60 = vmul.f32 0.0078125, %v1610_v7 }
 0x1c1   : > { %2179 = vrcp.f32 %v1711_v4 }
 0x1c2   : > { %v1604_v5 = vpop.xlane.xlu0 %1603  ;;  %v1629_v41 = vadd.f32 1e-05, %v1621_v60  ;;  %2181 = vrcp.f32 %v1712_v24 }
 0x1c3   : > { %v1618_v45 = vmul.f32 0.0078125, %v1604_v5 }
 0x1c5   : > { %v1626_v57 = vadd.f32 1e-05, %v1618_v45 }
 0x1c6   : > { %v1612_v53 = vpop.xlane.xlu0 %1611  ;;  %v1606_v30 = vpop.xlane.xlu1 %1605 }
 0x1c7   : > { %2183 = vrsqrt.f32 %v1626_v57  ;;  %v1622_v2 = vmul.f32 0.0078125, %v1612_v53  ;;  %v1619_v52 = vmul.f32 0.0078125, %v1606_v30 }
 0x1c8   : > { %2185 = vrsqrt.f32 %v1629_v41 }
 0x1c9   : > { %v1630_v15 = vadd.f32 1e-05, %v1622_v2  ;;  %v1627_v1 = vadd.f32 1e-05, %v1619_v52  ;;  %2187 = vrcp.f32 %v1715_v27 }
 0x1ca   : > { %v1608_v28 = vpop.xlane.xlu0 %1607  ;;  %2189 = vrcp.f32 %v1716_v37  ;;  %v2178_v61 = vpop.eup %2177 }
 0x1cb   : > { %2191 = vrsqrt.f32 %v1630_v15  ;;  %v1620_v19 = vmul.f32 0.0078125, %v1608_v28  ;;  %v1641_v44 = vmul.f32 %v2178_v61, %v3136_v34  ;;  %v2180_v46 = vpop.eup %2179 }
 0x1cc   : > { %2193 = vrsqrt.f32 %v1627_v1  ;;  %v2182_v54 = vpop.eup %2181  ;;  %v1727_v31 = vmul.f32 %v2180_v46, %v3196_v17 }
 0x1cd   : > { %v1628_v48 = vadd.f32 1e-05, %v1620_v19  ;;  %2195 = vrcp.f32 %v1713_v51  ;;  %v1656_v8 = vmul.f32 %v3223_v55, %v1641_v44  ;;  %v1728_v5 = vmul.f32 %v2182_v54, %v3198_v63 }
 0x1ce   : > { %v1616_v25 = vpop.xlane.xlu0 %1615  ;;  %2197 = vrcp.f32 %v1714_v47 }
 0x1cf   : > { %2199 = vrsqrt.f32 %v1628_v48  ;;  %v1624_v49 = vmul.f32 0.0078125, %v1616_v25  ;;  %v1671_v4 = vadd.f32 %v2074_v10, %v1656_v8 }
 0x1d0   : > { %2201 = vrcp.f32 %v1717_v56 }
 0x1d1   : > { %v2184_v36 = vpop.eup %2183  ;;  %v1632_v20 = vadd.f32 1e-05, %v1624_v49  ;;  %2203 = vrcp.f32 %v1718_v26  ;;  %v1735_v39 = vmul.f32 %v1727_v31, %v1671_v4 }
 0x1d2   : > { %v2186_v18 = vpop.eup %2185  ;;  %v1642_v34 = vmul.f32 %v2184_v36, %v3142_v12 }
 0x1d3   : > { %v1614_v59 = vpop.xlane.xlu1 %1613  ;;  %v2188_v16 = vpop.eup %2187  ;;  %v1645_v23 = vmul.f32 %v2186_v18, %v3140_v38 }
 0x1d4   : > { %v1623_v6 = vmul.f32 0.0078125, %v1614_v59  ;;  %v2190_v50 = vpop.eup %2189  ;;  %v1657_v42 = vmul.f32 %v3223_v55, %v1642_v34  ;;  %v1731_v57 = vmul.f32 %v2188_v16, %v3202_v9 }
 0x1d5   : > { %v2192_v7 = vpop.eup %2191  ;;  %v1660_v24 = vmul.f32 %v3223_v55, %v1645_v23  ;;  %v1732_v38 = vmul.f32 %v2190_v50, %v3204_v43 }
 0x1d6   : > { %v1631_v13 = vadd.f32 1e-05, %v1623_v6  ;;  %v2194_v3 = vpop.eup %2193  ;;  %v1672_v45 = vadd.f32 %v2074_v10, %v1657_v42  ;;  %v1646_v60 = vmul.f32 %v2192_v7, %v3148_v29 }
 0x1d7   : > { %v2196_v12 = vpop.eup %2195  ;;  %v1643_v41 = vmul.f32 %v2194_v3, %v3150_v40  ;;  %v1675_v63 = vadd.f32 %v2074_v10, %v1660_v24 }
 0x1d8   : > { %2205 = vrsqrt.f32 %v1631_v13  ;;  %v2198_v27 = vpop.eup %2197  ;;  %v1736_v53 = vmul.f32 %v1728_v5, %v1672_v45  ;;  %v1661_v17 = vmul.f32 %v3223_v55, %v1646_v60  ;;  %v1729_v9 = vmul.f32 %v2196_v12, %v3208_v32 }
 0x1d9   : > { %2207 = vrsqrt.f32 %v1632_v20  ;;  %v2200_v30 = vpop.eup %2199  ;;  %v1658_v37 = vmul.f32 %v3223_v55, %v1643_v41  ;;  %v1730_v43 = vmul.f32 %v2198_v27, %v3210_v35  ;;  %v1739_v15 = vmul.f32 %v1731_v57, %v1675_v63 }
 0x1da   : > { %v2202_v0 = vpop.eup %2201  ;;  %v1743_v2 = vpack.c.bf16 %v1736_v53, %v1735_v39  ;;  %v1676_v52 = vadd.f32 %v2074_v10, %v1661_v17  ;;  %v1644_v29 = vmul.f32 %v2200_v30, %v3156_v11 }
 0x1db   : > { %v2204_v58 = vpop.eup %2203  ;;  %v1673_v62 = vadd.f32 %v2074_v10, %v1658_v37  ;;  %v1733_v32 = vmul.f32 %v2202_v0, %v3213_v22 }
 0x1dc   : > { %2118 = vmatprep.mubr.bf16.mxu0 %v1743_v2  ;;  %v1740_v1 = vmul.f32 %v1732_v38, %v1676_v52  ;;  %v1659_v51 = vmul.f32 %v3223_v55, %v1644_v29  ;;  %v1734_v26 = vmul.f32 %v2204_v58, %v3216_v21 }
 0x1dd   : > { %v1737_v35 = vmul.f32 %v1729_v9, %v1673_v62 }
 0x1de   : > { %v1745_v56 = vpack.c.bf16 %v1740_v1, %v1739_v15  ;;  %v1674_v61 = vadd.f32 %v2074_v10, %v1659_v51 }
 0x1e0   : > { %2122 = vmatprep.mubr.bf16.mxu1 %v1745_v56  ;;  %v1738_v48 = vmul.f32 %v1730_v43, %v1674_v61 }
 0x1e2   : > { %v2206_v40 = vpop.eup %2205  ;;  %v1744_v25 = vpack.c.bf16 %v1738_v48, %v1737_v35 }
 0x1e3   : > { %v2208_v28 = vpop.eup %2207  ;;  %v1647_v47 = vmul.f32 %v2206_v40, %v3160_v33 }
 0x1e4   : > { %v1648_v19 = vmul.f32 %v2208_v28, %v3162_v14  ;;  %2119 = vmatmul.mubr.bf16.vlgmr.msra.gmra.mrb[0].mxu0 %v1744_v25 }
 0x1e5   : > { %v1662_v11 = vmul.f32 %v3223_v55, %v1647_v47 }
 0x1e6   : > { %v1663_v59 = vmul.f32 %v3223_v55, %v1648_v19 }
 0x1e7   : > { %v1677_v6 = vadd.f32 %v2074_v10, %v1662_v11 }
 0x1e8   : > { %v1678_v44 = vadd.f32 %v2074_v10, %v1663_v59 }
 0x1e9   : > { %v1741_v33 = vmul.f32 %v1733_v32, %v1677_v6 }
 0x1ea   : > { %v1742_v14 = vmul.f32 %v1734_v26, %v1678_v44 }
 0x1ec   : > { %v1746_v46 = vpack.c.bf16 %v1742_v14, %v1741_v33 }
 0x1ee   : > { %2123 = vmatmul.mubr.bf16.vlgmr.msra.gmra.mrb[0].mxu1 %v1746_v46 }
 0x2b7   : > { %v2120_v22 = vpop.f32.mrb[0].mxu0 }
 0x2b8   : > { %1878 = vst [vmem:[%s446_s16 + $0x10] sm:$0xff] %v2120_v22  ;;  %v1845_v49 = vpop.f32.mrb[1].mxu0 }
 0x2b9   : > { %1876 = vst [vmem:[%s446_s16] sm:$0xff] %v1845_v49  ;;  %v2121_v54 = vpop.f32.mrb[2].mxu0 }
 0x2ba   : > { %1879 = vst [vmem:[%s446_s16 + $0x18] sm:$0xff] %v2121_v54  ;;  %v1848_v55 = vpop.f32.mrb[3].mxu0 }
 0x2bb   : > { %1877 = vst [vmem:[%s446_s16 + $0x8] sm:$0xff] %v1848_v55 }
 0x2c1   : > { %v2124_v21 = vpop.f32.mrb[0].mxu1 }
 0x2c2   : > { %1882 = vst [vmem:[%s446_s16 + $0x30] sm:$0xff] %v2124_v21  ;;  %v1861_v13 = vpop.f32.mrb[1].mxu1 }
 0x2c3   : > { %1880 = vst [vmem:[%s446_s16 + $0x20] sm:$0xff] %v1861_v13  ;;  %v2125_v8 = vpop.f32.mrb[2].mxu1 }
 0x2c4   : > { %1883 = vst [vmem:[%s446_s16 + $0x38] sm:$0xff] %v2125_v8  ;;  %v1864_v36 = vpop.f32.mrb[3].mxu1 }
 0x2c5   : > { %1881 = vst [vmem:[%s446_s16 + $0x28] sm:$0xff] %v1864_v36 }
 0x2c6 PF: > { %s21_s17 = sadd.s32 1, %s2221_s17  }
 0x2c7   : > { %p18_p4 = scmp.ge.s32.totalorder %s21_s17, 4  }
 0x2c9   :  { %20 = sbr.rel (!%p18_p4) target bundleno = 1 (0x1), region = 117 }

</bundles_post_ra>
